<compile_context>
chip_gen: v5e
topology: v5e:2x2
jax: 0.10.0
libtpu: 0.0.40
codegen_flags: <defaults>
</compile_context>

<pallas_src>
import functools
import math
import jax
import jax.numpy as jnp
from jax.experimental import pallas as pl
from jax.experimental.pallas import tpu as pltpu

# ---- small synthetic CLIP-vision config (same structure as HF CLIPVisionTransformer) ----
BATCH = 2
CHANNELS = 3
IMAGE_SIZE = 16
PATCH_SIZE = 8
HIDDEN = 32
NUM_HEADS = 4
HEAD_DIM = HIDDEN // NUM_HEADS
INTERMEDIATE = 64
NUM_LAYERS = 2
NUM_PATCHES = (IMAGE_SIZE // PATCH_SIZE) ** 2      # 4
SEQ = NUM_PATCHES + 1                              # 5  (CLS + patches)
PATCH_DIM = CHANNELS * PATCH_SIZE * PATCH_SIZE     # 192
LN_EPS = 1e-5

_VEC_GLOBAL_ROWS = 6     # pre_ln_w, pre_ln_b, post_ln_w, post_ln_b, head_w, head_b
_VEC_ROWS_PER_LAYER = 9  # ln1_w, ln1_b, q_b(*scale), k_b, v_b, o_b, ln2_w, ln2_b, fc2_b


def _layer_norm(x, w, b):
    mean = jnp.mean(x, axis=-1, keepdims=True)
    var = jnp.mean(jnp.square(x - mean), axis=-1, keepdims=True)
    return (x - mean) * jax.lax.rsqrt(var + LN_EPS) * w + b


def clip_vit_kernel(bc, patches_ref, patch_w_ref, vecs_ref, attn_w_ref, mlp_w_ref,
                    logits_ref):
    # bc images per grid step, folded along the sublane axis: n = bc * SEQ rows.
    S, D, H, Dh, I = SEQ, HIDDEN, NUM_HEADS, HEAD_DIM, INTERMEDIATE
    n = bc * S

    patches = patches_ref[0]                       # (n, PATCH_DIM)
    vecs = vecs_ref[...]                           # (n + 6 + 9*L, D) packed vector slab

    def row(i):                                    # (1, D) slice of the vector slab
        return vecs[i:i + 1, :]

    pre_ln_w, pre_ln_b = row(n + 0), row(n + 1)
    post_ln_w, post_ln_b = row(n + 2), row(n + 3)
    head_w, head_b = row(n + 4), row(n + 5)

    # Patch embedding; CLS+pos embedding already tiled per image into vecs[0:n].
    x = jnp.dot(patches, patch_w_ref[...], preferred_element_type=jnp.float32)
    x = x + vecs[0:n, :]
    x = _layer_norm(x, pre_ln_w, pre_ln_b)         # pre_layrnorm

    for l in range(NUM_LAYERS):
        base = n + _VEC_GLOBAL_ROWS + l * _VEC_ROWS_PER_LAYER
        ln1_w, ln1_b = row(base + 0), row(base + 1)
        q_b, k_b, v_b = row(base + 2), row(base + 3), row(base + 4)
        o_b = row(base + 5)
        ln2_w, ln2_b = row(base + 6), row(base + 7)
        fc2_b = row(base + 8)

        attn_w = attn_w_ref[l]                     # (D, 4D): [q*scale | k | v | o]
        mlp_w = mlp_w_ref[l]                       # (D+I+1, I): [fc1_w ; fc2_w(pad) ; fc1_b]
        fc1_w = mlp_w[0:D, :]                      # (D, I)
        fc2_w = mlp_w[D:D + I, 0:D]                # (I, D)
        fc1_b = mlp_w[D + I:D + I + 1, :]          # (1, I)

        # ---- self-attention (fused QKV, head-batched einsums) ----
        res = x
        h = _layer_norm(x, ln1_w, ln1_b)
        qkv = jnp.dot(h, attn_w[:, 0:3 * D], preferred_element_type=jnp.float32)  # (n, 3D)
        q = qkv[:, 0:D] + q_b                      # scale folded into q weights/bias
        k = qkv[:, D:2 * D] + k_b
        v = qkv[:, 2 * D:3 * D] + v_b

        ctx_rows = []
        for b in range(bc):                        # unrolled, bc is 1 or 2
            r0 = b * S
            qh = pltpu.einshape("shd->hsd", q[r0:r0 + S, :].reshape(S, H, Dh))
            kh = pltpu.einshape("shd->hsd", k[r0:r0 + S, :].reshape(S, H, Dh))
            vh = pltpu.einshape("shd->hsd", v[r0:r0 + S, :].reshape(S, H, Dh))
            s = jnp.einsum("hqd,hkd->hqk", qh, kh,
                           preferred_element_type=jnp.float32)          # (H, S, S)
            s = s - jnp.max(s, axis=-1, keepdims=True)
            p = jnp.exp(s)
            p = p * pl.reciprocal(jnp.sum(p, axis=-1, keepdims=True), approx=True)
            ctx = jnp.einsum("hqk,hkd->hqd", p, vh,
                             preferred_element_type=jnp.float32)        # (H, S, Dh)
            ctx_rows.append(pltpu.einshape("hsd->shd", ctx).reshape(S, D))
        ctx_all = ctx_rows[0] if bc == 1 else jnp.concatenate(ctx_rows, axis=0)
        attn_out = jnp.dot(ctx_all, attn_w[:, 3 * D:4 * D],
                           preferred_element_type=jnp.float32) + o_b
        x = res + attn_out

        # ---- MLP block (quick_gelu) ----
        res = x
        h = _layer_norm(x, ln2_w, ln2_b)
        h = jnp.dot(h, fc1_w, preferred_element_type=jnp.float32) + fc1_b
        h = h * jax.nn.sigmoid(1.702 * h)          # quick_gelu
        h = jnp.dot(h, fc2_w, preferred_element_type=jnp.float32) + fc2_b
        x = res + h

    # pooler_output = post_layernorm(last_hidden_state[:, 0, :]); classifier head.
    cols = []
    for b in range(bc):
        pooled = _layer_norm(x[b * S:b * S + 1, :], post_ln_w, post_ln_b)   # (1, D)
        cols.append(jnp.sum(pooled * head_w, axis=-1, keepdims=True))       # (1, 1)
    logit_row = (cols[0] if bc == 1 else jnp.concatenate(cols, axis=-1))
    logits_ref[0] = logit_row + head_b[0:1, 0:1]   # (1, bc)


def _im2col(pixel_values, patch_size):
    # Conv2d(C, D, kernel=stride=patch, bias=False) reduced to a matmul; patch order
    # matches HF flatten(2).transpose(1,2), feature order matches conv-weight flatten.
    B, C, H, W = pixel_values.shape
    Hp, Wp = H // patch_size, W // patch_size
    x = pixel_values.reshape(B, C, Hp, patch_size, Wp, patch_size)
    x = x.transpose(0, 2, 4, 1, 3, 5)
    return x.reshape(B, Hp * Wp, C * patch_size * patch_size)


def _pack_params(params, bc):
    L, D, I = NUM_LAYERS, HIDDEN, INTERMEDIATE
    scale = 1.0 / math.sqrt(HEAD_DIM)

    # concat([cls, patch_emb]) + pos_emb == padded_patch_emb + (pos_emb w/ cls on row 0)
    pos_cls = params["pos_emb"].at[0].add(params["cls_emb"][0])              # (S, D)
    rows = [jnp.tile(pos_cls, (bc, 1)),
            params["pre_ln_w"], params["pre_ln_b"],
            params["post_ln_w"], params["post_ln_b"],
            params["head_w"],
            jnp.broadcast_to(params["head_b"].reshape(1, 1), (1, D))]
    for l in range(L):
        rows += [params["ln1_w"][l], params["ln1_b"][l],
                 params["q_b"][l] * scale, params["k_b"][l], params["v_b"][l],
                 params["o_b"][l],
                 params["ln2_w"][l], params["ln2_b"][l], params["fc2_b"][l]]
    vecs = jnp.concatenate(rows, axis=0).astype(jnp.float32)                 # (bc*S+6+9L, D)

    attn_w = jnp.concatenate(
        [params["q_w"] * scale, params["k_w"], params["v_w"], params["o_w"]],
        axis=-1).astype(jnp.float32)                                         # (L, D, 4D)

    fc2_pad = jnp.pad(params["fc2_w"], ((0, 0), (0, 0), (0, I - D)))         # (L, I, I)
    mlp_w = jnp.concatenate(
        [params["fc1_w"], fc2_pad, params["fc1_b"]], axis=1).astype(jnp.float32)  # (L, D+I+1, I)

    return params["patch_w"].astype(jnp.float32), vecs, attn_w, mlp_w


def init_params(key):
    keys = iter(jax.random.split(key, 16))

    def nrm(shape, scale=0.02):
        return (scale * jax.random.normal(next(keys), shape)).astype(jnp.float32)

    return dict(
        patch_w=nrm((PATCH_DIM, HIDDEN)),            # flattened conv kernel (bias=False)
        cls_emb=nrm((1, HIDDEN)),
        pos_emb=nrm((SEQ, HIDDEN)),
        pre_ln_w=jnp.ones((1, HIDDEN), jnp.float32),
        pre_ln_b=jnp.zeros((1, HIDDEN), jnp.float32),
        ln1_w=jnp.ones((NUM_LAYERS, 1, HIDDEN), jnp.float32),
        ln1_b=jnp.zeros((NUM_LAYERS, 1, HIDDEN), jnp.float32),
        q_w=nrm((NUM_LAYERS, HIDDEN, HIDDEN)),
        q_b=jnp.zeros((NUM_LAYERS, 1, HIDDEN), jnp.float32),
        k_w=nrm((NUM_LAYERS, HIDDEN, HIDDEN)),
        k_b=jnp.zeros((NUM_LAYERS, 1, HIDDEN), jnp.float32),
        v_w=nrm((NUM_LAYERS, HIDDEN, HIDDEN)),
        v_b=jnp.zeros((NUM_LAYERS, 1, HIDDEN), jnp.float32),
        o_w=nrm((NUM_LAYERS, HIDDEN, HIDDEN)),
        o_b=jnp.zeros((NUM_LAYERS, 1, HIDDEN), jnp.float32),
        ln2_w=jnp.ones((NUM_LAYERS, 1, HIDDEN), jnp.float32),
        ln2_b=jnp.zeros((NUM_LAYERS, 1, HIDDEN), jnp.float32),
        fc1_w=nrm((NUM_LAYERS, HIDDEN, INTERMEDIATE)),
        fc1_b=jnp.zeros((NUM_LAYERS, 1, INTERMEDIATE), jnp.float32),
        fc2_w=nrm((NUM_LAYERS, INTERMEDIATE, HIDDEN)),
        fc2_b=jnp.zeros((NUM_LAYERS, 1, HIDDEN), jnp.float32),
        post_ln_w=jnp.ones((1, HIDDEN), jnp.float32),
        post_ln_b=jnp.zeros((1, HIDDEN), jnp.float32),
        head_w=nrm((1, HIDDEN)),                     # Linear(hidden, 1) weight (as (1, D))
        head_b=jnp.zeros((1, 1), jnp.float32),
    )


def clip_binary_classifier_forward(params, pixel_values, labels=None, grid_chunks=1):
    # grid_chunks=1: whole batch in one grid step (best on single-TC v5e/v6e).
    # On v7x pass grid_chunks=2 so the "parallel" grid axis feeds both TensorCores.
    if pixel_values.ndim == 3:
        pixel_values = pixel_values[None]
    if pixel_values.size == 0:
        empty = jnp.zeros((0,), jnp.float32)
        if labels is not None and labels.size == 0:
            return {"loss": jnp.float32(0.0), "logits": empty}
        return {"logits": empty}

    B = pixel_values.shape[0]
    G = grid_chunks if (grid_chunks > 0 and B % grid_chunks == 0) else 1
    bc = B // G
    n = bc * SEQ

    patches = _im2col(pixel_values.astype(jnp.float32), PATCH_SIZE)          # (B, P, K)
    patches = jnp.pad(patches, ((0, 0), (1, 0), (0, 0)))                     # (B, S, K); row 0 = CLS slot
    patches = patches.reshape(G, n, PATCH_DIM)                               # batch folded into sublanes

    patch_w, vecs, attn_w, mlp_w = _pack_params(params, bc)

    def full_spec(arr):
        nd = arr.ndim
        return pl.BlockSpec(arr.shape, lambda g, nd=nd: (0,) * nd)

    kernel = functools.partial(clip_vit_kernel, bc)
    logits3 = pl.pallas_call(
        kernel,
        out_shape=jax.ShapeDtypeStruct((G, 1, bc), jnp.float32),
        grid=(G,),
        in_specs=[pl.BlockSpec((1, n, PATCH_DIM), lambda g: (g, 0, 0)),
                  full_spec(patch_w), full_spec(vecs),
                  full_spec(attn_w), full_spec(mlp_w)],
        out_specs=pl.BlockSpec((1, 1, bc), lambda g: (g, 0, 0)),
        compiler_params=pltpu.CompilerParams(dimension_semantics=("parallel",)),
    )(patches, patch_w, vecs, attn_w, mlp_w)

    logits = logits3.reshape(B, 1)                    # matches torch Linear(hidden, 1)
    if labels is not None:
        z = logits.reshape(B)
        y = labels.astype(jnp.float32)
        # BCEWithLogitsLoss (mean reduction), numerically stable form (tiny; plain JAX).
        loss = jnp.mean(jnp.maximum(z, 0.0) - z * y + jnp.log1p(jnp.exp(-jnp.abs(z))))
        return {"loss": loss, "logits": logits}
    return {"logits": logits}


if __name__ == "__main__":
    key = jax.random.PRNGKey(0)
    pkey, xkey, lkey = jax.random.split(key, 3)
    params = init_params(pkey)
    pixel_values = jax.random.normal(
        xkey, (BATCH, CHANNELS, IMAGE_SIZE, IMAGE_SIZE), jnp.float32)
    labels = (jax.random.uniform(lkey, (BATCH,)) > 0.5).astype(jnp.float32)

    out = clip_binary_classifier_forward(params, pixel_values, labels=labels)
    jax.block_until_ready(out["logits"])
    jax.block_until_ready(out["loss"])
    print("KERNEL_OK")
</pallas_src>

<mosaic_0001>
module attributes {stable_mosaic.version = 11 : i64} {
  func.func @clip_vit_kernel(%arg0: i32, %arg1: memref<1x10x192xf32, #tpu.memory_space<vmem>>, %arg2: memref<192x32xf32, #tpu.memory_space<vmem>>, %arg3: memref<34x32xf32, #tpu.memory_space<vmem>>, %arg4: memref<2x32x128xf32, #tpu.memory_space<vmem>>, %arg5: memref<2x97x64xf32, #tpu.memory_space<vmem>>, %arg6: memref<1x1x2xf32, #tpu.memory_space<vmem>>) attributes {dimension_semantics = [#tpu.dimension_semantics<parallel>], iteration_bounds = array<i64: 1>, scalar_prefetch = 0 : i64, scratch_operands = 0 : i64, tpu.core_type = #tpu.core_type<tc>, window_params = [{transform_indices = @transform_0, window_bounds = array<i64: 1, 10, 192>}, {pipeline_mode = #tpu.pipeline_mode<synchronous>, transform_indices = @transform_1, window_bounds = array<i64: 192, 32>}, {pipeline_mode = #tpu.pipeline_mode<synchronous>, transform_indices = @transform_2, window_bounds = array<i64: 34, 32>}, {pipeline_mode = #tpu.pipeline_mode<synchronous>, transform_indices = @transform_3, window_bounds = array<i64: 2, 32, 128>}, {pipeline_mode = #tpu.pipeline_mode<synchronous>, transform_indices = @transform_4, window_bounds = array<i64: 2, 97, 64>}, {transform_indices = @transform_5, window_bounds = array<i64: 1, 1, 2>}]} {
    %c0 = arith.constant 0 : index
    %c0_0 = arith.constant 0 : index
    %c0_1 = arith.constant 0 : index
    %0 = vector.load %arg1[%c0, %c0_0, %c0_1] : memref<1x10x192xf32, #tpu.memory_space<vmem>>, vector<1x10x192xf32>
    %1 = vector.shape_cast %0 : vector<1x10x192xf32> to vector<10x192xf32>
    %c0_2 = arith.constant 0 : index
    %c0_3 = arith.constant 0 : index
    %2 = vector.load %arg3[%c0_2, %c0_3] : memref<34x32xf32, #tpu.memory_space<vmem>>, vector<34x32xf32>
    %3 = vector.extract_strided_slice %2 {offsets = [10, 0], sizes = [1, 32], strides = [1, 1]} : vector<34x32xf32> to vector<1x32xf32>
    %4 = vector.extract_strided_slice %2 {offsets = [11, 0], sizes = [1, 32], strides = [1, 1]} : vector<34x32xf32> to vector<1x32xf32>
    %5 = vector.extract_strided_slice %2 {offsets = [12, 0], sizes = [1, 32], strides = [1, 1]} : vector<34x32xf32> to vector<1x32xf32>
    %6 = vector.extract_strided_slice %2 {offsets = [13, 0], sizes = [1, 32], strides = [1, 1]} : vector<34x32xf32> to vector<1x32xf32>
    %7 = vector.extract_strided_slice %2 {offsets = [14, 0], sizes = [1, 32], strides = [1, 1]} : vector<34x32xf32> to vector<1x32xf32>
    %8 = vector.extract_strided_slice %2 {offsets = [15, 0], sizes = [1, 32], strides = [1, 1]} : vector<34x32xf32> to vector<1x32xf32>
    %c0_4 = arith.constant 0 : index
    %c0_5 = arith.constant 0 : index
    %9 = vector.load %arg2[%c0_4, %c0_5] : memref<192x32xf32, #tpu.memory_space<vmem>>, vector<192x32xf32>
    %cst = arith.constant dense<0.000000e+00> : vector<10x32xf32>
    %10 = tpu.matmul %1, %9, %cst {dimension_numbers = #tpu.dot_dimension_numbers<[1], [0], [0], [1], [0, 0, 1, 1], [], []>} : vector<10x192xf32>, vector<192x32xf32>, vector<10x32xf32> -> vector<10x32xf32>
    %11 = vector.extract_strided_slice %2 {offsets = [0, 0], sizes = [10, 32], strides = [1, 1]} : vector<34x32xf32> to vector<10x32xf32>
    %12 = arith.addf %10, %11 : vector<10x32xf32>
    %cst_6 = arith.constant dense<0.000000e+00> : vector<10xf32>
    %13 = vector.multi_reduction <add>, %12, %cst_6 [1] : vector<10x32xf32> to vector<10xf32>
    %14 = vector.shape_cast %13 : vector<10xf32> to vector<10x1xf32>
    %cst_7 = arith.constant 3.200000e+01 : f32
    %15 = vector.broadcast %cst_7 : f32 to vector<10x1xf32>
    %16 = arith.divf %14, %15 : vector<10x1xf32>
    %17 = vector.broadcast %16 : vector<10x1xf32> to vector<10x32xf32>
    %18 = arith.subf %12, %17 : vector<10x32xf32>
    %19 = arith.mulf %18, %18 : vector<10x32xf32>
    %cst_8 = arith.constant dense<0.000000e+00> : vector<10xf32>
    %20 = vector.multi_reduction <add>, %19, %cst_8 [1] : vector<10x32xf32> to vector<10xf32>
    %21 = vector.shape_cast %20 : vector<10xf32> to vector<10x1xf32>
    %cst_9 = arith.constant 3.200000e+01 : f32
    %22 = vector.broadcast %cst_9 : f32 to vector<10x1xf32>
    %23 = arith.divf %21, %22 : vector<10x1xf32>
    %24 = vector.broadcast %16 : vector<10x1xf32> to vector<10x32xf32>
    %25 = arith.subf %12, %24 : vector<10x32xf32>
    %cst_10 = arith.constant 9.99999974E-6 : f32
    %26 = vector.broadcast %cst_10 : f32 to vector<10x1xf32>
    %27 = arith.addf %23, %26 : vector<10x1xf32>
    %28 = math.rsqrt %27 : vector<10x1xf32>
    %29 = vector.broadcast %28 : vector<10x1xf32> to vector<10x32xf32>
    %30 = arith.mulf %25, %29 : vector<10x32xf32>
    %31 = vector.broadcast %3 : vector<1x32xf32> to vector<10x32xf32>
    %32 = arith.mulf %30, %31 : vector<10x32xf32>
    %33 = vector.broadcast %4 : vector<1x32xf32> to vector<10x32xf32>
    %34 = arith.addf %32, %33 : vector<10x32xf32>
    %35 = vector.extract_strided_slice %2 {offsets = [16, 0], sizes = [1, 32], strides = [1, 1]} : vector<34x32xf32> to vector<1x32xf32>
    %36 = vector.extract_strided_slice %2 {offsets = [17, 0], sizes = [1, 32], strides = [1, 1]} : vector<34x32xf32> to vector<1x32xf32>
    %37 = vector.extract_strided_slice %2 {offsets = [18, 0], sizes = [1, 32], strides = [1, 1]} : vector<34x32xf32> to vector<1x32xf32>
    %38 = vector.extract_strided_slice %2 {offsets = [19, 0], sizes = [1, 32], strides = [1, 1]} : vector<34x32xf32> to vector<1x32xf32>
    %39 = vector.extract_strided_slice %2 {offsets = [20, 0], sizes = [1, 32], strides = [1, 1]} : vector<34x32xf32> to vector<1x32xf32>
    %40 = vector.extract_strided_slice %2 {offsets = [21, 0], sizes = [1, 32], strides = [1, 1]} : vector<34x32xf32> to vector<1x32xf32>
    %41 = vector.extract_strided_slice %2 {offsets = [22, 0], sizes = [1, 32], strides = [1, 1]} : vector<34x32xf32> to vector<1x32xf32>
    %42 = vector.extract_strided_slice %2 {offsets = [23, 0], sizes = [1, 32], strides = [1, 1]} : vector<34x32xf32> to vector<1x32xf32>
    %43 = vector.extract_strided_slice %2 {offsets = [24, 0], sizes = [1, 32], strides = [1, 1]} : vector<34x32xf32> to vector<1x32xf32>
    %c0_11 = arith.constant 0 : index
    %c0_12 = arith.constant 0 : index
    %c0_13 = arith.constant 0 : index
    %44 = vector.load %arg4[%c0_11, %c0_12, %c0_13] : memref<2x32x128xf32, #tpu.memory_space<vmem>>, vector<1x32x128xf32>
    %45 = vector.shape_cast %44 : vector<1x32x128xf32> to vector<32x128xf32>
    %c0_14 = arith.constant 0 : index
    %c0_15 = arith.constant 0 : index
    %c0_16 = arith.constant 0 : index
    %46 = vector.load %arg5[%c0_14, %c0_15, %c0_16] : memref<2x97x64xf32, #tpu.memory_space<vmem>>, vector<1x97x64xf32>
    %47 = vector.shape_cast %46 : vector<1x97x64xf32> to vector<97x64xf32>
    %48 = vector.extract_strided_slice %47 {offsets = [0, 0], sizes = [32, 64], strides = [1, 1]} : vector<97x64xf32> to vector<32x64xf32>
    %49 = vector.extract_strided_slice %47 {offsets = [32, 0], sizes = [64, 32], strides = [1, 1]} : vector<97x64xf32> to vector<64x32xf32>
    %50 = vector.extract_strided_slice %47 {offsets = [96, 0], sizes = [1, 64], strides = [1, 1]} : vector<97x64xf32> to vector<1x64xf32>
    %cst_17 = arith.constant dense<0.000000e+00> : vector<10xf32>
    %51 = vector.multi_reduction <add>, %34, %cst_17 [1] : vector<10x32xf32> to vector<10xf32>
    %52 = vector.shape_cast %51 : vector<10xf32> to vector<10x1xf32>
    %cst_18 = arith.constant 3.200000e+01 : f32
    %53 = vector.broadcast %cst_18 : f32 to vector<10x1xf32>
    %54 = arith.divf %52, %53 : vector<10x1xf32>
    %55 = vector.broadcast %54 : vector<10x1xf32> to vector<10x32xf32>
    %56 = arith.subf %34, %55 : vector<10x32xf32>
    %57 = arith.mulf %56, %56 : vector<10x32xf32>
    %cst_19 = arith.constant dense<0.000000e+00> : vector<10xf32>
    %58 = vector.multi_reduction <add>, %57, %cst_19 [1] : vector<10x32xf32> to vector<10xf32>
    %59 = vector.shape_cast %58 : vector<10xf32> to vector<10x1xf32>
    %cst_20 = arith.constant 3.200000e+01 : f32
    %60 = vector.broadcast %cst_20 : f32 to vector<10x1xf32>
    %61 = arith.divf %59, %60 : vector<10x1xf32>
    %62 = vector.broadcast %54 : vector<10x1xf32> to vector<10x32xf32>
    %63 = arith.subf %34, %62 : vector<10x32xf32>
    %cst_21 = arith.constant 9.99999974E-6 : f32
    %64 = vector.broadcast %cst_21 : f32 to vector<10x1xf32>
    %65 = arith.addf %61, %64 : vector<10x1xf32>
    %66 = math.rsqrt %65 : vector<10x1xf32>
    %67 = vector.broadcast %66 : vector<10x1xf32> to vector<10x32xf32>
    %68 = arith.mulf %63, %67 : vector<10x32xf32>
    %69 = vector.broadcast %35 : vector<1x32xf32> to vector<10x32xf32>
    %70 = arith.mulf %68, %69 : vector<10x32xf32>
    %71 = vector.broadcast %36 : vector<1x32xf32> to vector<10x32xf32>
    %72 = arith.addf %70, %71 : vector<10x32xf32>
    %73 = vector.extract_strided_slice %45 {offsets = [0, 0], sizes = [32, 96], strides = [1, 1]} : vector<32x128xf32> to vector<32x96xf32>
    %cst_22 = arith.constant dense<0.000000e+00> : vector<10x96xf32>
    %74 = tpu.matmul %72, %73, %cst_22 {dimension_numbers = #tpu.dot_dimension_numbers<[1], [0], [0], [1], [0, 0, 1, 1], [], []>} : vector<10x32xf32>, vector<32x96xf32>, vector<10x96xf32> -> vector<10x96xf32>
    %75 = vector.extract_strided_slice %74 {offsets = [0, 0], sizes = [10, 32], strides = [1, 1]} : vector<10x96xf32> to vector<10x32xf32>
    %76 = vector.broadcast %37 : vector<1x32xf32> to vector<10x32xf32>
    %77 = arith.addf %75, %76 : vector<10x32xf32>
    %78 = vector.extract_strided_slice %74 {offsets = [0, 32], sizes = [10, 32], strides = [1, 1]} : vector<10x96xf32> to vector<10x32xf32>
    %79 = vector.broadcast %38 : vector<1x32xf32> to vector<10x32xf32>
    %80 = arith.addf %78, %79 : vector<10x32xf32>
    %81 = vector.extract_strided_slice %74 {offsets = [0, 64], sizes = [10, 32], strides = [1, 1]} : vector<10x96xf32> to vector<10x32xf32>
    %82 = vector.broadcast %39 : vector<1x32xf32> to vector<10x32xf32>
    %83 = arith.addf %81, %82 : vector<10x32xf32>
    %84 = vector.extract_strided_slice %77 {offsets = [0, 0], sizes = [5, 32], strides = [1, 1]} : vector<10x32xf32> to vector<5x32xf32>
    %85 = vector.shape_cast %84 : vector<5x32xf32> to vector<5x4x8xf32>
    %86 = tpu.transpose %85, [1, 0, 2] : vector<5x4x8xf32> -> vector<4x5x8xf32>
    %87 = vector.extract_strided_slice %80 {offsets = [0, 0], sizes = [5, 32], strides = [1, 1]} : vector<10x32xf32> to vector<5x32xf32>
    %88 = vector.shape_cast %87 : vector<5x32xf32> to vector<5x4x8xf32>
    %89 = tpu.transpose %88, [1, 0, 2] : vector<5x4x8xf32> -> vector<4x5x8xf32>
    %90 = vector.extract_strided_slice %83 {offsets = [0, 0], sizes = [5, 32], strides = [1, 1]} : vector<10x32xf32> to vector<5x32xf32>
    %91 = vector.shape_cast %90 : vector<5x32xf32> to vector<5x4x8xf32>
    %92 = tpu.transpose %91, [1, 0, 2] : vector<5x4x8xf32> -> vector<4x5x8xf32>
    "tpu.trace_start"() <{level = 10 : i32, message = "hqd,hkd->hqk"}> : () -> ()
    %cst_23 = arith.constant dense<0.000000e+00> : vector<4x5x5xf32>
    %93 = tpu.matmul %86, %89, %cst_23 {dimension_numbers = #tpu.dot_dimension_numbers<[2], [2], [1], [1], [0, 0, 0, 1, 1, 1], [0], [0]>} : vector<4x5x8xf32>, vector<4x5x8xf32>, vector<4x5x5xf32> -> vector<4x5x5xf32>
    "tpu.trace_stop"() : () -> ()
    %cst_24 = arith.constant dense<0xFF800000> : vector<4x5xf32>
    %94 = vector.multi_reduction <maximumf>, %93, %cst_24 [2] : vector<4x5x5xf32> to vector<4x5xf32>
    %95 = vector.shape_cast %94 : vector<4x5xf32> to vector<4x5x1xf32>
    %96 = vector.broadcast %95 : vector<4x5x1xf32> to vector<4x5x5xf32>
    %97 = arith.subf %93, %96 : vector<4x5x5xf32>
    %98 = math.exp %97 : vector<4x5x5xf32>
    %cst_25 = arith.constant dense<0.000000e+00> : vector<4x5xf32>
    %99 = vector.multi_reduction <add>, %98, %cst_25 [2] : vector<4x5x5xf32> to vector<4x5xf32>
    %100 = vector.shape_cast %99 : vector<4x5xf32> to vector<4x5x1xf32>
    %101 = tpu.reciprocal %100 {approx = true} : vector<4x5x1xf32> -> vector<4x5x1xf32>
    %102 = vector.broadcast %101 : vector<4x5x1xf32> to vector<4x5x5xf32>
    %103 = arith.mulf %98, %102 : vector<4x5x5xf32>
    "tpu.trace_start"() <{level = 10 : i32, message = "hqk,hkd->hqd"}> : () -> ()
    %cst_26 = arith.constant dense<0.000000e+00> : vector<4x5x8xf32>
    %104 = tpu.matmul %103, %92, %cst_26 {dimension_numbers = #tpu.dot_dimension_numbers<[2], [1], [1], [2], [0, 0, 0, 1, 1, 2], [0], [0]>} : vector<4x5x5xf32>, vector<4x5x8xf32>, vector<4x5x8xf32> -> vector<4x5x8xf32>
    "tpu.trace_stop"() : () -> ()
    %105 = tpu.transpose %104, [1, 0, 2] : vector<4x5x8xf32> -> vector<5x4x8xf32>
    %106 = vector.shape_cast %105 : vector<5x4x8xf32> to vector<5x32xf32>
    %107 = vector.extract_strided_slice %77 {offsets = [5, 0], sizes = [5, 32], strides = [1, 1]} : vector<10x32xf32> to vector<5x32xf32>
    %108 = vector.shape_cast %107 : vector<5x32xf32> to vector<5x4x8xf32>
    %109 = tpu.transpose %108, [1, 0, 2] : vector<5x4x8xf32> -> vector<4x5x8xf32>
    %110 = vector.extract_strided_slice %80 {offsets = [5, 0], sizes = [5, 32], strides = [1, 1]} : vector<10x32xf32> to vector<5x32xf32>
    %111 = vector.shape_cast %110 : vector<5x32xf32> to vector<5x4x8xf32>
    %112 = tpu.transpose %111, [1, 0, 2] : vector<5x4x8xf32> -> vector<4x5x8xf32>
    %113 = vector.extract_strided_slice %83 {offsets = [5, 0], sizes = [5, 32], strides = [1, 1]} : vector<10x32xf32> to vector<5x32xf32>
    %114 = vector.shape_cast %113 : vector<5x32xf32> to vector<5x4x8xf32>
    %115 = tpu.transpose %114, [1, 0, 2] : vector<5x4x8xf32> -> vector<4x5x8xf32>
    "tpu.trace_start"() <{level = 10 : i32, message = "hqd,hkd->hqk"}> : () -> ()
    %cst_27 = arith.constant dense<0.000000e+00> : vector<4x5x5xf32>
    %116 = tpu.matmul %109, %112, %cst_27 {dimension_numbers = #tpu.dot_dimension_numbers<[2], [2], [1], [1], [0, 0, 0, 1, 1, 1], [0], [0]>} : vector<4x5x8xf32>, vector<4x5x8xf32>, vector<4x5x5xf32> -> vector<4x5x5xf32>
    "tpu.trace_stop"() : () -> ()
    %cst_28 = arith.constant dense<0xFF800000> : vector<4x5xf32>
    %117 = vector.multi_reduction <maximumf>, %116, %cst_28 [2] : vector<4x5x5xf32> to vector<4x5xf32>
    %118 = vector.shape_cast %117 : vector<4x5xf32> to vector<4x5x1xf32>
    %119 = vector.broadcast %118 : vector<4x5x1xf32> to vector<4x5x5xf32>
    %120 = arith.subf %116, %119 : vector<4x5x5xf32>
    %121 = math.exp %120 : vector<4x5x5xf32>
    %cst_29 = arith.constant dense<0.000000e+00> : vector<4x5xf32>
    %122 = vector.multi_reduction <add>, %121, %cst_29 [2] : vector<4x5x5xf32> to vector<4x5xf32>
    %123 = vector.shape_cast %122 : vector<4x5xf32> to vector<4x5x1xf32>
    %124 = tpu.reciprocal %123 {approx = true} : vector<4x5x1xf32> -> vector<4x5x1xf32>
    %125 = vector.broadcast %124 : vector<4x5x1xf32> to vector<4x5x5xf32>
    %126 = arith.mulf %121, %125 : vector<4x5x5xf32>
    "tpu.trace_start"() <{level = 10 : i32, message = "hqk,hkd->hqd"}> : () -> ()
    %cst_30 = arith.constant dense<0.000000e+00> : vector<4x5x8xf32>
    %127 = tpu.matmul %126, %115, %cst_30 {dimension_numbers = #tpu.dot_dimension_numbers<[2], [1], [1], [2], [0, 0, 0, 1, 1, 2], [0], [0]>} : vector<4x5x5xf32>, vector<4x5x8xf32>, vector<4x5x8xf32> -> vector<4x5x8xf32>
    "tpu.trace_stop"() : () -> ()
    %128 = tpu.transpose %127, [1, 0, 2] : vector<4x5x8xf32> -> vector<5x4x8xf32>
    %129 = vector.shape_cast %128 : vector<5x4x8xf32> to vector<5x32xf32>
    %130 = tpu.concatenate %106, %129 in 0 : vector<5x32xf32>, vector<5x32xf32> -> vector<10x32xf32>
    %131 = vector.extract_strided_slice %45 {offsets = [0, 96], sizes = [32, 32], strides = [1, 1]} : vector<32x128xf32> to vector<32x32xf32>
    %cst_31 = arith.constant dense<0.000000e+00> : vector<10x32xf32>
    %132 = tpu.matmul %130, %131, %cst_31 {dimension_numbers = #tpu.dot_dimension_numbers<[1], [0], [0], [1], [0, 0, 1, 1], [], []>} : vector<10x32xf32>, vector<32x32xf32>, vector<10x32xf32> -> vector<10x32xf32>
    %133 = vector.broadcast %40 : vector<1x32xf32> to vector<10x32xf32>
    %134 = arith.addf %132, %133 : vector<10x32xf32>
    %135 = arith.addf %34, %134 : vector<10x32xf32>
    %cst_32 = arith.constant dense<0.000000e+00> : vector<10xf32>
    %136 = vector.multi_reduction <add>, %135, %cst_32 [1] : vector<10x32xf32> to vector<10xf32>
    %137 = vector.shape_cast %136 : vector<10xf32> to vector<10x1xf32>
    %cst_33 = arith.constant 3.200000e+01 : f32
    %138 = vector.broadcast %cst_33 : f32 to vector<10x1xf32>
    %139 = arith.divf %137, %138 : vector<10x1xf32>
    %140 = vector.broadcast %139 : vector<10x1xf32> to vector<10x32xf32>
    %141 = arith.subf %135, %140 : vector<10x32xf32>
    %142 = arith.mulf %141, %141 : vector<10x32xf32>
    %cst_34 = arith.constant dense<0.000000e+00> : vector<10xf32>
    %143 = vector.multi_reduction <add>, %142, %cst_34 [1] : vector<10x32xf32> to vector<10xf32>
    %144 = vector.shape_cast %143 : vector<10xf32> to vector<10x1xf32>
    %cst_35 = arith.constant 3.200000e+01 : f32
    %145 = vector.broadcast %cst_35 : f32 to vector<10x1xf32>
    %146 = arith.divf %144, %145 : vector<10x1xf32>
    %147 = vector.broadcast %139 : vector<10x1xf32> to vector<10x32xf32>
    %148 = arith.subf %135, %147 : vector<10x32xf32>
    %cst_36 = arith.constant 9.99999974E-6 : f32
    %149 = vector.broadcast %cst_36 : f32 to vector<10x1xf32>
    %150 = arith.addf %146, %149 : vector<10x1xf32>
    %151 = math.rsqrt %150 : vector<10x1xf32>
    %152 = vector.broadcast %151 : vector<10x1xf32> to vector<10x32xf32>
    %153 = arith.mulf %148, %152 : vector<10x32xf32>
    %154 = vector.broadcast %41 : vector<1x32xf32> to vector<10x32xf32>
    %155 = arith.mulf %153, %154 : vector<10x32xf32>
    %156 = vector.broadcast %42 : vector<1x32xf32> to vector<10x32xf32>
    %157 = arith.addf %155, %156 : vector<10x32xf32>
    %cst_37 = arith.constant dense<0.000000e+00> : vector<10x64xf32>
    %158 = tpu.matmul %157, %48, %cst_37 {dimension_numbers = #tpu.dot_dimension_numbers<[1], [0], [0], [1], [0, 0, 1, 1], [], []>} : vector<10x32xf32>, vector<32x64xf32>, vector<10x64xf32> -> vector<10x64xf32>
    %159 = vector.broadcast %50 : vector<1x64xf32> to vector<10x64xf32>
    %160 = arith.addf %158, %159 : vector<10x64xf32>
    %cst_38 = arith.constant 1.702000e+00 : f32
    %161 = vector.broadcast %cst_38 : f32 to vector<10x64xf32>
    %162 = arith.mulf %161, %160 : vector<10x64xf32>
    %163 = arith.negf %162 : vector<10x64xf32>
    %164 = math.exp %163 : vector<10x64xf32>
    %cst_39 = arith.constant 1.000000e+00 : f32
    %165 = vector.broadcast %cst_39 : f32 to vector<10x64xf32>
    %166 = arith.addf %165, %164 : vector<10x64xf32>
    %167 = arith.divf %165, %166 : vector<10x64xf32>
    %168 = arith.mulf %160, %167 : vector<10x64xf32>
    %cst_40 = arith.constant dense<0.000000e+00> : vector<10x32xf32>
    %169 = tpu.matmul %168, %49, %cst_40 {dimension_numbers = #tpu.dot_dimension_numbers<[1], [0], [0], [1], [0, 0, 1, 1], [], []>} : vector<10x64xf32>, vector<64x32xf32>, vector<10x32xf32> -> vector<10x32xf32>
    %170 = vector.broadcast %43 : vector<1x32xf32> to vector<10x32xf32>
    %171 = arith.addf %169, %170 : vector<10x32xf32>
    %172 = arith.addf %135, %171 : vector<10x32xf32>
    %173 = vector.extract_strided_slice %2 {offsets = [25, 0], sizes = [1, 32], strides = [1, 1]} : vector<34x32xf32> to vector<1x32xf32>
    %174 = vector.extract_strided_slice %2 {offsets = [26, 0], sizes = [1, 32], strides = [1, 1]} : vector<34x32xf32> to vector<1x32xf32>
    %175 = vector.extract_strided_slice %2 {offsets = [27, 0], sizes = [1, 32], strides = [1, 1]} : vector<34x32xf32> to vector<1x32xf32>
    %176 = vector.extract_strided_slice %2 {offsets = [28, 0], sizes = [1, 32], strides = [1, 1]} : vector<34x32xf32> to vector<1x32xf32>
    %177 = vector.extract_strided_slice %2 {offsets = [29, 0], sizes = [1, 32], strides = [1, 1]} : vector<34x32xf32> to vector<1x32xf32>
    %178 = vector.extract_strided_slice %2 {offsets = [30, 0], sizes = [1, 32], strides = [1, 1]} : vector<34x32xf32> to vector<1x32xf32>
    %179 = vector.extract_strided_slice %2 {offsets = [31, 0], sizes = [1, 32], strides = [1, 1]} : vector<34x32xf32> to vector<1x32xf32>
    %180 = vector.extract_strided_slice %2 {offsets = [32, 0], sizes = [1, 32], strides = [1, 1]} : vector<34x32xf32> to vector<1x32xf32>
    %181 = vector.extract_strided_slice %2 {offsets = [33, 0], sizes = [1, 32], strides = [1, 1]} : vector<34x32xf32> to vector<1x32xf32>
    %c1 = arith.constant 1 : index
    %c0_41 = arith.constant 0 : index
    %c0_42 = arith.constant 0 : index
    %182 = vector.load %arg4[%c1, %c0_41, %c0_42] : memref<2x32x128xf32, #tpu.memory_space<vmem>>, vector<1x32x128xf32>
    %183 = vector.shape_cast %182 : vector<1x32x128xf32> to vector<32x128xf32>
    %c1_43 = arith.constant 1 : index
    %c0_44 = arith.constant 0 : index
    %c0_45 = arith.constant 0 : index
    %184 = vector.load %arg5[%c1_43, %c0_44, %c0_45] : memref<2x97x64xf32, #tpu.memory_space<vmem>>, vector<1x97x64xf32>
    %185 = vector.shape_cast %184 : vector<1x97x64xf32> to vector<97x64xf32>
    %186 = vector.extract_strided_slice %185 {offsets = [0, 0], sizes = [32, 64], strides = [1, 1]} : vector<97x64xf32> to vector<32x64xf32>
    %187 = vector.extract_strided_slice %185 {offsets = [32, 0], sizes = [64, 32], strides = [1, 1]} : vector<97x64xf32> to vector<64x32xf32>
    %188 = vector.extract_strided_slice %185 {offsets = [96, 0], sizes = [1, 64], strides = [1, 1]} : vector<97x64xf32> to vector<1x64xf32>
    %cst_46 = arith.constant dense<0.000000e+00> : vector<10xf32>
    %189 = vector.multi_reduction <add>, %172, %cst_46 [1] : vector<10x32xf32> to vector<10xf32>
    %190 = vector.shape_cast %189 : vector<10xf32> to vector<10x1xf32>
    %cst_47 = arith.constant 3.200000e+01 : f32
    %191 = vector.broadcast %cst_47 : f32 to vector<10x1xf32>
    %192 = arith.divf %190, %191 : vector<10x1xf32>
    %193 = vector.broadcast %192 : vector<10x1xf32> to vector<10x32xf32>
    %194 = arith.subf %172, %193 : vector<10x32xf32>
    %195 = arith.mulf %194, %194 : vector<10x32xf32>
    %cst_48 = arith.constant dense<0.000000e+00> : vector<10xf32>
    %196 = vector.multi_reduction <add>, %195, %cst_48 [1] : vector<10x32xf32> to vector<10xf32>
    %197 = vector.shape_cast %196 : vector<10xf32> to vector<10x1xf32>
    %cst_49 = arith.constant 3.200000e+01 : f32
    %198 = vector.broadcast %cst_49 : f32 to vector<10x1xf32>
    %199 = arith.divf %197, %198 : vector<10x1xf32>
    %200 = vector.broadcast %192 : vector<10x1xf32> to vector<10x32xf32>
    %201 = arith.subf %172, %200 : vector<10x32xf32>
    %cst_50 = arith.constant 9.99999974E-6 : f32
    %202 = vector.broadcast %cst_50 : f32 to vector<10x1xf32>
    %203 = arith.addf %199, %202 : vector<10x1xf32>
    %204 = math.rsqrt %203 : vector<10x1xf32>
    %205 = vector.broadcast %204 : vector<10x1xf32> to vector<10x32xf32>
    %206 = arith.mulf %201, %205 : vector<10x32xf32>
    %207 = vector.broadcast %173 : vector<1x32xf32> to vector<10x32xf32>
    %208 = arith.mulf %206, %207 : vector<10x32xf32>
    %209 = vector.broadcast %174 : vector<1x32xf32> to vector<10x32xf32>
    %210 = arith.addf %208, %209 : vector<10x32xf32>
    %211 = vector.extract_strided_slice %183 {offsets = [0, 0], sizes = [32, 96], strides = [1, 1]} : vector<32x128xf32> to vector<32x96xf32>
    %cst_51 = arith.constant dense<0.000000e+00> : vector<10x96xf32>
    %212 = tpu.matmul %210, %211, %cst_51 {dimension_numbers = #tpu.dot_dimension_numbers<[1], [0], [0], [1], [0, 0, 1, 1], [], []>} : vector<10x32xf32>, vector<32x96xf32>, vector<10x96xf32> -> vector<10x96xf32>
    %213 = vector.extract_strided_slice %212 {offsets = [0, 0], sizes = [10, 32], strides = [1, 1]} : vector<10x96xf32> to vector<10x32xf32>
    %214 = vector.broadcast %175 : vector<1x32xf32> to vector<10x32xf32>
    %215 = arith.addf %213, %214 : vector<10x32xf32>
    %216 = vector.extract_strided_slice %212 {offsets = [0, 32], sizes = [10, 32], strides = [1, 1]} : vector<10x96xf32> to vector<10x32xf32>
    %217 = vector.broadcast %176 : vector<1x32xf32> to vector<10x32xf32>
    %218 = arith.addf %216, %217 : vector<10x32xf32>
    %219 = vector.extract_strided_slice %212 {offsets = [0, 64], sizes = [10, 32], strides = [1, 1]} : vector<10x96xf32> to vector<10x32xf32>
    %220 = vector.broadcast %177 : vector<1x32xf32> to vector<10x32xf32>
    %221 = arith.addf %219, %220 : vector<10x32xf32>
    %222 = vector.extract_strided_slice %215 {offsets = [0, 0], sizes = [5, 32], strides = [1, 1]} : vector<10x32xf32> to vector<5x32xf32>
    %223 = vector.shape_cast %222 : vector<5x32xf32> to vector<5x4x8xf32>
    %224 = tpu.transpose %223, [1, 0, 2] : vector<5x4x8xf32> -> vector<4x5x8xf32>
    %225 = vector.extract_strided_slice %218 {offsets = [0, 0], sizes = [5, 32], strides = [1, 1]} : vector<10x32xf32> to vector<5x32xf32>
    %226 = vector.shape_cast %225 : vector<5x32xf32> to vector<5x4x8xf32>
    %227 = tpu.transpose %226, [1, 0, 2] : vector<5x4x8xf32> -> vector<4x5x8xf32>
    %228 = vector.extract_strided_slice %221 {offsets = [0, 0], sizes = [5, 32], strides = [1, 1]} : vector<10x32xf32> to vector<5x32xf32>
    %229 = vector.shape_cast %228 : vector<5x32xf32> to vector<5x4x8xf32>
    %230 = tpu.transpose %229, [1, 0, 2] : vector<5x4x8xf32> -> vector<4x5x8xf32>
    "tpu.trace_start"() <{level = 10 : i32, message = "hqd,hkd->hqk"}> : () -> ()
    %cst_52 = arith.constant dense<0.000000e+00> : vector<4x5x5xf32>
    %231 = tpu.matmul %224, %227, %cst_52 {dimension_numbers = #tpu.dot_dimension_numbers<[2], [2], [1], [1], [0, 0, 0, 1, 1, 1], [0], [0]>} : vector<4x5x8xf32>, vector<4x5x8xf32>, vector<4x5x5xf32> -> vector<4x5x5xf32>
    "tpu.trace_stop"() : () -> ()
    %cst_53 = arith.constant dense<0xFF800000> : vector<4x5xf32>
    %232 = vector.multi_reduction <maximumf>, %231, %cst_53 [2] : vector<4x5x5xf32> to vector<4x5xf32>
    %233 = vector.shape_cast %232 : vector<4x5xf32> to vector<4x5x1xf32>
    %234 = vector.broadcast %233 : vector<4x5x1xf32> to vector<4x5x5xf32>
    %235 = arith.subf %231, %234 : vector<4x5x5xf32>
    %236 = math.exp %235 : vector<4x5x5xf32>
    %cst_54 = arith.constant dense<0.000000e+00> : vector<4x5xf32>
    %237 = vector.multi_reduction <add>, %236, %cst_54 [2] : vector<4x5x5xf32> to vector<4x5xf32>
    %238 = vector.shape_cast %237 : vector<4x5xf32> to vector<4x5x1xf32>
    %239 = tpu.reciprocal %238 {approx = true} : vector<4x5x1xf32> -> vector<4x5x1xf32>
    %240 = vector.broadcast %239 : vector<4x5x1xf32> to vector<4x5x5xf32>
    %241 = arith.mulf %236, %240 : vector<4x5x5xf32>
    "tpu.trace_start"() <{level = 10 : i32, message = "hqk,hkd->hqd"}> : () -> ()
    %cst_55 = arith.constant dense<0.000000e+00> : vector<4x5x8xf32>
    %242 = tpu.matmul %241, %230, %cst_55 {dimension_numbers = #tpu.dot_dimension_numbers<[2], [1], [1], [2], [0, 0, 0, 1, 1, 2], [0], [0]>} : vector<4x5x5xf32>, vector<4x5x8xf32>, vector<4x5x8xf32> -> vector<4x5x8xf32>
    "tpu.trace_stop"() : () -> ()
    %243 = tpu.transpose %242, [1, 0, 2] : vector<4x5x8xf32> -> vector<5x4x8xf32>
    %244 = vector.shape_cast %243 : vector<5x4x8xf32> to vector<5x32xf32>
    %245 = vector.extract_strided_slice %215 {offsets = [5, 0], sizes = [5, 32], strides = [1, 1]} : vector<10x32xf32> to vector<5x32xf32>
    %246 = vector.shape_cast %245 : vector<5x32xf32> to vector<5x4x8xf32>
    %247 = tpu.transpose %246, [1, 0, 2] : vector<5x4x8xf32> -> vector<4x5x8xf32>
    %248 = vector.extract_strided_slice %218 {offsets = [5, 0], sizes = [5, 32], strides = [1, 1]} : vector<10x32xf32> to vector<5x32xf32>
    %249 = vector.shape_cast %248 : vector<5x32xf32> to vector<5x4x8xf32>
    %250 = tpu.transpose %249, [1, 0, 2] : vector<5x4x8xf32> -> vector<4x5x8xf32>
    %251 = vector.extract_strided_slice %221 {offsets = [5, 0], sizes = [5, 32], strides = [1, 1]} : vector<10x32xf32> to vector<5x32xf32>
    %252 = vector.shape_cast %251 : vector<5x32xf32> to vector<5x4x8xf32>
    %253 = tpu.transpose %252, [1, 0, 2] : vector<5x4x8xf32> -> vector<4x5x8xf32>
    "tpu.trace_start"() <{level = 10 : i32, message = "hqd,hkd->hqk"}> : () -> ()
    %cst_56 = arith.constant dense<0.000000e+00> : vector<4x5x5xf32>
    %254 = tpu.matmul %247, %250, %cst_56 {dimension_numbers = #tpu.dot_dimension_numbers<[2], [2], [1], [1], [0, 0, 0, 1, 1, 1], [0], [0]>} : vector<4x5x8xf32>, vector<4x5x8xf32>, vector<4x5x5xf32> -> vector<4x5x5xf32>
    "tpu.trace_stop"() : () -> ()
    %cst_57 = arith.constant dense<0xFF800000> : vector<4x5xf32>
    %255 = vector.multi_reduction <maximumf>, %254, %cst_57 [2] : vector<4x5x5xf32> to vector<4x5xf32>
    %256 = vector.shape_cast %255 : vector<4x5xf32> to vector<4x5x1xf32>
    %257 = vector.broadcast %256 : vector<4x5x1xf32> to vector<4x5x5xf32>
    %258 = arith.subf %254, %257 : vector<4x5x5xf32>
    %259 = math.exp %258 : vector<4x5x5xf32>
    %cst_58 = arith.constant dense<0.000000e+00> : vector<4x5xf32>
    %260 = vector.multi_reduction <add>, %259, %cst_58 [2] : vector<4x5x5xf32> to vector<4x5xf32>
    %261 = vector.shape_cast %260 : vector<4x5xf32> to vector<4x5x1xf32>
    %262 = tpu.reciprocal %261 {approx = true} : vector<4x5x1xf32> -> vector<4x5x1xf32>
    %263 = vector.broadcast %262 : vector<4x5x1xf32> to vector<4x5x5xf32>
    %264 = arith.mulf %259, %263 : vector<4x5x5xf32>
    "tpu.trace_start"() <{level = 10 : i32, message = "hqk,hkd->hqd"}> : () -> ()
    %cst_59 = arith.constant dense<0.000000e+00> : vector<4x5x8xf32>
    %265 = tpu.matmul %264, %253, %cst_59 {dimension_numbers = #tpu.dot_dimension_numbers<[2], [1], [1], [2], [0, 0, 0, 1, 1, 2], [0], [0]>} : vector<4x5x5xf32>, vector<4x5x8xf32>, vector<4x5x8xf32> -> vector<4x5x8xf32>
    "tpu.trace_stop"() : () -> ()
    %266 = tpu.transpose %265, [1, 0, 2] : vector<4x5x8xf32> -> vector<5x4x8xf32>
    %267 = vector.shape_cast %266 : vector<5x4x8xf32> to vector<5x32xf32>
    %268 = tpu.concatenate %244, %267 in 0 : vector<5x32xf32>, vector<5x32xf32> -> vector<10x32xf32>
    %269 = vector.extract_strided_slice %183 {offsets = [0, 96], sizes = [32, 32], strides = [1, 1]} : vector<32x128xf32> to vector<32x32xf32>
    %cst_60 = arith.constant dense<0.000000e+00> : vector<10x32xf32>
    %270 = tpu.matmul %268, %269, %cst_60 {dimension_numbers = #tpu.dot_dimension_numbers<[1], [0], [0], [1], [0, 0, 1, 1], [], []>} : vector<10x32xf32>, vector<32x32xf32>, vector<10x32xf32> -> vector<10x32xf32>
    %271 = vector.broadcast %178 : vector<1x32xf32> to vector<10x32xf32>
    %272 = arith.addf %270, %271 : vector<10x32xf32>
    %273 = arith.addf %172, %272 : vector<10x32xf32>
    %cst_61 = arith.constant dense<0.000000e+00> : vector<10xf32>
    %274 = vector.multi_reduction <add>, %273, %cst_61 [1] : vector<10x32xf32> to vector<10xf32>
    %275 = vector.shape_cast %274 : vector<10xf32> to vector<10x1xf32>
    %cst_62 = arith.constant 3.200000e+01 : f32
    %276 = vector.broadcast %cst_62 : f32 to vector<10x1xf32>
    %277 = arith.divf %275, %276 : vector<10x1xf32>
    %278 = vector.broadcast %277 : vector<10x1xf32> to vector<10x32xf32>
    %279 = arith.subf %273, %278 : vector<10x32xf32>
    %280 = arith.mulf %279, %279 : vector<10x32xf32>
    %cst_63 = arith.constant dense<0.000000e+00> : vector<10xf32>
    %281 = vector.multi_reduction <add>, %280, %cst_63 [1] : vector<10x32xf32> to vector<10xf32>
    %282 = vector.shape_cast %281 : vector<10xf32> to vector<10x1xf32>
    %cst_64 = arith.constant 3.200000e+01 : f32
    %283 = vector.broadcast %cst_64 : f32 to vector<10x1xf32>
    %284 = arith.divf %282, %283 : vector<10x1xf32>
    %285 = vector.broadcast %277 : vector<10x1xf32> to vector<10x32xf32>
    %286 = arith.subf %273, %285 : vector<10x32xf32>
    %cst_65 = arith.constant 9.99999974E-6 : f32
    %287 = vector.broadcast %cst_65 : f32 to vector<10x1xf32>
    %288 = arith.addf %284, %287 : vector<10x1xf32>
    %289 = math.rsqrt %288 : vector<10x1xf32>
    %290 = vector.broadcast %289 : vector<10x1xf32> to vector<10x32xf32>
    %291 = arith.mulf %286, %290 : vector<10x32xf32>
    %292 = vector.broadcast %179 : vector<1x32xf32> to vector<10x32xf32>
    %293 = arith.mulf %291, %292 : vector<10x32xf32>
    %294 = vector.broadcast %180 : vector<1x32xf32> to vector<10x32xf32>
    %295 = arith.addf %293, %294 : vector<10x32xf32>
    %cst_66 = arith.constant dense<0.000000e+00> : vector<10x64xf32>
    %296 = tpu.matmul %295, %186, %cst_66 {dimension_numbers = #tpu.dot_dimension_numbers<[1], [0], [0], [1], [0, 0, 1, 1], [], []>} : vector<10x32xf32>, vector<32x64xf32>, vector<10x64xf32> -> vector<10x64xf32>
    %297 = vector.broadcast %188 : vector<1x64xf32> to vector<10x64xf32>
    %298 = arith.addf %296, %297 : vector<10x64xf32>
    %cst_67 = arith.constant 1.702000e+00 : f32
    %299 = vector.broadcast %cst_67 : f32 to vector<10x64xf32>
    %300 = arith.mulf %299, %298 : vector<10x64xf32>
    %301 = arith.negf %300 : vector<10x64xf32>
    %302 = math.exp %301 : vector<10x64xf32>
    %cst_68 = arith.constant 1.000000e+00 : f32
    %303 = vector.broadcast %cst_68 : f32 to vector<10x64xf32>
    %304 = arith.addf %303, %302 : vector<10x64xf32>
    %305 = arith.divf %303, %304 : vector<10x64xf32>
    %306 = arith.mulf %298, %305 : vector<10x64xf32>
    %cst_69 = arith.constant dense<0.000000e+00> : vector<10x32xf32>
    %307 = tpu.matmul %306, %187, %cst_69 {dimension_numbers = #tpu.dot_dimension_numbers<[1], [0], [0], [1], [0, 0, 1, 1], [], []>} : vector<10x64xf32>, vector<64x32xf32>, vector<10x32xf32> -> vector<10x32xf32>
    %308 = vector.broadcast %181 : vector<1x32xf32> to vector<10x32xf32>
    %309 = arith.addf %307, %308 : vector<10x32xf32>
    %310 = arith.addf %273, %309 : vector<10x32xf32>
    %311 = vector.extract_strided_slice %310 {offsets = [0, 0], sizes = [1, 32], strides = [1, 1]} : vector<10x32xf32> to vector<1x32xf32>
    %cst_70 = arith.constant dense<0.000000e+00> : vector<1xf32>
    %312 = vector.multi_reduction <add>, %311, %cst_70 [1] : vector<1x32xf32> to vector<1xf32>
    %313 = vector.shape_cast %312 : vector<1xf32> to vector<1x1xf32>
    %cst_71 = arith.constant 3.200000e+01 : f32
    %314 = vector.broadcast %cst_71 : f32 to vector<1x1xf32>
    %315 = arith.divf %313, %314 : vector<1x1xf32>
    %316 = vector.broadcast %315 : vector<1x1xf32> to vector<1x32xf32>
    %317 = arith.subf %311, %316 : vector<1x32xf32>
    %318 = arith.mulf %317, %317 : vector<1x32xf32>
    %cst_72 = arith.constant dense<0.000000e+00> : vector<1xf32>
    %319 = vector.multi_reduction <add>, %318, %cst_72 [1] : vector<1x32xf32> to vector<1xf32>
    %320 = vector.shape_cast %319 : vector<1xf32> to vector<1x1xf32>
    %cst_73 = arith.constant 3.200000e+01 : f32
    %321 = vector.broadcast %cst_73 : f32 to vector<1x1xf32>
    %322 = arith.divf %320, %321 : vector<1x1xf32>
    %323 = vector.broadcast %315 : vector<1x1xf32> to vector<1x32xf32>
    %324 = arith.subf %311, %323 : vector<1x32xf32>
    %cst_74 = arith.constant 9.99999974E-6 : f32
    %325 = vector.broadcast %cst_74 : f32 to vector<1x1xf32>
    %326 = arith.addf %322, %325 : vector<1x1xf32>
    %327 = math.rsqrt %326 : vector<1x1xf32>
    %328 = vector.broadcast %327 : vector<1x1xf32> to vector<1x32xf32>
    %329 = arith.mulf %324, %328 : vector<1x32xf32>
    %330 = arith.mulf %329, %5 : vector<1x32xf32>
    %331 = arith.addf %330, %6 : vector<1x32xf32>
    %332 = arith.mulf %331, %7 : vector<1x32xf32>
    %cst_75 = arith.constant dense<0.000000e+00> : vector<1xf32>
    %333 = vector.multi_reduction <add>, %332, %cst_75 [1] : vector<1x32xf32> to vector<1xf32>
    %334 = vector.shape_cast %333 : vector<1xf32> to vector<1x1xf32>
    %335 = vector.extract_strided_slice %310 {offsets = [5, 0], sizes = [1, 32], strides = [1, 1]} : vector<10x32xf32> to vector<1x32xf32>
    %cst_76 = arith.constant dense<0.000000e+00> : vector<1xf32>
    %336 = vector.multi_reduction <add>, %335, %cst_76 [1] : vector<1x32xf32> to vector<1xf32>
    %337 = vector.shape_cast %336 : vector<1xf32> to vector<1x1xf32>
    %cst_77 = arith.constant 3.200000e+01 : f32
    %338 = vector.broadcast %cst_77 : f32 to vector<1x1xf32>
    %339 = arith.divf %337, %338 : vector<1x1xf32>
    %340 = vector.broadcast %339 : vector<1x1xf32> to vector<1x32xf32>
    %341 = arith.subf %335, %340 : vector<1x32xf32>
    %342 = arith.mulf %341, %341 : vector<1x32xf32>
    %cst_78 = arith.constant dense<0.000000e+00> : vector<1xf32>
    %343 = vector.multi_reduction <add>, %342, %cst_78 [1] : vector<1x32xf32> to vector<1xf32>
    %344 = vector.shape_cast %343 : vector<1xf32> to vector<1x1xf32>
    %cst_79 = arith.constant 3.200000e+01 : f32
    %345 = vector.broadcast %cst_79 : f32 to vector<1x1xf32>
    %346 = arith.divf %344, %345 : vector<1x1xf32>
    %347 = vector.broadcast %339 : vector<1x1xf32> to vector<1x32xf32>
    %348 = arith.subf %335, %347 : vector<1x32xf32>
    %cst_80 = arith.constant 9.99999974E-6 : f32
    %349 = vector.broadcast %cst_80 : f32 to vector<1x1xf32>
    %350 = arith.addf %346, %349 : vector<1x1xf32>
    %351 = math.rsqrt %350 : vector<1x1xf32>
    %352 = vector.broadcast %351 : vector<1x1xf32> to vector<1x32xf32>
    %353 = arith.mulf %348, %352 : vector<1x32xf32>
    %354 = arith.mulf %353, %5 : vector<1x32xf32>
    %355 = arith.addf %354, %6 : vector<1x32xf32>
    %356 = arith.mulf %355, %7 : vector<1x32xf32>
    %cst_81 = arith.constant dense<0.000000e+00> : vector<1xf32>
    %357 = vector.multi_reduction <add>, %356, %cst_81 [1] : vector<1x32xf32> to vector<1xf32>
    %358 = vector.shape_cast %357 : vector<1xf32> to vector<1x1xf32>
    %359 = tpu.concatenate %334, %358 in 1 : vector<1x1xf32>, vector<1x1xf32> -> vector<1x2xf32>
    %360 = vector.extract_strided_slice %8 {offsets = [0, 0], sizes = [1, 1], strides = [1, 1]} : vector<1x32xf32> to vector<1x1xf32>
    %361 = vector.broadcast %360 : vector<1x1xf32> to vector<1x2xf32>
    %362 = arith.addf %359, %361 : vector<1x2xf32>
    %c0_82 = arith.constant 0 : index
    %c0_83 = arith.constant 0 : index
    %c0_84 = arith.constant 0 : index
    %363 = vector.load %arg6[%c0_82, %c0_83, %c0_84] : memref<1x1x2xf32, #tpu.memory_space<vmem>>, vector<1x1x2xf32>
    %364 = vector.shape_cast %363 : vector<1x1x2xf32> to vector<1x2xf32>
    %365 = vector.shape_cast %362 : vector<1x2xf32> to vector<1x1x2xf32>
    tpu.vector_store %arg6[%c0_82, %c0_83, %c0_84], %365 {strides = array<i32>} : memref<1x1x2xf32, #tpu.memory_space<vmem>>, vector<1x1x2xf32>,
    return
  }
  func.func @transform_0(%arg0: i32) -> (i32, i32, i32) {
    %c0_i32 = arith.constant 0 : i32
    %c0_i32_0 = arith.constant 0 : i32
    %c0_i32_1 = arith.constant 0 : i32
    return %arg0, %c0_i32, %c0_i32_0 : i32, i32, i32
  }
  func.func @transform_1(%arg0: i32) -> (i32, i32) {
    %c0_i32 = arith.constant 0 : i32
    %c0_i32_0 = arith.constant 0 : i32
    %c0_i32_1 = arith.constant 0 : i32
    return %c0_i32, %c0_i32_0 : i32, i32
  }
  func.func @transform_2(%arg0: i32) -> (i32, i32) {
    %c0_i32 = arith.constant 0 : i32
    %c0_i32_0 = arith.constant 0 : i32
    %c0_i32_1 = arith.constant 0 : i32
    return %c0_i32, %c0_i32_0 : i32, i32
  }
  func.func @transform_3(%arg0: i32) -> (i32, i32, i32) {
    %c0_i32 = arith.constant 0 : i32
    %c0_i32_0 = arith.constant 0 : i32
    %c0_i32_1 = arith.constant 0 : i32
    %c0_i32_2 = arith.constant 0 : i32
    return %c0_i32, %c0_i32_0, %c0_i32_1 : i32, i32, i32
  }
  func.func @transform_4(%arg0: i32) -> (i32, i32, i32) {
    %c0_i32 = arith.constant 0 : i32
    %c0_i32_0 = arith.constant 0 : i32
    %c0_i32_1 = arith.constant 0 : i32
    %c0_i32_2 = arith.constant 0 : i32
    return %c0_i32, %c0_i32_0, %c0_i32_1 : i32, i32, i32
  }
  func.func @transform_5(%arg0: i32) -> (i32, i32, i32) {
    %c0_i32 = arith.constant 0 : i32
    %c0_i32_0 = arith.constant 0 : i32
    %c0_i32_1 = arith.constant 0 : i32
    return %arg0, %c0_i32, %c0_i32_0 : i32, i32, i32
  }
}

</mosaic_0001>

<bundles_post_ra>
// kernel: tpu_custom_call.1
= control target key start
LH: loop header
LB: loop body
LE: loop exit
PB: predicated region body
PF: predicated region fallthrough
CT: control target
= control target key end

     0   :  { %s5473_s0 = inlined_call_operand.vmem [shape: f32[1,10,192], index: 0, kind: input, shape index: {}]   ;;  %s5474_s1 = inlined_call_operand.vmem [shape: f32[192,32], index: 1, kind: input, shape index: {}]   ;;  %s5475_s2 = inlined_call_operand.vmem [shape: f32[34,32], index: 2, kind: input, shape index: {}]   ;;  %s5476_s3 = inlined_call_operand.vmem [shape: f32[2,32,128], index: 3, kind: input, shape index: {}]   ;;  %s5477_s4 = inlined_call_operand.vmem [shape: f32[2,97,64], index: 4, kind: input, shape index: {}]   ;;  %s5478_s5 = inlined_call_operand.hbm [shape: f32[1,1,2], index: 5, kind: output, shape index: {}]  }
   0x1   :  { %v45_v0 = vld [vmem:[%s5474_s1 + $0x78] sm:$0xff]  ;;  %v44_v1 = vld [vmem:[%s5474_s1 + $0x70] sm:$0xff]  ;;  %v43_v2 = vld [vmem:[%s5474_s1 + $0x68] sm:$0xff] }
   0x2   :  { %61 = vmatpush.msra.mxu0 %v45_v0  ;;  %v53_v3 = vld [vmem:[%s5474_s1 + $0xb8] sm:$0xff]  ;;  %v42_v4 = vld [vmem:[%s5474_s1 + $0x60] sm:$0xff]  ;;  %v52_v5 = vld [vmem:[%s5474_s1 + $0xb0] sm:$0xff] }
   0x3   :  { %92 = vmatpush.msra.mxu1 %v53_v3  ;;  %v51_v6 = vld [vmem:[%s5474_s1 + $0xa8] sm:$0xff]  ;;  %v41_v7 = vld [vmem:[%s5474_s1 + $0x58] sm:$0xff]  ;;  %v50_v8 = vld [vmem:[%s5474_s1 + $0xa0] sm:$0xff] }
   0x4   :  { %62 = vmatpush.msra.mxu0 %v44_v1  ;;  %v40_v9 = vld [vmem:[%s5474_s1 + $0x50] sm:$0xff]  ;;  %v49_v10 = vld [vmem:[%s5474_s1 + $0x98] sm:$0xff]  ;;  %v39_v11 = vld [vmem:[%s5474_s1 + $0x48] sm:$0xff] }
   0x5   :  { %93 = vmatpush.msra.mxu1 %v52_v5 }
   0x6   :  { %63 = vmatpush.msra.mxu0 %v43_v2 }
   0x7   :  { %94 = vmatpush.msra.mxu1 %v51_v6 }
   0x8   :  { %64 = vmatpush.msra.mxu0 %v42_v4 }
   0x9   :  { %95 = vmatpush.msra.mxu1 %v50_v8 }
   0xa   :  { %65 = vmatpush.msra.mxu0 %v41_v7 }
   0xb   :  { %10 = vsyncpa [#allocation3], 0  ;;  %v48_v12 = vld [vmem:[%s5474_s1 + $0x90] sm:$0xff]  ;;  %v38_v13 = vld [vmem:[%s5474_s1 + $0x40] sm:$0xff]  ;;  %96 = vmatpush.msra.mxu1 %v49_v10  ;;  %vm54_vm0 = vcmask 523264   ;;  %vm107_vm1 = vcmask 261120  }
   0xc   :  { %66 = vmatpush.msra.mxu0 %v40_v9  ;;  %v47_v14 = vld [vmem:[%s5474_s1 + $0x88] sm:$0xff]  ;;  %v37_v15 = vld [vmem:[%s5474_s1 + $0x38] sm:$0xff]  ;;  %v46_v16 = vld [vmem:[%s5474_s1 + $0x80] sm:$0xff]  ;;  %vm111_vm2 = vcmask 254976   ;;  %v3974_v40 = vmov 32.0   ;;  %s3975_s11 = smov 32  }
   0xd   :  { %97 = vmatpush.msra.mxu1 %v48_v12  ;;  %v36_v17 = vld [vmem:[%s5474_s1 + $0x30] sm:$0xff]  ;;  %v22_v18 = vld [vmem:[%s5473_s0 + $0x8] sm:$0xff]  ;;  %v34_v20 = vld [vmem:[%s5474_s1 + $0x20] sm:$0xff]  ;;  %3839 = vrcp.f32 %v3974_v40  ;;  %s3976_s12 = smov 120   ;;  %s3977_s13 = smov 104  }
   0xe   :  { %67 = vmatpush.msra.mxu0 %v39_v11  ;;  %v35_v19 = vld [vmem:[%s5474_s1 + $0x28] sm:$0xff]  ;;  %v33_v21 = vld [vmem:[%s5474_s1 + $0x18] sm:$0xff]  ;;  %v32_v22 = vld [vmem:[%s5474_s1 + $0x10] sm:$0xff]  ;;  %s3978_s14 = smov 112   ;;  %s3979_s15 = smov 96  }
   0xf   :  { %98 = vmatpush.msra.mxu1 %v47_v14  ;;  %v24_v23 = vld [vmem:[%s5473_s0 + $0x18] sm:$0x3]  ;;  %v31_v24 = vld [vmem:[%s5474_s1 + $0x8] sm:$0xff]  ;;  %v30_v25 = vld [vmem:[%s5474_s1] sm:$0xff]  ;;  %s3980_s16 = smov 64   ;;  %s3983_s17 = smov 8  }
  0x10   :  { %68 = vmatpush.msra.mxu0 %v38_v13  ;;  %v21_v26 = vld [vmem:[%s5473_s0] sm:$0xff]  ;;  %v23_v27 = vld [vmem:[%s5473_s0 + $0x10] sm:$0x3]  ;;  %v4111_v34 = vld [vmem:[%s5475_s2 + $0x8] sm:$0xff]  ;;  %s3984_s18 = smov 16   ;;  %s3985_s19 = smov 24  }
  0x11   :  { %99 = vmatpush.msra.mxu1 %v46_v16  ;;  %v25_v28 = vld [vmem:[%s5475_s2] sm:$0xff]  ;;  %v160_v2 = vperm.slane %v4111_v34, 2  ;;  %v163_v5 = vperm.slane %v4111_v34, 3 }
  0x12   :  { %69 = vmatpush.msra.mxu0 %v37_v15  ;;  %3698 = vmatmul.msk.f32.vlgmr.msra.gmra.mxu1 %vm54_vm0, %v22_v18 }
  0x13   :  { %v3840_v41 = vpop.eup %3839 }
  0x14   :  { %70 = vmatpush.msra.mxu0 %v36_v17  ;;  %v116_v42 = vmul.f32 32.0, %v3840_v41  ;;  %vm120_vm3 = vweird.f32 %v3840_v41 }
  0x16   :  { %71 = vmatpush.msra.mxu0 %v35_v19  ;;  %v117_v43 = vsub.f32 1.0, %v116_v42 }
  0x18   :  { %72 = vmatpush.msra.mxu0 %v34_v20  ;;  %v118_v44 = vmul.f32 %v3840_v41, %v117_v43 }
  0x1a   :  { %73 = vmatpush.msra.mxu0 %v33_v21  ;;  %3699 = vmatmul.msk.f32.gmra.mxu1 %vm54_vm0, %v24_v23  ;;  %v119_v45 = vadd.f32 %v3840_v41, %v118_v44 }
  0x1c   :  { %74 = vmatpush.msra.mxu0 %v32_v22  ;;  %v4115_v46 = vsel %vm120_vm3, %v3840_v41, %v119_v45  ;;  %vm290_vm3 = vcmask 1047556  }
  0x1e   :  { %75 = vmatpush.msra.mxu0 %v31_v24 }
  0x20   :  { %76 = vmatpush.msra.mxu0 %v30_v25 }
  0x21   :  { %77 = vmatmul.f32.vlgmr.msra.gmra.mxu0 %v21_v26 }
  0x29   :  { %80 = vmatmul.f32.gmra.mxu0 %v23_v27 }
  0x8f   :  { %v101_v30 = vpop.f32.mrf.mxu1 }
  0x97   :  { %v104_v36 = vpop.f32.mrf.mxu1 }
  0x9e   :  { %v78_v29 = vpop.f32.mrf.mxu0 }
  0x9f   :  { %v79_v31 = vadd.f32 %v78_v29, %v25_v28  ;;  %v4139_v28 = vld [vmem:[%s5476_s3 + $0x18] sm:$0xff]  ;;  %v4145_v29 = vld [vmem:[%s5476_s3 + $0x10] sm:$0xff] }
  0xa0   :  { %251 = vmatpush.msra.mxu2 %v4139_v28 }
  0xa1   :  { %v102_v32 = vadd.f32 %v101_v30, %v79_v31  ;;  %v4150_v30 = vld [vmem:[%s5476_s3 + $0x8] sm:$0xff]  ;;  %v4155_v31 = vld [vmem:[%s5476_s3] sm:$0xff] }
  0xa2   :  { %252 = vmatpush.msra.mxu2 %v4145_v29 }
  0xa3   :  { %v108_v33 = vsel %vm107_vm1, %v102_v32, 0.0 }
  0xa4   :  { %109 = vadd.xlane.f32.xlu0 %v108_v33  ;;  %v3820_v33 = vpack.i.bf16 %v4155_v31, %v4150_v30  ;;  %253 = vmatpush.msra.mxu2 %v4150_v30 }
  0xa6   :  { %v81_v35 = vpop.f32.mrf.mxu0  ;;  %254 = vmatpush.msra.mxu2 %v4155_v31 }
  0xa7   :  { %v82_v37 = vadd.f32 %v81_v35, %v4111_v34  ;;  %v4167_v34 = vld [vmem:[%s5475_s2 + $0x10] sm:$0xff] }
  0xa8   :  { %v265_v35 = vperm.slane %v4167_v34, 3  ;;  %v227_v45 = vperm.slane %v4167_v34, 0 }
  0xa9   :  { %v105_v38 = vadd.f32 %v104_v36, %v82_v37 }
  0xab   :  { %v112_v39 = vsel %vm111_vm2, %v105_v38, 0.0 }
  0xac   :  { %113 = vadd.xlane.f32.xlu2 %v112_v39 }
 0x117   :  { %v110_v47 = vpop.xlane.xlu0 %109 }
 0x118   :  { %v122_v48 = vmul.f32 %v4115_v46, %v110_v47 }
 0x11a   :  { %v124_v49 = vsub.f32 %v102_v32, %v122_v48  ;;  %v3815_v32 = vpack.i.bf16 %v4145_v29, %v4139_v28 }
 0x11c   :  { %v126_v50 = vmul.f32 %v124_v49, %v124_v49 }
 0x11e   :  { %v128_v51 = vsel %vm107_vm1, %v126_v50, 0.0 }
 0x11f   :  { %129 = vadd.xlane.f32.xlu0 %v128_v51  ;;  %v114_v52 = vpop.xlane.xlu2 %113 }
 0x120   :  { %v123_v53 = vmul.f32 %v4115_v46, %v114_v52 }
 0x122   :  { %v125_v54 = vsub.f32 %v105_v38, %v123_v53 }
 0x124   :  { %v127_v55 = vmul.f32 %v125_v54, %v125_v54 }
 0x126   :  { %v131_v56 = vsel %vm111_vm2, %v127_v55, 0.0  ;;  %v262_v55 = vperm.slane %v4167_v34, 2 }
 0x127   :  { %132 = vadd.xlane.f32.xlu2 %v131_v56 }
 0x133   :  { %267 = vrot.lane.b32.xlu0 %v265_v35, %s3975_s11 }
 0x192   :  { %v130_v57 = vpop.xlane.xlu0 %129 }
 0x193   :  { %v134_v58 = vmul.f32 %v130_v57, %v4115_v46 }
 0x195   :  { %v136_v59 = vadd.f32 1e-05, %v134_v58 }
 0x197   :  { %3841 = vrsqrt.f32 %v136_v59  ;;  %vm144_vm5 = vweird.f32 %v136_v59 }
 0x19a   :  { %v133_v9 = vpop.xlane.xlu2 %132 }
 0x19b   :  { %v135_v10 = vmul.f32 %v133_v9, %v4115_v46 }
 0x19d   :  { %v3842_v60 = vpop.eup %3841  ;;  %v137_v11 = vadd.f32 1e-05, %v135_v10 }
 0x19e   :  { %v139_v61 = vmul.f32 %v3842_v60, %v136_v59  ;;  %vm145_vm4 = vweird.f32 %v3842_v60 }
 0x19f   :  { %vm146_vm6 = vmor %vm144_vm5, %vm145_vm4  ;;  %3843 = vrsqrt.f32 %v137_v11  ;;  %vm154_vm7 = vweird.f32 %v137_v11  ;;  %vm601_vm4 = vcmask 64512   ;;  %vm972_vm5 = vcmask 1042432  }
 0x1a0   :  { %v140_v62 = vmul.f32 %v3842_v60, %v139_v61 }
 0x1a2   :  { %v141_v63 = vmul.f32 0.5, %v140_v62 }
 0x1a4   :  { %v142_v0 = vsub.f32 1.5, %v141_v63  ;;  %v272_v63 = vperm.slane %v4167_v34, 4 }
 0x1a5   :  { %v3844_v12 = vpop.eup %3843  ;;  %v4175_v52 = vpop.permute.xlu0 %267 }
 0x1a6   :  { %v143_v1 = vmul.f32 %v3842_v60, %v142_v0  ;;  %v149_v13 = vmul.f32 %v3844_v12, %v137_v11  ;;  %vm155_vm8 = vweird.f32 %v3844_v12 }
 0x1a7   :  { %vm156_vm9 = vmor %vm154_vm7, %vm155_vm8  ;;  %vm755_vm7 = vcmask 1044480   ;;  %vm5481_vm8 = vcmask 39936  }
 0x1a8   :  { %v147_v3 = vsel %vm146_vm6, %v3842_v60, %v143_v1  ;;  %v150_v14 = vmul.f32 %v3844_v12, %v149_v13  ;;  %vm706_vm6 = vcmask 36864  }
 0x1a9   :  { %v158_v4 = vmul.f32 %v147_v3, %v124_v49  ;;  %v230_v49 = vperm.slane %v4167_v34, 1 }
 0x1aa   :  { %v151_v15 = vmul.f32 0.5, %v150_v14 }
 0x1ab   :  { %v161_v6 = vmul.f32 %v160_v2, %v158_v4 }
 0x1ac   :  { %v152_v16 = vsub.f32 1.5, %v151_v15 }
 0x1ad   :  { %v4124_v7 = vadd.f32 %v163_v5, %v161_v6 }
 0x1ae   :  { %v153_v17 = vmul.f32 %v3844_v12, %v152_v16 }
 0x1af   :  { %v183_v8 = vsel %vm107_vm1, %v4124_v7, 0.0 }
 0x1b0   :  { %184 = vadd.xlane.f32.xlu1 %v183_v8  ;;  %v157_v18 = vsel %vm156_vm9, %v3844_v12, %v153_v17  ;;  %vm5480_vm9 = vcmask 130048  }
 0x1b1   :  { %v159_v19 = vmul.f32 %v157_v18, %v125_v54 }
 0x1b3   :  { %v162_v20 = vmul.f32 %v160_v2, %v159_v19 }
 0x1b5   :  { %v4129_v21 = vadd.f32 %v163_v5, %v162_v20 }
 0x1b7   :  { %v186_v27 = vsel %vm111_vm2, %v4129_v21, 0.0 }
 0x223   :  { %v185_v22 = vpop.xlane.xlu1 %184 }
 0x224   :  { %v189_v23 = vmul.f32 %v185_v22, %v4115_v46 }
 0x226   :  { %v191_v24 = vsub.f32 %v4124_v7, %v189_v23 }
 0x228   :  { %v193_v25 = vmul.f32 %v191_v24, %v191_v24 }
 0x22a   :  { %v195_v26 = vsel %vm107_vm1, %v193_v25, 0.0 }
 0x22b   :  { %196 = vadd.xlane.f32.xlu1 %v195_v26 }
 0x233   :  { %187 = vadd.xlane.f32.xlu1 %v186_v27 }
 0x29e   :  { %v197_v36 = vpop.xlane.xlu1 %196 }
 0x29f   :  { %v201_v37 = vmul.f32 %v197_v36, %v4115_v46  ;;  %v3982_v36 = vmov 1934713408  }
 0x2a1   :  { %v203_v38 = vadd.f32 1e-05, %v201_v37  ;;  %v319_v37 = vunpack.c.l.s4 %v3982_v36 }
 0x2a3   :  { %3845 = vrsqrt.f32 %v203_v38  ;;  %vm211_vm11 = vweird.f32 %v203_v38 }
 0x2a6   :  { %v188_v57 = vpop.xlane.xlu1 %187 }
 0x2a7   :  { %v190_v58 = vmul.f32 %v188_v57, %v4115_v46 }
 0x2a9   :  { %v3846_v39 = vpop.eup %3845  ;;  %v192_v59 = vsub.f32 %v4129_v21, %v190_v58 }
 0x2aa   :  { %v206_v40 = vmul.f32 %v3846_v39, %v203_v38  ;;  %vm212_vm10 = vweird.f32 %v3846_v39 }
 0x2ab   :  { %vm213_vm12 = vmor %vm211_vm11, %vm212_vm10  ;;  %v194_v60 = vmul.f32 %v192_v59, %v192_v59  ;;  %vm5479_vm10 = vcmask 195584  }
 0x2ac   :  { %v207_v41 = vmul.f32 %v3846_v39, %v206_v40 }
 0x2ad   :  { %v198_v61 = vsel %vm111_vm2, %v194_v60, 0.0 }
 0x2ae   :  { %v208_v42 = vmul.f32 0.5, %v207_v41 }
 0x2b0   :  { %v209_v43 = vsub.f32 1.5, %v208_v42 }
 0x2b2   :  { %v210_v44 = vmul.f32 %v3846_v39, %v209_v43  ;;  %v4238_v43 = vunpack.c.0.s8 %v319_v37 }
 0x2b4   :  { %v214_v47 = vsel %vm213_vm12, %v3846_v39, %v210_v44 }
 0x2b5   :  { %v225_v48 = vmul.f32 %v214_v47, %v191_v24  ;;  %v3981_v24 = vmov 1983009808  }
 0x2b6   :  { %v295_v25 = vunpack.c.l.s4 %v3981_v24 }
 0x2b7   :  { %v228_v50 = vmul.f32 %v227_v45, %v225_v48 }
 0x2b8   :  { %v4234_v35 = vunpack.c.0.s8 %v295_v25 }
 0x2b9   :  { %v231_v51 = vadd.f32 %v230_v49, %v228_v50 }
 0x2bb   :  { %3700 = vmatmul.msk.f32.vlgmr.msra.gmra.mxu2 %vm107_vm1, %v231_v51 }
 0x33e   :  { %v256_v53 = vpop.f32.mrf.mxu2 }
 0x33f   :  { %v4178_v54 = vadd.f32 %v4175_v52, %v256_v53  ;;  %v4191_v56 = vadd.f32 %v262_v55, %v256_v53 }
 0x341   :  { %382 = vrot.lane.b32.xlu0 %v4178_v54, %s3976_s12  ;;  %386 = vrot.lane.b32.xlu1 %v4178_v54, %s3977_s13 }
 0x342   :  { %384 = vrot.lane.b32.xlu2 %v4178_v54, %s3978_s14 }
 0x34a   :  { %388 = vrot.lane.b32.xlu2 %v4178_v54, %s3979_s15 }
 0x352   :  { %283 = vrot.lane.b32.xlu2 %v4191_v56, %s3978_s14 }
 0x36b   :  { %199 = vadd.xlane.f32.xlu0 %v198_v61 }
 0x39c   :  { %v4198_v62 = vpop.permute.xlu2 %384 }
 0x39d   :  { %392 = vrot.lane.b32.xlu2 %v4198_v62, %s3979_s15 }
 0x3a4   :  { %v389_v5 = vpop.permute.xlu2 %388 }
 0x3a5   :  { %286 = vrot.lane.b32.xlu2 %v4191_v56, %s3977_s13  ;;  %v402_v42 = vrot.slane %v389_v5, 4 }
 0x3ac   :  { %v4217_v11 = vpop.permute.xlu2 %283 }
 0x3ad   :  { %274 = vrot.lane.b32.xlu2 %v272_v63, %s3980_s16  ;;  %v289_v39 = vrot.slane %v4217_v11, 4 }
 0x3b3   :  { %v4206_v0 = vpop.permute.xlu1 %386  ;;  %v4210_v1 = vpop.permute.xlu0 %382 }
 0x3b4   :  { %394 = vrot.lane.b32.xlu1 %v4206_v0, %s3979_s15 }
 0x3bc   :  { %390 = vrot.lane.b32.xlu1 %v4210_v1, %s3979_s15 }
 0x3c4   :  { %280 = vrot.lane.b32.xlu1 %v4191_v56, %s3976_s12 }
 0x3de   :  { %v200_v2 = vpop.xlane.xlu0 %199 }
 0x3df   :  { %v202_v3 = vmul.f32 %v200_v2, %v4115_v46 }
 0x3e1   :  { %v204_v4 = vadd.f32 1e-05, %v202_v3 }
 0x3e3   :  { %3847 = vrsqrt.f32 %v204_v4  ;;  %vm221_vm14 = vweird.f32 %v204_v4 }
 0x3e9   :  { %v3848_v6 = vpop.eup %3847 }
 0x3ea   :  { %v216_v8 = vmul.f32 %v3848_v6, %v204_v4  ;;  %vm222_vm13 = vweird.f32 %v3848_v6 }
 0x3eb   :  { %vm223_vm15 = vmor %vm221_vm14, %vm222_vm13 }
 0x3ec   :  { %v217_v9 = vmul.f32 %v3848_v6, %v216_v8 }
 0x3ee   :  { %v218_v10 = vmul.f32 0.5, %v217_v9 }
 0x3f0   :  { %v219_v12 = vsub.f32 1.5, %v218_v10 }
 0x3f2   :  { %v220_v13 = vmul.f32 %v3848_v6, %v219_v12 }
 0x3f4   :  { %v224_v14 = vsel %vm223_vm15, %v3848_v6, %v220_v13 }
 0x3f5   :  { %v226_v15 = vmul.f32 %v224_v14, %v192_v59  ;;  %v292_v59 = vrot.slane %v4191_v56, 4 }
 0x3f7   :  { %v393_v16 = vpop.permute.xlu2 %392  ;;  %v229_v17 = vmul.f32 %v227_v45, %v226_v15  ;;  %v293_v8 = vsel %vm290_vm3, %v4217_v11, %v292_v59 }
 0x3f8   :  { %v400_v23 = vrot.slane %v393_v16, 4  ;;  %v403_v50 = vsel %vm290_vm3, %v393_v16, %v402_v42 }
 0x3f9   :  { %v232_v18 = vadd.f32 %v230_v49, %v229_v17  ;;  %v291_v49 = vsel %vm290_vm3, %v289_v39, %v4191_v56  ;;  %v411_v63 = vperm.slane %v403_v50, %v4234_v35 }
 0x3fa   :  { %v401_v27 = vsel %vm290_vm3, %v400_v23, %v389_v5  ;;  %v297_v61 = vperm.slane %v291_v49, %v4234_v35 }
 0x3fb   :  { %3701 = vmatmul.msk.f32.gmra.mxu2 %vm107_vm1, %v232_v18  ;;  %v407_v38 = vperm.slane %v401_v27, %v4234_v35 }
 0x3fc   :  { %v316_v16 = vrot.slane %v297_v61, 4 }
 0x3fd   :  { %v426_v47 = vrot.slane %v407_v38, 4 }
 0x3ff   :  { %v4220_v19 = vpop.permute.xlu2 %286 }
 0x400   :  { %v302_v4 = vrot.slane %v4220_v19, 4 }
 0x407   :  { %v4222_v20 = vpop.permute.xlu2 %274 }
 0x408   :  { %v4225_v22 = vadd.f32 %v4222_v20, %v256_v53 }
 0x40a   :  { %492 = vrot.lane.b32.xlu0 %v4225_v22, %s3976_s12  ;;  %496 = vrot.lane.b32.xlu2 %v4225_v22, %s3977_s13 }
 0x40b   :  { %494 = vrot.lane.b32.xlu1 %v4225_v22, %s3978_s14 }
 0x426   :  { %v395_v26 = vpop.permute.xlu1 %394 }
 0x427   :  { %v412_v40 = vrot.slane %v395_v26, 4 }
 0x42e   :  { %v391_v41 = vpop.permute.xlu1 %390 }
 0x42f   :  { %v413_v44 = vsel %vm290_vm3, %v412_v40, %v391_v41  ;;  %v414_v45 = vrot.slane %v391_v41, 4 }
 0x430   :  { %v419_v48 = vperm.slane %v413_v44, %v4234_v35 }
 0x431   :  { %v415_v51 = vsel %vm290_vm3, %v395_v26, %v414_v45  ;;  %v301_v45 = vperm.slane %v293_v8, %v4234_v35 }
 0x432   :  { %v423_v53 = vperm.slane %v415_v51, %v4234_v35  ;;  %v424_v57 = vrot.slane %v419_v48, 4  ;;  %v427_v58 = vsel %vm290_vm3, %v419_v48, %v426_v47 }
 0x433   :  { %v435_v60 = vperm.slane %v427_v58, %v4238_v43 }
 0x434   :  { %v425_v2 = vsel %vm290_vm3, %v424_v57, %v407_v38  ;;  %v436_v3 = vrot.slane %v423_v53, 4 }
 0x435   :  { %v431_v5 = vperm.slane %v425_v2, %v4238_v43  ;;  %v440_v6 = vrot.slane %v435_v60, 4 }
 0x436   :  { %v4257_v9 = vpop.permute.xlu1 %280  ;;  %v437_v10 = vsel %vm290_vm3, %v436_v3, %v411_v63 }
 0x437   :  { %v438_v12 = vrot.slane %v431_v5, 4  ;;  %v441_v13 = vsel %vm290_vm3, 0.0, %v440_v6  ;;  %v303_v14 = vsel %vm290_vm3, %v302_v4, %v4257_v9  ;;  %v304_v15 = vrot.slane %v4257_v9, 4 }
 0x438   :  { %v447_v17 = vrot.slane %v441_v13, 4  ;;  %v309_v18 = vperm.slane %v303_v14, %v4234_v35  ;;  %v442_v23 = vsel %vm290_vm3, %v440_v6, %v431_v5  ;;  %v456_v27 = vperm.slane %v437_v10, %v4238_v43 }
 0x439   :  { %v439_v24 = vsel %vm290_vm3, 0.0, %v438_v12  ;;  %v305_v25 = vsel %vm290_vm3, %v4220_v19, %v304_v15  ;;  %v446_v26 = vperm.slane %v442_v23, %v4234_v35 }
 0x43a   :  { %v313_v36 = vperm.slane %v305_v25, %v4234_v35  ;;  %v314_v37 = vrot.slane %v309_v18, 4  ;;  %v317_v38 = vsel %vm290_vm3, %v309_v18, %v316_v16  ;;  %v448_v39 = vsel %vm290_vm3, %v447_v17, %v439_v24 }
 0x43b   :  { %v325_v40 = vperm.slane %v317_v38, %v4238_v43  ;;  %v452_v41 = vperm.slane %v448_v39, %v4234_v35  ;;  %v460_v42 = vperm.slane %v456_v27, %v4234_v35  ;;  %v463_v44 = vrot.slane %v446_v26, 4 }
 0x43c   :  { %v315_v47 = vsel %vm290_vm3, %v314_v37, %v297_v61  ;;  %v326_v48 = vrot.slane %v313_v36, 4 }
 0x43d   :  { %v321_v49 = vperm.slane %v315_v47, %v4238_v43  ;;  %v330_v50 = vrot.slane %v325_v40, 4  ;;  %v461_v51 = vrot.slane %v452_v41, 4  ;;  %v478_v53 = vperm.slane %v460_v42, %v4238_v43 }
 0x43e   :  { %v464_v57 = vsel %vm290_vm3, %v452_v41, %v463_v44  ;;  %v473_v58 = vrot.slane %v460_v42, 4  ;;  %v327_v59 = vsel %vm290_vm3, %v326_v48, %v301_v45 }
 0x43f   :  { %v328_v60 = vrot.slane %v321_v49, 4  ;;  %v331_v63 = vsel %vm290_vm3, 0.0, %v330_v50  ;;  %v462_v2 = vsel %vm290_vm3, %v461_v51, %v446_v26  ;;  %v483_v3 = vrot.slane %v478_v53, 4 }
 0x440   :  { %v337_v61 = vrot.slane %v331_v63, 4  ;;  %v468_v4 = vperm.slane %v462_v2, %v4238_v43  ;;  %v472_v5 = vperm.slane %v464_v57, %v4238_v43  ;;  %v474_v6 = vsel %vm290_vm3, 0.0, %v473_v58 }
 0x441   :  { %v329_v8 = vsel %vm290_vm3, 0.0, %v328_v60  ;;  %v482_v10 = vperm.slane %v474_v6, %v4238_v43  ;;  %v332_v12 = vsel %vm290_vm3, %v330_v50, %v321_v49  ;;  %v346_v13 = vperm.slane %v327_v59, %v4238_v43 }
 0x442   :  { %v484_v14 = vsel %vm290_vm3, %v483_v3, %v468_v4  ;;  %v489_v15 = vrot.slane %v472_v5, 4  ;;  %v485_v16 = vrot.slane %v468_v4, 4  ;;  %v336_v17 = vperm.slane %v332_v12, %v4234_v35 }
 0x443   :  { %3702 = vmatpush.xpose.msk.msra.mxu3 %vm601_vm4, %v484_v14  ;;  %v338_v18 = vsel %vm290_vm3, %v337_v61, %v329_v8  ;;  %v350_v23 = vperm.slane %v346_v13, %v4234_v35  ;;  %v487_v42 = vrot.slane %v482_v10, 4  ;;  %v1087_v3 = vrot.slane %v4178_v54, 5 }
 0x444   :  { %v490_v24 = vsel %vm290_vm3, %v482_v10, %v489_v15  ;;  %v486_v25 = vsel %vm290_vm3, %v478_v53, %v485_v16  ;;  %v342_v26 = vperm.slane %v338_v18, %v4234_v35  ;;  %v353_v27 = vrot.slane %v336_v17, 4 }
 0x445   :  { %3708 = vmatpush.xpose.msk.msrb.mxu2 %vm601_vm4, %v490_v24  ;;  %v368_v36 = vperm.slane %v350_v23, %v4238_v43  ;;  %v363_v37 = vrot.slane %v350_v23, 4  ;;  %v488_v53 = vsel %vm290_vm3, %v487_v42, %v472_v5  ;;  %v1096_v24 = vrot.slane %v4206_v0, 5 }
 0x446   :  { %v351_v38 = vrot.slane %v342_v26, 4  ;;  %v354_v39 = vsel %vm290_vm3, %v342_v26, %v353_v27  ;;  %v1093_v26 = vrot.slane %v4198_v62, 5 }
 0x447   :  { %3704 = vmatpush.xpose.msk.msrb.mxu3 %vm601_vm4, %v486_v25  ;;  %v362_v40 = vperm.slane %v354_v39, %v4238_v43  ;;  %v364_v41 = vsel %vm290_vm3, 0.0, %v363_v37  ;;  %v373_v47 = vrot.slane %v368_v36, 4  ;;  %v1090_v37 = vrot.slane %v4210_v1, 5 }
 0x448   :  { %v352_v44 = vsel %vm290_vm3, %v351_v38, %v336_v17  ;;  %v372_v48 = vperm.slane %v364_v41, %v4238_v43 }
 0x449   :  { %v358_v45 = vperm.slane %v352_v44, %v4238_v43  ;;  %v379_v49 = vrot.slane %v362_v40, 4 }
 0x44a   :  { %v377_v59 = vrot.slane %v372_v48, 4 }
 0x44b   :  { %v374_v50 = vsel %vm290_vm3, %v373_v47, %v358_v45  ;;  %v380_v51 = vsel %vm290_vm3, %v372_v48, %v379_v49  ;;  %v375_v57 = vrot.slane %v358_v45, 4 }
 0x44c   :  { %3703 = vmatmul.msk.f32.vlgmr.msra.gmra.mxu3 %vm601_vm4, %v374_v50  ;;  %3709 = vmatmul.msk.f32.vlgmr.msrb.gmra.mxu2 %vm601_vm4, %v380_v51  ;;  %v378_v60 = vsel %vm290_vm3, %v377_v59, %v362_v40 }
 0x44d   :  { %3706 = vmatpush.xpose.msk.msra.mxu3 %vm601_vm4, %v488_v53  ;;  %v376_v58 = vsel %vm290_vm3, %v368_v36, %v375_v57 }
 0x454   :  { %3705 = vmatmul.msk.f32.vlgmr.msrb.gmra.mxu3 %vm601_vm4, %v376_v58 }
 0x45c   :  { %3707 = vmatmul.msk.f32.vlgmr.msra.gmra.mxu3 %vm601_vm4, %v378_v60 }
 0x464   :  { %v4336_v15 = vpop.permute.xlu2 %496 }
 0x47c   :  { %v4340_v16 = vpop.permute.xlu0 %492 }
 0x47d   :  { %v4328_v5 = vpop.permute.xlu1 %494 }
 0x47e   :  { %v4319_v63 = vpop.f32.mrf.mxu2 }
 0x47f   :  { %v271_v2 = vadd.f32 %v4175_v52, %v4319_v63  ;;  %v4345_v17 = vadd.f32 %v262_v55, %v4319_v63 }
 0x481   :  { %1083 = vrot.lane.b32.xlu0 %v271_v2, %s3978_s14  ;;  %1085 = vrot.lane.b32.xlu2 %v271_v2, %s3977_s13  ;;  %v1088_v61 = vrot.slane %v271_v2, 5 }
 0x482   :  { %1081 = vrot.lane.b32.xlu1 %v271_v2, %s3976_s12 }
 0x483   :  { %v1089_v4 = vsel %vm972_vm5, %v1087_v3, %v1088_v61 }
 0x489   :  { %502 = vrot.lane.b32.xlu2 %v4328_v5, %s3980_s16 }
 0x4cf   :  { %v625_v6 = vpop.f32.mrf.mxu3  ;;  %v703_v52 = vpop.f32.mrf.mxu2 }
 0x4d0   :  { %v707_v8 = vsel %vm706_vm6, %v625_v6, -inf  ;;  %v716_v10 = vsel %vm706_vm6, %v703_v52, -inf }
 0x4d1   :  { %708 = vmax.xlane.f32.xlu1 %v707_v8  ;;  %717 = vmax.xlane.f32.xlu2 %v716_v10 }
 0x4d7   :  { %v651_v54 = vpop.f32.mrf.mxu3 }
 0x4d8   :  { %v710_v12 = vsel %vm706_vm6, %v651_v54, -inf }
 0x4d9   :  { %711 = vmax.xlane.f32.xlu1 %v710_v12  ;;  %v979_v12 = vrot.slane %v4217_v11, 5  ;;  %v973_v11 = vrot.slane %v4191_v56, 5 }
 0x4db   :  { %v1086_v18 = vpop.permute.xlu2 %1085 }
 0x4dc   :  { %v1097_v23 = vrot.slane %v1086_v18, 5 }
 0x4de   :  { %v1098_v34 = vsel %vm972_vm5, %v1096_v24, %v1097_v23  ;;  %v974_v24 = vrot.slane %v4345_v17, 5 }
 0x4df   :  { %v677_v13 = vpop.f32.mrf.mxu3 }
 0x4e0   :  { %v713_v14 = vsel %vm706_vm6, %v677_v13, -inf }
 0x4e1   :  { %714 = vmax.xlane.f32.xlu0 %v713_v14 }
 0x4e3   :  { %v503_v39 = vpop.permute.xlu2 %502 }
 0x4e9   :  { %504 = vrot.lane.b32.xlu2 %v4336_v15, %s3980_s16 }
 0x4f1   :  { %500 = vrot.lane.b32.xlu2 %v4340_v16, %s3980_s16 }
 0x4f2   :  { %966 = vrot.lane.b32.xlu1 %v4345_v17, %s3976_s12 }
 0x4f3   :  { %v1084_v25 = vpop.permute.xlu0 %1083 }
 0x4f4   :  { %v1094_v55 = vrot.slane %v1084_v25, 5  ;;  %v1082_v36 = vpop.permute.xlu1 %1081 }
 0x4f5   :  { %498 = vrot.lane.b32.xlu0 %v4225_v22, %s3980_s16  ;;  %v1091_v0 = vrot.slane %v1082_v36, 5 }
 0x4f6   :  { %v1095_v27 = vsel %vm972_vm5, %v1093_v26, %v1094_v55  ;;  %v510_v55 = vrot.slane %v503_v39, 4 }
 0x4f7   :  { %v1092_v38 = vsel %vm972_vm5, %v1090_v37, %v1091_v0 }
 0x4f9   :  { %968 = vrot.lane.b32.xlu2 %v4345_v17, %s3978_s14 }
 0x4fa   :  { %1105 = vrot.lane.b32.xlu1 %v1098_v34, %s3979_s15 }
 0x501   :  { %1103 = vrot.lane.b32.xlu2 %v1095_v27, %s3979_s15 }
 0x509   :  { %970 = vrot.lane.b32.xlu2 %v4345_v17, %s3977_s13  ;;  %v976_v17 = vrot.slane %v4257_v9, 5 }
 0x511   :  { %1099 = vrot.lane.b32.xlu2 %v1089_v4, %s3979_s15 }
 0x519   :  { %1101 = vrot.lane.b32.xlu2 %v1092_v38, %s3979_s15 }
 0x544   :  { %v718_v40 = vpop.xlane.xlu2 %717  ;;  %v709_v62 = vpop.xlane.xlu1 %708 }
 0x545   :  { %v722_v41 = vsub.f32 %v703_v52, %v718_v40  ;;  %v719_v42 = vsub.f32 %v625_v6, %v709_v62  ;;  %v975_v62 = vsel %vm972_vm5, %v973_v11, %v974_v24 }
 0x547   :  { %v729_v44 = vmul.f32 1.442695, %v722_v41  ;;  %v723_v45 = vmul.f32 1.442695, %v719_v42 }
 0x549   :  { %3849 = vpow2.f32 %v729_v44 }
 0x54a   :  { %3851 = vpow2.f32 %v723_v45 }
 0x54c   :  { %v505_v47 = vpop.permute.xlu2 %504  ;;  %v712_v48 = vpop.xlane.xlu1 %711 }
 0x54d   :  { %v720_v49 = vsub.f32 %v651_v54, %v712_v48  ;;  %v522_v8 = vrot.slane %v505_v47, 4 }
 0x54f   :  { %v4367_v50 = vpop.eup %3849  ;;  %v725_v51 = vmul.f32 1.442695, %v720_v49  ;;  %v982_v49 = vrot.slane %v4220_v19, 5  ;;  %v4412_v19 = vadd.f32 %v4222_v20, %v4319_v63 }
 0x550   :  { %v4369_v1 = vpop.eup %3851  ;;  %v740_v53 = vsel %vm706_vm6, %v4367_v50, 0.0 }
 0x551   :  { %3853 = vpow2.f32 %v725_v51  ;;  %v731_v57 = vsel %vm706_vm6, %v4369_v1, 0.0  ;;  %741 = vadd.xlane.f32.xlu2 %v740_v53  ;;  %v991_v51 = vrot.slane %v975_v62, 4 }
 0x552   :  { %732 = vadd.xlane.f32.xlu0 %v731_v57 }
 0x554   :  { %v715_v58 = vpop.xlane.xlu0 %714  ;;  %v501_v59 = vpop.permute.xlu2 %500 }
 0x555   :  { %v721_v60 = vsub.f32 %v677_v13, %v715_v58  ;;  %v524_v10 = vrot.slane %v501_v59, 4  ;;  %v523_v13 = vsel %vm290_vm3, %v522_v8, %v501_v59 }
 0x556   :  { %v529_v25 = vperm.slane %v523_v13, %v4234_v35 }
 0x557   :  { %v4375_v2 = vpop.eup %3853  ;;  %v727_v3 = vmul.f32 1.442695, %v721_v60  ;;  %v525_v18 = vsel %vm290_vm3, %v505_v47, %v524_v10 }
 0x558   :  { %v734_v61 = vsel %vm706_vm6, %v4375_v2, 0.0  ;;  %v533_v27 = vperm.slane %v525_v18, %v4234_v35  ;;  %v534_v40 = vrot.slane %v529_v25, 4 }
 0x559   :  { %3855 = vpow2.f32 %v727_v3  ;;  %735 = vadd.xlane.f32.xlu1 %v734_v61 }
 0x55a   :  { %v546_v45 = vrot.slane %v533_v27, 4 }
 0x55c   :  { %v969_v4 = vpop.permute.xlu2 %968 }
 0x55d   :  { %v980_v52 = vrot.slane %v969_v4, 5 }
 0x55f   :  { %v4379_v6 = vpop.eup %3855  ;;  %v981_v14 = vsel %vm972_vm5, %v979_v12, %v980_v52 }
 0x560   :  { %v737_v54 = vsel %vm706_vm6, %v4379_v6, 0.0  ;;  %v989_v26 = vrot.slane %v981_v14, 4  ;;  %v992_v3 = vsel %vm290_vm3, %v981_v14, %v991_v51 }
 0x561   :  { %738 = vadd.xlane.f32.xlu0 %v737_v54  ;;  %v1000_v14 = vperm.slane %v992_v3, %v4234_v35 }
 0x562   :  { %v990_v42 = vsel %vm290_vm3, %v989_v26, %v975_v62 }
 0x563   :  { %v996_v9 = vperm.slane %v990_v42, %v4234_v35 }
 0x564   :  { %v4387_v23 = vpop.permute.xlu2 %1103  ;;  %v967_v34 = vpop.permute.xlu1 %966 }
 0x565   :  { %v977_v0 = vrot.slane %v967_v34, 5  ;;  %v1015_v24 = vrot.slane %v996_v9, 4 }
 0x567   :  { %v499_v36 = vpop.permute.xlu0 %498  ;;  %v978_v53 = vsel %vm972_vm5, %v976_v17, %v977_v0 }
 0x568   :  { %v511_v37 = vsel %vm290_vm3, %v510_v55, %v499_v36  ;;  %v512_v38 = vrot.slane %v499_v36, 4  ;;  %v1003_v52 = vrot.slane %v978_v53, 4 }
 0x569   :  { %v517_v41 = vperm.slane %v511_v37, %v4234_v35 }
 0x56a   :  { %v513_v44 = vsel %vm290_vm3, %v503_v39, %v512_v38 }
 0x56b   :  { %v521_v47 = vperm.slane %v513_v44, %v4234_v35  ;;  %v535_v56 = vsel %vm290_vm3, %v534_v40, %v517_v41  ;;  %v536_v48 = vrot.slane %v517_v41, 4 }
 0x56c   :  { %v541_v57 = vperm.slane %v535_v56, %v4238_v43  ;;  %v971_v58 = vpop.permute.xlu2 %970  ;;  %v4416_v18 = vpop.permute.xlu1 %1105 }
 0x56d   :  { %v537_v59 = vsel %vm290_vm3, %v529_v25, %v536_v48  ;;  %v547_v39 = vsel %vm290_vm3, %v546_v45, %v521_v47  ;;  %v983_v60 = vrot.slane %v971_v58, 5  ;;  %v1111_v25 = vrot.slane %v4387_v23, 4 }
 0x56e   :  { %v545_v61 = vperm.slane %v537_v59, %v4238_v43  ;;  %v566_v4 = vperm.slane %v547_v39, %v4238_v43  ;;  %v548_v10 = vrot.slane %v541_v57, 4  ;;  %v1123_v0 = vrot.slane %v4416_v18, 4 }
 0x56f   :  { %v984_v8 = vsel %vm972_vm5, %v982_v49, %v983_v60 }
 0x570   :  { %v550_v54 = vrot.slane %v545_v61, 4  ;;  %v570_v12 = vperm.slane %v566_v4, %v4234_v35  ;;  %v1001_v13 = vrot.slane %v984_v8, 4  ;;  %v1004_v34 = vsel %vm290_vm3, %v984_v8, %v1003_v52 }
 0x571   :  { %v1012_v26 = vperm.slane %v1004_v34, %v4234_v35  ;;  %v549_v37 = vsel %vm290_vm3, 0.0, %v548_v10 }
 0x572   :  { %v551_v20 = vsel %vm290_vm3, 0.0, %v550_v54  ;;  %v552_v63 = vsel %vm290_vm3, %v550_v54, %v541_v57  ;;  %v1002_v55 = vsel %vm290_vm3, %v1001_v13, %v978_v53  ;;  %v583_v62 = vrot.slane %v570_v12, 4 }
 0x573   :  { %v556_v27 = vperm.slane %v552_v63, %v4234_v35  ;;  %v557_v11 = vrot.slane %v551_v20, 4  ;;  %v1008_v36 = vperm.slane %v1002_v55, %v4234_v35  ;;  %v1025_v38 = vrot.slane %v1012_v26, 4 }
 0x574   :  { %v1100_v40 = vpop.permute.xlu2 %1099  ;;  %v588_v41 = vperm.slane %v570_v12, %v4238_v43  ;;  %v584_v3 = vsel %vm290_vm3, 0.0, %v583_v62 }
 0x575   :  { %v558_v17 = vsel %vm290_vm3, %v557_v11, %v549_v37  ;;  %v1013_v42 = vrot.slane %v1008_v36, 4  ;;  %v1016_v44 = vsel %vm290_vm3, %v1008_v36, %v1015_v24  ;;  %v1112_v45 = vsel %vm290_vm3, %v1111_v25, %v1100_v40  ;;  %1205 = vrot.lane.b32.xlu0 %v4412_v19, %s3978_s14 }
 0x576   :  { %v562_v47 = vperm.slane %v558_v17, %v4234_v35  ;;  %v1024_v56 = vperm.slane %v1016_v44, %v4238_v43  ;;  %v1026_v48 = vsel %vm290_vm3, %v1025_v38, %v1000_v14  ;;  %v1113_v49 = vrot.slane %v1100_v40, 4 }
 0x577   :  { %v1014_v51 = vsel %vm290_vm3, %v1013_v42, %v996_v9  ;;  %v1045_v53 = vperm.slane %v1026_v48, %v4238_v43  ;;  %v1118_v57 = vperm.slane %v1112_v45, %v4234_v35  ;;  %v573_v58 = vrot.slane %v556_v27, 4 }
 0x578   :  { %v1020_v59 = vperm.slane %v1014_v51, %v4238_v43  ;;  %v1029_v39 = vrot.slane %v1024_v56, 4  ;;  %v1114_v60 = vsel %vm290_vm3, %v4387_v23, %v1113_v49  ;;  %v592_v9 = vperm.slane %v584_v3, %v4238_v43 }
 0x579   :  { %v1122_v61 = vperm.slane %v1114_v60, %v4234_v35  ;;  %v1137_v4 = vrot.slane %v1118_v57, 4  ;;  %v574_v52 = vsel %vm290_vm3, %v562_v47, %v573_v58  ;;  %v571_v12 = vrot.slane %v562_v47, 4 }
 0x57a   :  { %v1027_v8 = vrot.slane %v1020_v59, 4  ;;  %v1030_v10 = vsel %vm290_vm3, 0.0, %v1029_v39  ;;  %v582_v54 = vperm.slane %v574_v52, %v4238_v43  ;;  %v597_v14 = vrot.slane %v592_v9, 4 }
 0x57b   :  { %v1036_v13 = vrot.slane %v1030_v10, 4  ;;  %v593_v24 = vrot.slane %v588_v41, 4  ;;  %v1031_v23 = vsel %vm290_vm3, %v1029_v39, %v1020_v59  ;;  %v572_v34 = vsel %vm290_vm3, %v571_v12, %v556_v27 }
 0x57c   :  { %v1102_v25 = vpop.permute.xlu2 %1101  ;;  %v599_v20 = vrot.slane %v582_v54, 4  ;;  %v1028_v63 = vsel %vm290_vm3, 0.0, %v1027_v8  ;;  %v1035_v55 = vperm.slane %v1031_v23, %v4234_v35  ;;  %v598_v26 = vsel %vm290_vm3, %v597_v14, %v582_v54 }
 0x57d   :  { %v1124_v11 = vsel %vm290_vm3, %v1123_v0, %v1102_v25  ;;  %v1125_v36 = vrot.slane %v1102_v25, 4  ;;  %1203 = vrot.lane.b32.xlu0 %v4412_v19, %s3976_s12  ;;  %v578_v37 = vperm.slane %v572_v34, %v4238_v43  ;;  %3714 = vmatpush.msk.msra.mxu2 %vm755_vm7, %v598_v26  ;;  %v1037_v40 = vsel %vm290_vm3, %v1036_v13, %v1028_v63 }
 0x57e   :  { %v1130_v38 = vperm.slane %v1124_v11, %v4234_v35  ;;  %v600_v27 = vsel %vm290_vm3, %v592_v9, %v599_v20  ;;  %v1049_v62 = vperm.slane %v1045_v53, %v4234_v35  ;;  %v1041_v44 = vperm.slane %v1037_v40, %v4234_v35 }
 0x57f   :  { %v1126_v17 = vsel %vm290_vm3, %v4416_v18, %v1125_v36  ;;  %v594_v0 = vsel %vm290_vm3, %v593_v24, %v578_v37  ;;  %v595_v42 = vrot.slane %v578_v37, 4  ;;  %v1052_v53 = vrot.slane %v1035_v55, 4 }
 0x580   :  { %v1134_v45 = vperm.slane %v1126_v17, %v4234_v35  ;;  %v1135_v47 = vrot.slane %v1130_v38, 4  ;;  %v1138_v56 = vsel %vm290_vm3, %v1130_v38, %v1137_v4  ;;  %3710 = vmatpush.msk.msrb.mxu3 %vm755_vm7, %v594_v0  ;;  %v1067_v48 = vperm.slane %v1049_v62, %v4238_v43 }
 0x581   :  { %v1146_v49 = vperm.slane %v1138_v56, %v4238_v43  ;;  %v596_v18 = vsel %vm290_vm3, %v588_v41, %v595_v42  ;;  %v1050_v51 = vrot.slane %v1041_v44, 4  ;;  %v1062_v60 = vrot.slane %v1049_v62, 4 }
 0x582   :  { %3716 = vmatpush.msk.msra.mxu3 %vm755_vm7, %v600_v27  ;;  %v1136_v58 = vsel %vm290_vm3, %v1135_v47, %v1118_v57  ;;  %v1147_v59 = vrot.slane %v1134_v45, 4  ;;  %3712 = vmatpush.msk.msrb.mxu1 %vm755_vm7, %v596_v18  ;;  %v1072_v39 = vrot.slane %v1067_v48, 4  ;;  %v1053_v9 = vsel %vm290_vm3, %v1041_v44, %v1052_v53 }
 0x583   :  { %v1142_v3 = vperm.slane %v1136_v58, %v4238_v43  ;;  %v1151_v4 = vrot.slane %v1146_v49, 4  ;;  %v1051_v52 = vsel %vm290_vm3, %v1050_v51, %v1035_v55  ;;  %v1061_v10 = vperm.slane %v1053_v9, %v4238_v43 }
 0x584   :  { %v1148_v8 = vsel %vm290_vm3, %v1147_v59, %v1122_v61  ;;  %v1057_v41 = vperm.slane %v1051_v52, %v4238_v43  ;;  %v1063_v57 = vsel %vm290_vm3, 0.0, %v1062_v60 }
 0x585   :  { %v1149_v54 = vrot.slane %v1142_v3, 4  ;;  %v1152_v12 = vsel %vm290_vm3, 0.0, %v1151_v4  ;;  %v1167_v13 = vperm.slane %v1148_v8, %v4238_v43  ;;  %1207 = vrot.lane.b32.xlu0 %v4412_v19, %s3977_s13  ;;  %v1071_v23 = vperm.slane %v1063_v57, %v4238_v43 }
 0x586   :  { %v1158_v14 = vrot.slane %v1152_v12, 4  ;;  %v1073_v24 = vsel %vm290_vm3, %v1072_v39, %v1057_v41  ;;  %v1074_v34 = vrot.slane %v1057_v41, 4  ;;  %v1078_v20 = vrot.slane %v1061_v10, 4 }
 0x587   :  { %v1150_v61 = vsel %vm290_vm3, 0.0, %v1149_v54  ;;  %v1171_v25 = vperm.slane %v1167_v13, %v4234_v35  ;;  %v1153_v63 = vsel %vm290_vm3, %v1151_v4, %v1142_v3  ;;  %v1076_v26 = vrot.slane %v1071_v23, 4 }
 0x588   :  { %v1159_v55 = vsel %vm290_vm3, %v1158_v14, %v1150_v61  ;;  %v1075_v36 = vsel %vm290_vm3, %v1067_v48, %v1074_v34  ;;  %v1079_v27 = vsel %vm290_vm3, %v1071_v23, %v1078_v20  ;;  %v1157_v40 = vperm.slane %v1153_v63, %v4234_v35 }
 0x589   :  { %v1163_v11 = vperm.slane %v1159_v55, %v4234_v35  ;;  %v1189_v37 = vperm.slane %v1171_v25, %v4238_v43  ;;  %v1077_v38 = vsel %vm290_vm3, %v1076_v26, %v1061_v10  ;;  %v1184_v56 = vrot.slane %v1171_v25, 4 }
 0x58a   :  { %v1174_v18 = vrot.slane %v1157_v40, 4 }
 0x58b   :  { %v1172_v62 = vrot.slane %v1163_v11, 4  ;;  %v1194_v42 = vrot.slane %v1189_v37, 4  ;;  %v1185_v48 = vsel %vm290_vm3, 0.0, %v1184_v56 }
 0x58c   :  { %v1193_v51 = vperm.slane %v1185_v48, %v4238_v43  ;;  %v1175_v58 = vsel %vm290_vm3, %v1163_v11, %v1174_v18 }
 0x58d   :  { %v1173_v17 = vsel %vm290_vm3, %v1172_v62, %v1157_v40  ;;  %v1183_v4 = vperm.slane %v1175_v58, %v4238_v43 }
 0x58e   :  { %v1179_v0 = vperm.slane %v1173_v17, %v4238_v43  ;;  %v1198_v59 = vrot.slane %v1193_v51, 4 }
 0x58f   :  { %v1200_v8 = vrot.slane %v1183_v4, 4 }
 0x590   :  { %v1195_v44 = vsel %vm290_vm3, %v1194_v42, %v1179_v0  ;;  %v1196_v45 = vrot.slane %v1179_v0, 4  ;;  %v1199_v52 = vsel %vm290_vm3, %v1198_v59, %v1183_v4 }
 0x591   :  { %3718 = vmatpush.xpose.msk.msra.mxu1 %vm601_vm4, %v1195_v44 }
 0x592   :  { %v1197_v47 = vsel %vm290_vm3, %v1189_v37, %v1196_v45 }
 0x593   :  { %3720 = vmatpush.xpose.msk.msrb.mxu2 %vm601_vm4, %v1197_v47 }
 0x5c4   :  { %v742_v53 = vpop.xlane.xlu2 %741 }
 0x5c5   :  { %v733_v49 = vpop.xlane.xlu0 %732 }
 0x5c6   :  { %3857 = vrcp.f32 %v733_v49 }
 0x5c7   :  { %3859 = vrcp.f32 %v742_v53 }
 0x5cc   :  { %v3858_v39 = vpop.eup %3857  ;;  %v736_v60 = vpop.xlane.xlu1 %735 }
 0x5cd   :  { %v747_v3 = vmul.f32 %v3858_v39, %v4369_v1  ;;  %3861 = vrcp.f32 %v736_v60  ;;  %v3860_v9 = vpop.eup %3859  ;;  %v1201_v1 = vsel %vm290_vm3, %v1193_v51, %v1200_v8 }
 0x5ce   :  { %v750_v54 = vmul.f32 %v3860_v9, %v4367_v50 }
 0x5cf   :  { %3711 = vmatmul.msk.f32.vlgmr.msrb.gmra.mxu3 %vm5481_vm8, %v747_v3 }
 0x5d0   :  { %3722 = vmatpush.xpose.msk.msrb.mxu3 %vm601_vm4, %v1199_v52 }
 0x5d3   :  { %v3862_v41 = vpop.eup %3861 }
 0x5d4   :  { %v739_v10 = vpop.xlane.xlu0 %738  ;;  %v748_v57 = vmul.f32 %v3862_v41, %v4375_v2 }
 0x5d5   :  { %3863 = vrcp.f32 %v739_v10 }
 0x5d6   :  { %3713 = vmatmul.msk.f32.vlgmr.msrb.gmra.mxu1 %vm5481_vm8, %v748_v57 }
 0x5d7   :  { %3717 = vmatmul.msk.f32.vlgmr.msra.gmra.mxu3 %vm5481_vm8, %v750_v54  ;;  %3724 = vmatpush.xpose.msk.msrb.mxu1 %vm601_vm4, %v1201_v1 }
 0x5db   :  { %v3864_v12 = vpop.eup %3863 }
 0x5dc   :  { %v749_v13 = vmul.f32 %v3864_v12, %v4379_v6 }
 0x5de   :  { %3715 = vmatmul.msk.f32.vlgmr.msra.gmra.mxu2 %vm5481_vm8, %v749_v13  ;;  %3719 = vmatmul.msk.f32.vlgmr.msra.gmra.mxu1 %vm601_vm4, %v1073_v24 }
 0x5df   :  { %3723 = vmatmul.msk.f32.vlgmr.msrb.gmra.mxu3 %vm601_vm4, %v1077_v38 }
 0x5e6   :  { %3721 = vmatmul.msk.f32.vlgmr.msrb.gmra.mxu2 %vm601_vm4, %v1075_v36  ;;  %3725 = vmatmul.msk.f32.vlgmr.msrb.gmra.mxu1 %vm601_vm4, %v1079_v27 }
 0x5e7   :  { %v1206_v60 = vpop.permute.xlu0 %1205 }
 0x5e8   :  { %v1216_v54 = vrot.slane %v1206_v60, 5 }
 0x652   :  { %v776_v50 = vpop.f32.mrf.mxu3 }
 0x653   :  { %v802_v2 = vpop.f32.mrf.mxu1  ;;  %v859_v63 = vrot.slane %v776_v50, 4 }
 0x654   :  { %v871_v14 = vrot.slane %v802_v2, 4 }
 0x65a   :  { %v854_v23 = vpop.f32.mrf.mxu3 }
 0x65b   :  { %v869_v61 = vrot.slane %v854_v23, 4  ;;  %v872_v25 = vsel %vm290_vm3, %v854_v23, %v871_v14  ;;  %v4527_v34 = vpop.f32.mrf.mxu1 }
 0x65c   :  { %v1428_v6 = vsel %vm706_vm6, %v4527_v34, -inf  ;;  %v880_v20 = vperm.slane %v872_v25, %v4234_v35 }
 0x65d   :  { %v870_v24 = vsel %vm290_vm3, %v869_v61, %v802_v2  ;;  %1429 = vmax.xlane.f32.xlu1 %v1428_v6  ;;  %v1215_v2 = vrot.slane %v4328_v5, 5 }
 0x65e   :  { %v876_v55 = vperm.slane %v870_v24, %v4234_v35  ;;  %v893_v38 = vrot.slane %v880_v20, 4  ;;  %v1204_v20 = vpop.permute.xlu0 %1203 }
 0x65f   :  { %v1217_v25 = vsel %vm972_vm5, %v1215_v2, %v1216_v54 }
 0x660   :  { %v881_v17 = vrot.slane %v876_v55, 4 }
 0x661   :  { %v828_v26 = vpop.f32.mrf.mxu2 }
 0x662   :  { %v857_v11 = vrot.slane %v828_v26, 4  ;;  %v860_v36 = vsel %vm290_vm3, %v828_v26, %v859_v63  ;;  %v4535_v37 = vpop.f32.mrf.mxu3 }
 0x663   :  { %v868_v27 = vperm.slane %v860_v36, %v4234_v35  ;;  %v1434_v40 = vsel %vm706_vm6, %v4535_v37, -inf  ;;  %v4546_v48 = vpop.f32.mrf.mxu1  ;;  %v1213_v36 = vrot.slane %v1204_v20, 5 }
 0x664   :  { %v858_v62 = vsel %vm290_vm3, %v857_v11, %v776_v50  ;;  %1435 = vmax.xlane.f32.xlu2 %v1434_v40  ;;  %v1437_v39 = vsel %vm706_vm6, %v4546_v48, -inf }
 0x665   :  { %v864_v0 = vperm.slane %v858_v62, %v4234_v35  ;;  %v894_v42 = vsel %vm290_vm3, %v893_v38, %v868_v27  ;;  %v1212_v62 = vrot.slane %v4340_v16, 5 }
 0x666   :  { %v913_v44 = vperm.slane %v894_v42, %v4238_v43  ;;  %v1210_v42 = vrot.slane %v4412_v19, 5 }
 0x667   :  { %v882_v45 = vsel %vm290_vm3, %v881_v17, %v864_v0  ;;  %v883_v47 = vrot.slane %v864_v0, 4  ;;  %v1214_v0 = vsel %vm972_vm5, %v1212_v62, %v1213_v36 }
 0x668   :  { %v888_v56 = vperm.slane %v882_v45, %v4238_v43  ;;  %v917_v49 = vperm.slane %v913_v44, %v4234_v35  ;;  %v1209_v44 = vrot.slane %v4225_v22, 5 }
 0x669   :  { %v884_v18 = vsel %vm290_vm3, %v876_v55, %v883_v47  ;;  %v4550_v51 = vpop.f32.mrf.mxu2  ;;  %v1208_v47 = vpop.permute.xlu0 %1207 }
 0x66a   :  { %v892_v53 = vperm.slane %v884_v18, %v4238_v43  ;;  %v1431_v58 = vsel %vm706_vm6, %v4550_v51, -inf  ;;  %v930_v59 = vrot.slane %v917_v49, 4  ;;  %v895_v3 = vrot.slane %v888_v56, 4 }
 0x66b   :  { %1432 = vmax.xlane.f32.xlu0 %v1431_v58  ;;  %v935_v14 = vperm.slane %v917_v49, %v4238_v43  ;;  %v1211_v45 = vsel %vm972_vm5, %v1209_v44, %v1210_v42  ;;  %v1218_v49 = vrot.slane %v4336_v15, 5 }
 0x66c   :  { %v897_v4 = vrot.slane %v892_v53, 4  ;;  %1438 = vmax.xlane.f32.xlu2 %v1437_v39  ;;  %v931_v8 = vsel %vm290_vm3, 0.0, %v930_v59  ;;  %v896_v57 = vsel %vm290_vm3, 0.0, %v895_v3 }
 0x66d   :  { %v939_v13 = vperm.slane %v931_v8, %v4238_v43  ;;  %v940_v26 = vrot.slane %v935_v14, 4 }
 0x66e   :  { %v898_v52 = vsel %vm290_vm3, 0.0, %v897_v4  ;;  %v899_v9 = vsel %vm290_vm3, %v897_v4, %v888_v56  ;;  %v1219_v56 = vrot.slane %v1208_v47, 5 }
 0x66f   :  { %v904_v41 = vrot.slane %v898_v52, 4  ;;  %v903_v10 = vperm.slane %v899_v9, %v4234_v35  ;;  %v944_v24 = vrot.slane %v939_v13, 4 }
 0x670   :  { %v1220_v16 = vsel %vm972_vm5, %v1218_v49, %v1219_v56 }
 0x671   :  { %v905_v1 = vsel %vm290_vm3, %v904_v41, %v896_v57  ;;  %v920_v12 = vrot.slane %v903_v10, 4 }
 0x672   :  { %v909_v50 = vperm.slane %v905_v1, %v4234_v35 }
 0x674   :  { %v918_v23 = vrot.slane %v909_v50, 4  ;;  %v921_v61 = vsel %vm290_vm3, %v909_v50, %v920_v12 }
 0x675   :  { %v929_v6 = vperm.slane %v921_v61, %v4238_v43 }
 0x676   :  { %1225 = vrot.lane.b32.xlu1 %v1217_v25, %s3980_s16  ;;  %v919_v63 = vsel %vm290_vm3, %v918_v23, %v903_v10 }
 0x677   :  { %v925_v55 = vperm.slane %v919_v63, %v4238_v43  ;;  %v4574_v5 = vsel %vm290_vm3, %v944_v24, %v929_v6  ;;  %v946_v11 = vrot.slane %v929_v6, 4 }
 0x679   :  { %v942_v38 = vrot.slane %v925_v55, 4  ;;  %v4577_v27 = vsel %vm290_vm3, %v940_v26, %v925_v55  ;;  %v4580_v40 = vsel %vm290_vm3, %v939_v13, %v946_v11 }
 0x67b   :  { %v4584_v17 = vsel %vm290_vm3, %v935_v14, %v942_v38 }
 0x67e   :  { %1223 = vrot.lane.b32.xlu1 %v1214_v0, %s3980_s16 }
 0x684   :  { %1221 = vrot.lane.b32.xlu2 %v1211_v45, %s3980_s16 }
 0x68c   :  { %1227 = vrot.lane.b32.xlu2 %v1220_v16, %s3980_s16 }
 0x6d0   :  { %v1430_v18 = vpop.xlane.xlu1 %1429 }
 0x6d1   :  { %v1440_v53 = vsub.f32 %v4527_v34, %v1430_v18 }
 0x6d3   :  { %v1444_v58 = vmul.f32 1.442695, %v1440_v53 }
 0x6d5   :  { %3865 = vpow2.f32 %v1444_v58 }
 0x6d7   :  { %v1436_v19 = vpop.xlane.xlu2 %1435 }
 0x6d8   :  { %v1442_v22 = vsub.f32 %v4535_v37, %v1436_v19 }
 0x6da   :  { %v1448_v59 = vmul.f32 1.442695, %v1442_v22 }
 0x6db   :  { %v4597_v39 = vpop.eup %3865 }
 0x6dc   :  { %3867 = vpow2.f32 %v1448_v59  ;;  %v1452_v60 = vsel %vm706_vm6, %v4597_v39, 0.0 }
 0x6dd   :  { %1453 = vadd.xlane.f32.xlu2 %v1452_v60 }
 0x6de   :  { %v1433_v15 = vpop.xlane.xlu0 %1432 }
 0x6df   :  { %v1441_v3 = vsub.f32 %v4550_v51, %v1433_v15  ;;  %v1439_v4 = vpop.xlane.xlu2 %1438 }
 0x6e0   :  { %v1443_v52 = vsub.f32 %v4546_v48, %v1439_v4 }
 0x6e1   :  { %v1446_v34 = vmul.f32 1.442695, %v1441_v3 }
 0x6e2   :  { %v4603_v9 = vpop.eup %3867  ;;  %v1450_v8 = vmul.f32 1.442695, %v1443_v52 }
 0x6e3   :  { %3869 = vpow2.f32 %v1446_v34  ;;  %v1458_v37 = vsel %vm706_vm6, %v4603_v9, 0.0 }
 0x6e4   :  { %3871 = vpow2.f32 %v1450_v8  ;;  %1459 = vadd.xlane.f32.xlu0 %v1458_v37 }
 0x6e7   :  { %v1222_v41 = vpop.permute.xlu2 %1221 }
 0x6e8   :  { %v1226_v10 = vpop.permute.xlu1 %1225  ;;  %v1235_v13 = vrot.slane %v1222_v41, 4 }
 0x6e9   :  { %v4607_v57 = vpop.eup %3869  ;;  %v1233_v54 = vrot.slane %v1226_v10, 4 }
 0x6ea   :  { %v4609_v1 = vpop.eup %3871  ;;  %v1455_v48 = vsel %vm706_vm6, %v4607_v57, 0.0  ;;  %v1236_v6 = vsel %vm290_vm3, %v1226_v10, %v1235_v13 }
 0x6eb   :  { %1456 = vadd.xlane.f32.xlu1 %v1455_v48  ;;  %v1461_v51 = vsel %vm706_vm6, %v4609_v1, 0.0  ;;  %v1234_v12 = vsel %vm290_vm3, %v1233_v54, %v1222_v41  ;;  %v1244_v36 = vperm.slane %v1236_v6, %v4234_v35 }
 0x6ec   :  { %1462 = vadd.xlane.f32.xlu0 %v1461_v51  ;;  %v1240_v50 = vperm.slane %v1234_v12, %v4234_v35 }
 0x6ee   :  { %v1259_v24 = vrot.slane %v1240_v50, 4 }
 0x6ef   :  { %v1228_v2 = vpop.permute.xlu2 %1227 }
 0x6f0   :  { %v1245_v14 = vrot.slane %v1228_v2, 4  ;;  %v1224_v23 = vpop.permute.xlu1 %1223 }
 0x6f1   :  { %v1247_v61 = vrot.slane %v1224_v23, 4 }
 0x6f2   :  { %v1246_v25 = vsel %vm290_vm3, %v1245_v14, %v1224_v23 }
 0x6f3   :  { %v1248_v20 = vsel %vm290_vm3, %v1228_v2, %v1247_v61  ;;  %v1252_v63 = vperm.slane %v1246_v25, %v4234_v35 }
 0x6f4   :  { %v1256_v55 = vperm.slane %v1248_v20, %v4234_v35 }
 0x6f5   :  { %v1257_v26 = vrot.slane %v1252_v63, 4  ;;  %v1260_v11 = vsel %vm290_vm3, %v1252_v63, %v1259_v24 }
 0x6f6   :  { %v1268_v38 = vperm.slane %v1260_v11, %v4238_v43  ;;  %v1269_v62 = vrot.slane %v1256_v55, 4 }
 0x6f7   :  { %v1258_v0 = vsel %vm290_vm3, %v1257_v26, %v1240_v50 }
 0x6f8   :  { %v1264_v42 = vperm.slane %v1258_v0, %v4238_v43  ;;  %v1270_v44 = vsel %vm290_vm3, %v1269_v62, %v1244_v36  ;;  %v1273_v45 = vrot.slane %v1268_v38, 4 }
 0x6f9   :  { %v1289_v47 = vperm.slane %v1270_v44, %v4238_v43 }
 0x6fa   :  { %v1271_v56 = vrot.slane %v1264_v42, 4  ;;  %v1274_v49 = vsel %vm290_vm3, 0.0, %v1273_v45  ;;  %v1275_v16 = vsel %vm290_vm3, %v1273_v45, %v1264_v42 }
 0x6fb   :  { %v1279_v18 = vperm.slane %v1275_v16, %v4234_v35  ;;  %v1280_v53 = vrot.slane %v1274_v49, 4  ;;  %v1293_v58 = vperm.slane %v1289_v47, %v4234_v35 }
 0x6fc   :  { %v1272_v19 = vsel %vm290_vm3, 0.0, %v1271_v56 }
 0x6fd   :  { %v1281_v22 = vsel %vm290_vm3, %v1280_v53, %v1272_v19  ;;  %v1296_v59 = vrot.slane %v1279_v18, 4  ;;  %v1306_v60 = vrot.slane %v1293_v58, 4  ;;  %v1311_v3 = vperm.slane %v1293_v58, %v4238_v43 }
 0x6fe   :  { %v1285_v15 = vperm.slane %v1281_v22, %v4234_v35 }
 0x6ff   :  { %v1307_v4 = vsel %vm290_vm3, 0.0, %v1306_v60  ;;  %v1316_v48 = vrot.slane %v1311_v3, 4 }
 0x700   :  { %3816 = vrot.lane.b32.xlu0 %v3815_v32, %s3975_s11  ;;  %v1294_v52 = vrot.slane %v1285_v15, 4  ;;  %v1297_v34 = vsel %vm290_vm3, %v1285_v15, %v1296_v59  ;;  %v1315_v8 = vperm.slane %v1307_v4, %v4238_v43 }
 0x701   :  { %v1305_v37 = vperm.slane %v1297_v34, %v4238_v43 }
 0x702   :  { %v1295_v41 = vsel %vm290_vm3, %v1294_v52, %v1279_v18  ;;  %v1320_v10 = vrot.slane %v1315_v8, 4 }
 0x703   :  { %v1301_v54 = vperm.slane %v1295_v41, %v4238_v43  ;;  %v1322_v51 = vrot.slane %v1305_v37, 4 }
 0x704   :  { %v1321_v12 = vsel %vm290_vm3, %v1320_v10, %v1305_v37 }
 0x705   :  { %v1317_v13 = vsel %vm290_vm3, %v1316_v48, %v1301_v54  ;;  %3730 = vmatpush.msk.msra.mxu3 %vm755_vm7, %v1321_v12  ;;  %v1323_v28 = vsel %vm290_vm3, %v1315_v8, %v1322_v51  ;;  %v1318_v29 = vrot.slane %v1301_v54, 4 }
 0x706   :  { %3726 = vmatpush.msk.msra.mxu1 %vm755_vm7, %v1317_v13  ;;  %3732 = vmatpush.msk.msrb.mxu0 %vm755_vm7, %v1323_v28 }
 0x707   :  { %v1319_v32 = vsel %vm290_vm3, %v1311_v3, %v1318_v29 }
 0x708   :  { %3728 = vmatpush.msk.msra.mxu2 %vm755_vm7, %v1319_v32  ;;  %949 = vrot.lane.b32.xlu0 %v4584_v17, %s3983_s17 }
 0x710   :  { %953 = vrot.lane.b32.xlu0 %v4574_v5, %s3984_s18 }
 0x750   :  { %v1454_v50 = vpop.xlane.xlu2 %1453 }
 0x751   :  { %3873 = vrcp.f32 %v1454_v50 }
 0x757   :  { %v3874_v2 = vpop.eup %3873  ;;  %v1460_v14 = vpop.xlane.xlu0 %1459 }
 0x758   :  { %v1468_v23 = vmul.f32 %v3874_v2, %v4597_v39  ;;  %3875 = vrcp.f32 %v1460_v14 }
 0x75a   :  { %3727 = vmatmul.msk.f32.vlgmr.msra.gmra.mxu1 %vm5481_vm8, %v1468_v23 }
 0x75e   :  { %v3876_v61 = vpop.eup %3875  ;;  %v1457_v25 = vpop.xlane.xlu1 %1456 }
 0x75f   :  { %v1470_v6 = vmul.f32 %v3876_v61, %v4603_v9  ;;  %3877 = vrcp.f32 %v1457_v25  ;;  %v1463_v24 = vpop.xlane.xlu0 %1462 }
 0x760   :  { %3879 = vrcp.f32 %v1463_v24 }
 0x761   :  { %3731 = vmatmul.msk.f32.vlgmr.msra.gmra.mxu3 %vm5481_vm8, %v1470_v6 }
 0x765   :  { %v3878_v17 = vpop.eup %3877 }
 0x766   :  { %v3880_v5 = vpop.eup %3879  ;;  %v1469_v20 = vmul.f32 %v3878_v17, %v4607_v57 }
 0x767   :  { %v1471_v63 = vmul.f32 %v3880_v5, %v4609_v1 }
 0x768   :  { %3729 = vmatmul.msk.f32.vlgmr.msra.gmra.mxu2 %vm5481_vm8, %v1469_v20 }
 0x769   :  { %3733 = vmatmul.msk.f32.vlgmr.msrb.gmra.mxu0 %vm5481_vm8, %v1471_v63 }
 0x772   :  { %v3817_v39 = vpop.permute.xlu0 %3816 }
 0x773   :  { %v3819_v55 = vunpack.i.h.bf16 %v3817_v39  ;;  %v3818_v26 = vunpack.i.l.bf16 %v3817_v39 }
 0x775   :  { %1720 = vmatpush.msrb.mxu1 %v3818_v26 }
 0x777   :  { %1721 = vmatpush.msrb.mxu1 %v3819_v55 }
 0x77a   :  { %v950_v26 = vpop.permute.xlu0 %949 }
 0x7d7   :  { %v1495_v36 = vpop.f32.mrf.mxu1 }
 0x7d8   :  { %v1578_v1 = vrot.slane %v1495_v36, 4 }
 0x7e4   :  { %v1547_v9 = vpop.f32.mrf.mxu3 }
 0x7e5   :  { %v1576_v11 = vrot.slane %v1547_v9, 4  ;;  %v1579_v49 = vsel %vm290_vm3, %v1547_v9, %v1578_v1  ;;  %v954_v9 = vpop.permute.xlu0 %953 }
 0x7e6   :  { %v1573_v62 = vpop.f32.mrf.mxu0  ;;  %v1587_v22 = vperm.slane %v1579_v49, %v4234_v35 }
 0x7e7   :  { %v1577_v38 = vsel %vm290_vm3, %v1576_v11, %v1495_v36  ;;  %v1588_v57 = vrot.slane %v1573_v62, 4 }
 0x7e8   :  { %v1583_v0 = vperm.slane %v1577_v38, %v4234_v35 }
 0x7ea   :  { %v1602_v47 = vrot.slane %v1583_v0, 4 }
 0x7eb   :  { %v1521_v42 = vpop.f32.mrf.mxu2 }
 0x7ec   :  { %v1589_v44 = vsel %vm290_vm3, %v1588_v57, %v1521_v42  ;;  %v1590_v45 = vrot.slane %v1521_v42, 4 }
 0x7ed   :  { %v1595_v56 = vperm.slane %v1589_v44, %v4234_v35 }
 0x7ee   :  { %v1591_v16 = vsel %vm290_vm3, %v1573_v62, %v1590_v45 }
 0x7ef   :  { %v1599_v18 = vperm.slane %v1591_v16, %v4234_v35  ;;  %v1600_v53 = vrot.slane %v1595_v56, 4  ;;  %v1603_v58 = vsel %vm290_vm3, %v1595_v56, %v1602_v47 }
 0x7f0   :  { %v1611_v19 = vperm.slane %v1603_v58, %v4238_v43 }
 0x7f1   :  { %v1601_v59 = vsel %vm290_vm3, %v1600_v53, %v1583_v0  ;;  %v1612_v60 = vrot.slane %v1599_v18, 4 }
 0x7f2   :  { %v1607_v15 = vperm.slane %v1601_v59, %v4238_v43  ;;  %v1616_v3 = vrot.slane %v1611_v19, 4 }
 0x7f3   :  { %v1613_v4 = vsel %vm290_vm3, %v1612_v60, %v1587_v22 }
 0x7f4   :  { %v1614_v52 = vrot.slane %v1607_v15, 4  ;;  %v1617_v34 = vsel %vm290_vm3, 0.0, %v1616_v3  ;;  %v1618_v8 = vsel %vm290_vm3, %v1616_v3, %v1607_v15  ;;  %v1632_v37 = vperm.slane %v1613_v4, %v4238_v43 }
 0x7f5   :  { %v1622_v41 = vperm.slane %v1618_v8, %v4234_v35  ;;  %v1623_v10 = vrot.slane %v1617_v34, 4 }
 0x7f6   :  { %v1615_v54 = vsel %vm290_vm3, 0.0, %v1614_v52  ;;  %v1636_v48 = vperm.slane %v1632_v37, %v4234_v35 }
 0x7f7   :  { %v1624_v51 = vsel %vm290_vm3, %v1623_v10, %v1615_v54  ;;  %v1639_v12 = vrot.slane %v1622_v41, 4  ;;  %v172_v10 = vld [vmem:[%s5477_s4 + $0x10] sm:$0xff] }
 0x7f8   :  { %v1628_v13 = vperm.slane %v1624_v51, %v4234_v35  ;;  %v1649_v28 = vrot.slane %v1636_v48, 4  ;;  %v1654_v29 = vperm.slane %v1636_v48, %v4238_v43  ;;  %v171_v48 = vld [vmem:[%s5477_s4 + $0x8] sm:$0xff] }
 0x7fa   :  { %v1640_v32 = vsel %vm290_vm3, %v1628_v13, %v1639_v12  ;;  %v1650_v50 = vsel %vm290_vm3, 0.0, %v1649_v28  ;;  %v1637_v2 = vrot.slane %v1628_v13, 4  ;;  %v1659_v17 = vrot.slane %v1654_v29, 4  ;;  %v170_v12 = vld [vmem:[%s5477_s4] sm:$0xff] }
 0x7fb   :  { %v1648_v14 = vperm.slane %v1640_v32, %v4238_v43  ;;  %v1658_v23 = vperm.slane %v1650_v50, %v4238_v43 }
 0x7fc   :  { %v1638_v61 = vsel %vm290_vm3, %v1637_v2, %v1622_v41  ;;  %v173_v41 = vld [vmem:[%s5477_s4 + $0x18] sm:$0xff] }
 0x7fd   :  { %v1665_v25 = vrot.slane %v1648_v14, 4  ;;  %v1663_v6 = vrot.slane %v1658_v23, 4  ;;  %v1644_v24 = vperm.slane %v1638_v61, %v4238_v43  ;;  %1802 = vmatpush.msrb.mxu2 %v173_v41 }
 0x7ff   :  { %v1666_v5 = vsel %vm290_vm3, %v1658_v23, %v1665_v25  ;;  %v1664_v20 = vsel %vm290_vm3, %v1663_v6, %v1648_v14  ;;  %v1661_v63 = vrot.slane %v1644_v24, 4  ;;  %v1660_v39 = vsel %vm290_vm3, %v1659_v17, %v1644_v24  ;;  %1803 = vmatpush.msrb.mxu2 %v172_v10 }
 0x800   :  { %1676 = vrot.lane.b32.xlu1 %v1666_v5, %s3985_s19  ;;  %1672 = vrot.lane.b32.xlu2 %v1664_v20, %s3984_s18 }
 0x801   :  { %v1662_v55 = vsel %vm290_vm3, %v1654_v29, %v1661_v63  ;;  %1804 = vmatpush.msrb.mxu2 %v171_v48 }
 0x802   :  { %1668 = vrot.lane.b32.xlu0 %v1662_v55, %s3983_s17 }
 0x803   :  { %1805 = vmatpush.msrb.mxu2 %v170_v12 }
 0x808   :  { %957 = vrot.lane.b32.xlu2 %v4580_v40, %s3985_s19  ;;  %v960_v40 = vsel %vm601_vm4, %v4577_v27, %v950_v26  ;;  %v4721_v27 = vld [vmem:[%s5475_s2 + $0x10] sm:$0xff] }
 0x809   :  { %v962_v30 = vsel %vm5480_vm9, %v960_v40, %v954_v9  ;;  %v1686_v56 = vperm.slane %v4721_v27, 5  ;;  %v1777_v17 = vperm.slane %v4721_v27, 6  ;;  %v181_v40 = vld [vmem:[%s5477_s4 + $0x58] sm:$0xff] }
 0x80a   :  { %3821 = vrot.lane.b32.xlu0 %v3820_v33, %s3975_s11  ;;  %1870 = vmatpush.msrb.mxu3 %v181_v40  ;;  %v4822_v40 = vld [vmem:[%s5476_s3 + $0x28] sm:$0xff] }
 0x85a   :  { %v1673_v11 = vpop.permute.xlu2 %1672 }
 0x862   :  { %v958_v62 = vpop.permute.xlu2 %957 }
 0x863   :  { %v964_v33 = vsel %vm5479_vm10, %v962_v30, %v958_v62  ;;  %v180_v30 = vld [vmem:[%s5477_s4 + $0x50] sm:$0xff] }
 0x864   :  { %1871 = vmatpush.msrb.mxu3 %v180_v30 }
 0x872   :  { %v1677_v0 = vpop.permute.xlu1 %1676 }
 0x874   :  { %v1669_v36 = vpop.permute.xlu0 %1668 }
 0x875   :  { %v1679_v38 = vsel %vm601_vm4, %v1660_v39, %v1669_v36  ;;  %v1780_v39 = vperm.slane %v4721_v27, 7 }
 0x876   :  { %v1680_v57 = vsel %vm5480_vm9, %v1679_v38, %v1673_v11 }
 0x877   :  { %v1681_v42 = vsel %vm5479_vm10, %v1680_v57, %v1677_v0 }
 0x878   :  { %v1683_v31 = vrot.slane %v1681_v42, 3  ;;  %v3837_v42 = vld [vmem:[%s5477_s4 + $0x60] ss:$0 sm:$0xff] }
 0x87a   :  { %v1685_v1 = vsel %vm755_vm7, %v964_v33, %v1683_v31  ;;  %v179_v33 = vld [vmem:[%s5477_s4 + $0x48] sm:$0xff] }
 0x87b   :  { %1872 = vmatpush.msrb.mxu3 %v179_v33 }
 0x87c   :  { %v3822_v44 = vpop.permute.xlu0 %3821 }
 0x87d   :  { %v3823_v45 = vunpack.i.l.bf16 %v3822_v44  ;;  %v3824_v47 = vunpack.i.h.bf16 %v3822_v44  ;;  %v178_v44 = vld [vmem:[%s5477_s4 + $0x40] sm:$0xff] }
 0x87e   :  { %1873 = vmatpush.msrb.mxu3 %v178_v44 }
 0x87f   :  { %1722 = vmatpush.msrb.mxu1 %v3823_v45 }
 0x881   :  { %1723 = vmatpush.msrb.mxu1 %v3824_v47  ;;  %v177_v47 = vld [vmem:[%s5477_s4 + $0x38] sm:$0xff] }
 0x882   :  { %3734 = vmatmul.msk.f32.vlgmr.msrb.gmra.mxu1 %vm107_vm1, %v1685_v1  ;;  %1874 = vmatpush.msrb.mxu3 %v177_v47 }
 0x88a   :  { %3735 = vmatmul.msk.f32.gmra.mxu1 %vm107_vm1, %v1683_v31 }
 0x8ff   :  { %v1725_v49 = vpop.f32.mrf.mxu1 }
 0x900   :  { %v1726_v16 = vadd.f32 %v1725_v49, %v1686_v56 }
 0x902   :  { %v4725_v18 = vadd.f32 %v1726_v16, %v4124_v7  ;;  %v175_v16 = vld [vmem:[%s5477_s4 + $0x28] sm:$0xff] }
 0x904   :  { %v1733_v53 = vsel %vm107_vm1, %v4725_v18, 0.0 }
 0x905   :  { %1734 = vadd.xlane.f32.xlu0 %v1733_v53 }
 0x907   :  { %v1728_v58 = vpop.f32.mrf.mxu1 }
 0x908   :  { %v1729_v19 = vadd.f32 %v1728_v58, %v1686_v56  ;;  %v176_v56 = vld [vmem:[%s5477_s4 + $0x30] sm:$0xff]  ;;  %v174_v58 = vld [vmem:[%s5477_s4 + $0x20] sm:$0xff] }
 0x909   :  { %1875 = vmatpush.msrb.mxu3 %v176_v56 }
 0x90a   :  { %v4730_v22 = vadd.f32 %v1729_v19, %v4129_v21 }
 0x90b   :  { %1876 = vmatpush.msrb.mxu3 %v175_v16 }
 0x90c   :  { %v1736_v59 = vsel %vm111_vm2, %v4730_v22, 0.0 }
 0x90d   :  { %1737 = vadd.xlane.f32.xlu2 %v1736_v59  ;;  %1877 = vmatpush.msrb.mxu3 %v174_v58 }
 0x978   :  { %v1735_v60 = vpop.xlane.xlu0 %1734 }
 0x979   :  { %v1739_v15 = vmul.f32 %v1735_v60, %v4115_v46 }
 0x97b   :  { %v1741_v3 = vsub.f32 %v4725_v18, %v1739_v15 }
 0x97d   :  { %v1743_v7 = vmul.f32 %v1741_v3, %v1741_v3 }
 0x97f   :  { %v1745_v4 = vsel %vm107_vm1, %v1743_v7, 0.0 }
 0x980   :  { %v1738_v52 = vpop.xlane.xlu2 %1737  ;;  %1746 = vadd.xlane.f32.xlu1 %v1745_v4 }
 0x981   :  { %v1740_v34 = vmul.f32 %v1738_v52, %v4115_v46 }
 0x983   :  { %v1742_v8 = vsub.f32 %v4730_v22, %v1740_v34 }
 0x985   :  { %v1744_v21 = vmul.f32 %v1742_v8, %v1742_v8 }
 0x987   :  { %v1748_v37 = vsel %vm111_vm2, %v1744_v21, 0.0 }
 0x988   :  { %1749 = vadd.xlane.f32.xlu0 %v1748_v37 }
 0x9f3   :  { %v1747_v54 = vpop.xlane.xlu1 %1746 }
 0x9f4   :  { %v1751_v51 = vmul.f32 %v1747_v54, %v4115_v46 }
 0x9f6   :  { %v1753_v13 = vadd.f32 1e-05, %v1751_v51 }
 0x9f8   :  { %3881 = vrsqrt.f32 %v1753_v13  ;;  %vm1761_vm12 = vweird.f32 %v1753_v13 }
 0x9fb   :  { %v1750_v28 = vpop.xlane.xlu0 %1749 }
 0x9fc   :  { %v1752_v29 = vmul.f32 %v1750_v28, %v4115_v46 }
 0x9fe   :  { %v3882_v32 = vpop.eup %3881  ;;  %v1754_v50 = vadd.f32 1e-05, %v1752_v29 }
 0x9ff   :  { %v1756_v2 = vmul.f32 %v3882_v32, %v1753_v13  ;;  %vm1762_vm11 = vweird.f32 %v3882_v32 }
 0xa00   :  { %3883 = vrsqrt.f32 %v1754_v50  ;;  %vm1763_vm13 = vmor %vm1761_vm12, %vm1762_vm11  ;;  %vm1771_vm15 = vweird.f32 %v1754_v50 }
 0xa01   :  { %v1757_v14 = vmul.f32 %v3882_v32, %v1756_v2 }
 0xa03   :  { %v1758_v23 = vmul.f32 0.5, %v1757_v14 }
 0xa05   :  { %v1759_v61 = vsub.f32 1.5, %v1758_v23 }
 0xa06   :  { %v3884_v25 = vpop.eup %3883 }
 0xa07   :  { %v1760_v6 = vmul.f32 %v3882_v32, %v1759_v61  ;;  %v1766_v24 = vmul.f32 %v3884_v25, %v1754_v50  ;;  %vm1772_vm14 = vweird.f32 %v3884_v25 }
 0xa08   :  { %vm1773_vm10 = vmor %vm1771_vm15, %vm1772_vm14 }
 0xa09   :  { %v1764_v5 = vsel %vm1763_vm13, %v3882_v32, %v1760_v6  ;;  %v1767_v20 = vmul.f32 %v3884_v25, %v1766_v24  ;;  %v4790_v6 = vld [vmem:[%s5475_s2 + $0x18] sm:$0xff] }
 0xa0a   :  { %v1775_v63 = vmul.f32 %v1764_v5, %v1741_v3  ;;  %v1855_v24 = vperm.slane %v4790_v6, 0 }
 0xa0b   :  { %v1768_v55 = vmul.f32 0.5, %v1767_v20 }
 0xa0c   :  { %v1778_v26 = vmul.f32 %v1777_v17, %v1775_v63 }
 0xa0d   :  { %v1769_v9 = vsub.f32 1.5, %v1768_v55 }
 0xa0e   :  { %v1781_v11 = vadd.f32 %v1780_v39, %v1778_v26 }
 0xa0f   :  { %v1770_v36 = vmul.f32 %v3884_v25, %v1769_v9 }
 0xa10   :  { %3736 = vmatmul.msk.f32.vlgmr.msrb.gmra.mxu2 %vm107_vm1, %v1781_v11 }
 0xa11   :  { %v1774_v38 = vsel %vm1773_vm10, %v3884_v25, %v1770_v36 }
 0xa12   :  { %v1776_v62 = vmul.f32 %v1774_v38, %v1742_v8 }
 0xa14   :  { %v1779_v0 = vmul.f32 %v1777_v17, %v1776_v62 }
 0xa16   :  { %v1782_v57 = vadd.f32 %v1780_v39, %v1779_v0  ;;  %v4809_v0 = vld [vmem:[%s5476_s3 + $0x38] sm:$0xff] }
 0xa17   :  { %1974 = vmatpush.msra.mxu0 %v4809_v0 }
 0xa18   :  { %3737 = vmatmul.msk.f32.gmra.mxu2 %vm107_vm1, %v1782_v57 }
 0xa93   :  { %v1807_v31 = vpop.f32.mrf.mxu2 }
 0xa94   :  { %v1808_v1 = vadd.f32 %v3837_v42, %v1807_v31  ;;  %v1988_v31 = vperm.slane %v4790_v6, 4 }
 0xa96   :  { %v3738_v45 = vmul.f32 -1.702, %v1808_v1  ;;  %1990 = vrot.lane.b32.xlu0 %v1988_v31, %s3975_s11 }
 0xa98   :  { %v1817_v27 = vmul.f32 1.442695, %v3738_v45 }
 0xa9a   :  { %3885 = vpow2.f32 %v1817_v27 }
 0xa9b   :  { %v1810_v49 = vpop.f32.mrf.mxu2 }
 0xa9c   :  { %v1811_v53 = vadd.f32 %v3837_v42, %v1810_v49  ;;  %v4827_v42 = vld [vmem:[%s5476_s3 + $0x20] sm:$0xff] }
 0xa9d   :  { %v3830_v30 = vpack.i.bf16 %v4827_v42, %v4822_v40 }
 0xa9e   :  { %v3739_v19 = vmul.f32 -1.702, %v1811_v53 }
 0xaa0   :  { %v3886_v59 = vpop.eup %3885  ;;  %v1819_v60 = vmul.f32 1.442695, %v3739_v19 }
 0xaa1   :  { %v1821_v15 = vadd.f32 1.0, %v3886_v59  ;;  %v1953_v59 = vperm.slane %v4790_v6, 2 }
 0xaa2   :  { %3887 = vpow2.f32 %v1819_v60 }
 0xaa3   :  { %3889 = vrcp.f32 %v1821_v15  ;;  %v1834_v8 = vand.u32 2147483648, %v1821_v15  ;;  %v1832_v37 = vand.u32 2147483647, %v1821_v15  ;;  %vm1828_vm11 = vweird.f32 %v1821_v15 }
 0xaa5   :  { %v1835_v54 = vor.u32 1.1754944e-38, %v1834_v8  ;;  %vm1833_vm13 = vcmp.eq.f32.partialorder %v1832_v37, 8.507059e+37 }
 0xaa8   :  { %v3888_v3 = vpop.eup %3887 }
 0xaa9   :  { %v3890_v7 = vpop.eup %3889  ;;  %v1822_v4 = vadd.f32 1.0, %v3888_v3 }
 0xaaa   :  { %v1824_v52 = vmul.f32 %v3890_v7, %v1821_v15  ;;  %vm1829_vm10 = vweird.f32 %v3890_v7 }
 0xaab   :  { %3891 = vrcp.f32 %v1822_v4  ;;  %vm1830_vm12 = vmor %vm1828_vm11, %vm1829_vm10  ;;  %v1849_v29 = vand.u32 2147483648, %v1822_v4  ;;  %v1847_v50 = vand.u32 2147483647, %v1822_v4  ;;  %vm1843_vm15 = vweird.f32 %v1822_v4 }
 0xaac   :  { %v1825_v34 = vsub.f32 1.0, %v1824_v52  ;;  %v1985_v52 = vperm.slane %v4790_v6, 3 }
 0xaad   :  { %v1850_v14 = vor.u32 1.1754944e-38, %v1849_v29  ;;  %vm1848_vm8 = vcmp.eq.f32.partialorder %v1847_v50, 8.507059e+37 }
 0xaae   :  { %v1826_v21 = vmul.f32 %v3890_v7, %v1825_v34 }
 0xab0   :  { %v1827_v41 = vadd.f32 %v3890_v7, %v1826_v21 }
 0xab1   :  { %v3892_v10 = vpop.eup %3891 }
 0xab2   :  { %v1831_v48 = vsel %vm1830_vm12, %v3890_v7, %v1827_v41  ;;  %v1839_v51 = vmul.f32 %v3892_v10, %v1822_v4  ;;  %vm1844_vm14 = vweird.f32 %v3892_v10 }
 0xab3   :  { %v1836_v12 = vsel %vm1833_vm13, %v1835_v54, %v1831_v48  ;;  %vm1845_vm9 = vmor %vm1843_vm15, %vm1844_vm14  ;;  %v1995_v48 = vperm.slane %v4790_v6, 5  ;;  %vm5482_vm14 = vcmask 39936  }
 0xab4   :  { %v1853_v13 = vmul.f32 %v1836_v12, %v1808_v1  ;;  %v1840_v28 = vsub.f32 1.0, %v1839_v51  ;;  %vm5483_vm15 = vmmov %vm5482_vm14 }
 0xab6   :  { %v1841_v32 = vmul.f32 %v3892_v10, %v1840_v28  ;;  %3740 = vmatmul.msk.f32.vlgmr.msrb.gmra.mxu3 %vm54_vm0, %v1853_v13 }
 0xab8   :  { %v1842_v2 = vadd.f32 %v3892_v10, %v1841_v32 }
 0xaba   :  { %v1846_v23 = vsel %vm1845_vm9, %v3892_v10, %v1842_v2 }
 0xabb   :  { %v1851_v61 = vsel %vm1848_vm8, %v1850_v14, %v1846_v23 }
 0xabc   :  { %v1854_v25 = vmul.f32 %v1851_v61, %v1811_v53  ;;  %v1950_v53 = vperm.slane %v4790_v6, 1 }
 0xabe   :  { %3741 = vmatmul.msk.f32.gmra.mxu3 %vm54_vm0, %v1854_v25 }
 0xb08   :  { %v4840_v3 = vpop.permute.xlu0 %1990 }
 0xb39   :  { %v1879_v17 = vpop.f32.mrf.mxu3 }
 0xb3a   :  { %v1880_v5 = vadd.f32 %v1879_v17, %v1855_v24 }
 0xb3c   :  { %v4794_v20 = vadd.f32 %v1880_v5, %v4725_v18 }
 0xb3e   :  { %v1906_v63 = vsel %vm107_vm1, %v4794_v20, 0.0 }
 0xb3f   :  { %1907 = vadd.xlane.f32.xlu1 %v1906_v63 }
 0xb41   :  { %v1882_v39 = vpop.f32.mrf.mxu3 }
 0xb42   :  { %v1883_v55 = vadd.f32 %v1882_v39, %v1855_v24 }
 0xb44   :  { %v4799_v26 = vadd.f32 %v1883_v55, %v4730_v22  ;;  %v4814_v22 = vld [vmem:[%s5476_s3 + $0x30] sm:$0xff] }
 0xb45   :  { %v3825_v57 = vpack.i.bf16 %v4814_v22, %v4809_v0  ;;  %1975 = vmatpush.msra.mxu0 %v4814_v22 }
 0xb46   :  { %v1909_v9 = vsel %vm111_vm2, %v4799_v26, 0.0 }
 0xb47   :  { %1910 = vadd.xlane.f32.xlu1 %v1909_v9  ;;  %1976 = vmatpush.msra.mxu0 %v4822_v40 }
 0xb49   :  { %1977 = vmatpush.msra.mxu0 %v4827_v42 }
 0xbb2   :  { %v1908_v11 = vpop.xlane.xlu1 %1907 }
 0xbb3   :  { %v1912_v36 = vmul.f32 %v1908_v11, %v4115_v46 }
 0xbb5   :  { %v1914_v38 = vsub.f32 %v4794_v20, %v1912_v36 }
 0xbb7   :  { %v1916_v18 = vmul.f32 %v1914_v38, %v1914_v38 }
 0xbb9   :  { %v1918_v62 = vsel %vm107_vm1, %v1916_v18, 0.0 }
 0xbba   :  { %1919 = vadd.xlane.f32.xlu2 %v1918_v62  ;;  %v1911_v8 = vpop.xlane.xlu1 %1910 }
 0xbbb   :  { %v1913_v21 = vmul.f32 %v1911_v8, %v4115_v46 }
 0xbbd   :  { %v1915_v37 = vsub.f32 %v4799_v26, %v1913_v21 }
 0xbbf   :  { %v1917_v41 = vmul.f32 %v1915_v37, %v1915_v37 }
 0xbc1   :  { %v1921_v10 = vsel %vm111_vm2, %v1917_v41, 0.0 }
 0xc2d   :  { %v1920_v33 = vpop.xlane.xlu2 %1919 }
 0xc2e   :  { %v1924_v1 = vmul.f32 %v1920_v33, %v4115_v46 }
 0xc30   :  { %v1926_v44 = vadd.f32 1e-05, %v1924_v1 }
 0xc32   :  { %3893 = vrsqrt.f32 %v1926_v44  ;;  %vm1934_vm9 = vweird.f32 %v1926_v44 }
 0xc38   :  { %v3894_v45 = vpop.eup %3893 }
 0xc39   :  { %v1929_v47 = vmul.f32 %v3894_v45, %v1926_v44  ;;  %vm1935_vm8 = vweird.f32 %v3894_v45 }
 0xc3a   :  { %vm1936_vm10 = vmor %vm1934_vm9, %vm1935_vm8 }
 0xc3b   :  { %v1930_v27 = vmul.f32 %v3894_v45, %v1929_v47  ;;  %vm5484_vm8 = vmmov %vm5482_vm14 }
 0xc3c   :  { %vm5485_vm9 = vmmov %vm5484_vm8 }
 0xc3d   :  { %v1931_v56 = vmul.f32 0.5, %v1930_v27 }
 0xc3f   :  { %v1932_v49 = vsub.f32 1.5, %v1931_v56 }
 0xc41   :  { %v1933_v16 = vmul.f32 %v3894_v45, %v1932_v49 }
 0xc43   :  { %v1937_v58 = vsel %vm1936_vm10, %v3894_v45, %v1933_v16 }
 0xc44   :  { %v1948_v19 = vmul.f32 %v1937_v58, %v1914_v38 }
 0xc46   :  { %v1951_v60 = vmul.f32 %v1950_v53, %v1948_v19 }
 0xc48   :  { %v1954_v15 = vadd.f32 %v1953_v59, %v1951_v60 }
 0xc4a   :  { %3759 = vmatmul.msk.f32.vlgmr.msra.gmra.mxu0 %vm107_vm1, %v1954_v15 }
 0xcc7   :  { %v1979_v7 = vpop.f32.mrf.mxu0 }
 0xcc8   :  { %v4843_v4 = vadd.f32 %v4840_v3, %v1979_v7  ;;  %v4854_v34 = vadd.f32 %v1985_v52, %v1979_v7 }
 0xcca   :  { %2104 = vrot.lane.b32.xlu0 %v4843_v4, %s3976_s12  ;;  %2108 = vrot.lane.b32.xlu1 %v4843_v4, %s3977_s13 }
 0xccb   :  { %2106 = vrot.lane.b32.xlu2 %v4843_v4, %s3978_s14 }
 0xcd2   :  { %2006 = vrot.lane.b32.xlu0 %v4854_v34, %s3978_s14 }
 0xcd3   :  { %2110 = vrot.lane.b32.xlu2 %v4843_v4, %s3979_s15 }
 0xcfc   :  { %1922 = vadd.xlane.f32.xlu2 %v1921_v10 }
 0xd25   :  { %v4863_v54 = vpop.permute.xlu2 %2106 }
 0xd26   :  { %2114 = vrot.lane.b32.xlu0 %v4863_v54, %s3979_s15 }
 0xd2d   :  { %v2111_v13 = vpop.permute.xlu2 %2110 }
 0xd2e   :  { %2009 = vrot.lane.b32.xlu0 %v4854_v34, %s3977_s13  ;;  %v2124_v45 = vrot.slane %v2111_v13, 4 }
 0xd36   :  { %1997 = vrot.lane.b32.xlu0 %v1995_v48, %s3980_s16 }
 0xd3c   :  { %v4871_v51 = vpop.permute.xlu1 %2108  ;;  %v4875_v12 = vpop.permute.xlu0 %2104 }
 0xd3d   :  { %2116 = vrot.lane.b32.xlu1 %v4871_v51, %s3979_s15 }
 0xd44   :  { %v4883_v39 = vpop.permute.xlu0 %2006 }
 0xd45   :  { %2112 = vrot.lane.b32.xlu1 %v4875_v12, %s3979_s15  ;;  %v2012_v1 = vrot.slane %v4883_v39, 4 }
 0xd47   :  { %v2013_v58 = vsel %vm290_vm3, %v2012_v1, %v4854_v34 }
 0xd48   :  { %v2019_v41 = vperm.slane %v2013_v58, %v4234_v35 }
 0xd4d   :  { %2003 = vrot.lane.b32.xlu1 %v4854_v34, %s3976_s12 }
 0xd6f   :  { %v1923_v28 = vpop.xlane.xlu2 %1922 }
 0xd70   :  { %v1925_v29 = vmul.f32 %v1923_v28, %v4115_v46 }
 0xd72   :  { %v1927_v32 = vadd.f32 1e-05, %v1925_v29 }
 0xd74   :  { %3895 = vrsqrt.f32 %v1927_v32  ;;  %vm1944_vm12 = vweird.f32 %v1927_v32 }
 0xd7a   :  { %v3896_v50 = vpop.eup %3895 }
 0xd7b   :  { %v1939_v2 = vmul.f32 %v3896_v50, %v1927_v32  ;;  %vm1945_vm11 = vweird.f32 %v3896_v50 }
 0xd7c   :  { %vm1946_vm13 = vmor %vm1944_vm12, %vm1945_vm11  ;;  %vm5491_vm12 = vcmask 195584  }
 0xd7d   :  { %v1940_v14 = vmul.f32 %v3896_v50, %v1939_v2 }
 0xd7f   :  { %v1941_v23 = vmul.f32 0.5, %v1940_v14 }
 0xd81   :  { %v1942_v61 = vsub.f32 1.5, %v1941_v23 }
 0xd83   :  { %v1943_v25 = vmul.f32 %v3896_v50, %v1942_v61 }
 0xd85   :  { %v1947_v24 = vsel %vm1946_vm13, %v3896_v50, %v1943_v25 }
 0xd86   :  { %v1949_v17 = vmul.f32 %v1947_v24, %v1915_v37 }
 0xd88   :  { %v1952_v5 = vmul.f32 %v1950_v53, %v1949_v17 }
 0xd8a   :  { %v1955_v63 = vadd.f32 %v1953_v59, %v1952_v5  ;;  %v2038_v5 = vrot.slane %v2019_v41, 4 }
 0xd8c   :  { %3760 = vmatmul.msk.f32.gmra.mxu0 %vm107_vm1, %v1955_v63 }
 0xd98   :  { %v2115_v55 = vpop.permute.xlu0 %2114 }
 0xd99   :  { %v2122_v38 = vrot.slane %v2115_v55, 4  ;;  %v2125_v16 = vsel %vm290_vm3, %v2115_v55, %v2124_v45 }
 0xd9a   :  { %v2133_v8 = vperm.slane %v2125_v16, %v4234_v35 }
 0xd9b   :  { %v2123_v62 = vsel %vm290_vm3, %v2122_v38, %v2111_v13 }
 0xd9c   :  { %v2129_v31 = vperm.slane %v2123_v62, %v4234_v35 }
 0xd9e   :  { %v2148_v56 = vrot.slane %v2129_v31, 4 }
 0xda0   :  { %v4885_v9 = vpop.permute.xlu0 %2009 }
 0xda1   :  { %v2024_v28 = vrot.slane %v4885_v9, 4 }
 0xda8   :  { %v4887_v11 = vpop.permute.xlu0 %1997 }
 0xda9   :  { %v4890_v36 = vadd.f32 %v4887_v11, %v1979_v7  ;;  %v2014_v7 = vrot.slane %v4854_v34, 4 }
 0xdab   :  { %2218 = vrot.lane.b32.xlu0 %v4890_v36, %s3977_s13  ;;  %2216 = vrot.lane.b32.xlu1 %v4890_v36, %s3978_s14  ;;  %v2015_v13 = vsel %vm290_vm3, %v4883_v39, %v2014_v7 }
 0xdaf   :  { %v2117_v18 = vpop.permute.xlu1 %2116 }
 0xdb0   :  { %v2134_v33 = vrot.slane %v2117_v18, 4 }
 0xdb3   :  { %2220 = vrot.lane.b32.xlu1 %v4890_v36, %s3980_s16 }
 0xdb7   :  { %v2113_v44 = vpop.permute.xlu1 %2112 }
 0xdb8   :  { %v2135_v47 = vsel %vm290_vm3, %v2134_v33, %v2113_v44  ;;  %v2136_v27 = vrot.slane %v2113_v44, 4 }
 0xdb9   :  { %v2141_v49 = vperm.slane %v2135_v47, %v4234_v35  ;;  %v2023_v47 = vperm.slane %v2015_v13, %v4234_v35 }
 0xdba   :  { %v2137_v53 = vsel %vm290_vm3, %v2117_v18, %v2136_v27 }
 0xdbb   :  { %v2145_v19 = vperm.slane %v2137_v53, %v4234_v35  ;;  %v2146_v59 = vrot.slane %v2141_v49, 4  ;;  %v2149_v60 = vsel %vm290_vm3, %v2141_v49, %v2148_v56 }
 0xdbc   :  { %v2157_v15 = vperm.slane %v2149_v60, %v4238_v43 }
 0xdbd   :  { %v2147_v21 = vsel %vm290_vm3, %v2146_v59, %v2129_v31  ;;  %v2158_v37 = vrot.slane %v2145_v19, 4 }
 0xdbe   :  { %v2153_v10 = vperm.slane %v2147_v21, %v4238_v43  ;;  %v2162_v48 = vrot.slane %v2157_v15, 4 }
 0xdbf   :  { %v2159_v29 = vsel %vm290_vm3, %v2158_v37, %v2133_v8  ;;  %v4919_v32 = vpop.permute.xlu1 %2003 }
 0xdc0   :  { %v2160_v50 = vrot.slane %v2153_v10, 4  ;;  %v2163_v2 = vsel %vm290_vm3, 0.0, %v2162_v48  ;;  %v2164_v14 = vsel %vm290_vm3, %v2162_v48, %v2153_v10  ;;  %v2178_v23 = vperm.slane %v2159_v29, %v4238_v43 }
 0xdc1   :  { %v2168_v61 = vperm.slane %v2164_v14, %v4234_v35  ;;  %v2169_v25 = vrot.slane %v2163_v2, 4  ;;  %v2025_v24 = vsel %vm290_vm3, %v2024_v28, %v4919_v32  ;;  %v2026_v17 = vrot.slane %v4919_v32, 4 }
 0xdc2   :  { %v2161_v63 = vsel %vm290_vm3, 0.0, %v2160_v50  ;;  %v2031_v55 = vperm.slane %v2025_v24, %v4234_v35  ;;  %v2182_v38 = vperm.slane %v2178_v23, %v4234_v35 }
 0xdc3   :  { %v2170_v18 = vsel %vm290_vm3, %v2169_v25, %v2161_v63  ;;  %v2027_v62 = vsel %vm290_vm3, %v4885_v9, %v2026_v17  ;;  %v2185_v31 = vrot.slane %v2168_v61, 4 }
 0xdc4   :  { %v2174_v33 = vperm.slane %v2170_v18, %v4234_v35  ;;  %v2035_v1 = vperm.slane %v2027_v62, %v4234_v35  ;;  %v2036_v44 = vrot.slane %v2031_v55, 4  ;;  %v2039_v45 = vsel %vm290_vm3, %v2031_v55, %v2038_v5 }
 0xdc5   :  { %v2047_v27 = vperm.slane %v2039_v45, %v4238_v43  ;;  %v2200_v56 = vperm.slane %v2182_v38, %v4238_v43  ;;  %v2195_v49 = vrot.slane %v2182_v38, 4 }
 0xdc6   :  { %v2037_v16 = vsel %vm290_vm3, %v2036_v44, %v2019_v41  ;;  %v2048_v53 = vrot.slane %v2035_v1, 4  ;;  %v2183_v58 = vrot.slane %v2174_v33, 4  ;;  %v2186_v19 = vsel %vm290_vm3, %v2174_v33, %v2185_v31 }
 0xdc7   :  { %v2043_v59 = vperm.slane %v2037_v16, %v4238_v43  ;;  %v2052_v60 = vrot.slane %v2047_v27, 4  ;;  %v2194_v15 = vperm.slane %v2186_v19, %v4238_v43  ;;  %v2205_v21 = vrot.slane %v2200_v56, 4 }
 0xdc8   :  { %v2049_v7 = vsel %vm290_vm3, %v2048_v53, %v2023_v47  ;;  %v2184_v8 = vsel %vm290_vm3, %v2183_v58, %v2168_v61  ;;  %v2196_v37 = vsel %vm290_vm3, 0.0, %v2195_v49 }
 0xdc9   :  { %v2050_v10 = vrot.slane %v2043_v59, 4  ;;  %v2053_v48 = vsel %vm290_vm3, 0.0, %v2052_v60  ;;  %v2054_v41 = vsel %vm290_vm3, %v2052_v60, %v2043_v59  ;;  %v2068_v13 = vperm.slane %v2049_v7, %v4238_v43 }
 0xdca   :  { %v2059_v28 = vrot.slane %v2053_v48, 4  ;;  %v2190_v29 = vperm.slane %v2184_v8, %v4238_v43  ;;  %v2204_v50 = vperm.slane %v2196_v37, %v4238_v43  ;;  %v2211_v2 = vrot.slane %v2194_v15, 4 }
 0xdcb   :  { %v2051_v14 = vsel %vm290_vm3, 0.0, %v2050_v10  ;;  %v2058_v23 = vperm.slane %v2054_v41, %v4234_v35  ;;  %v2072_v61 = vperm.slane %v2068_v13, %v4234_v35  ;;  %v2802_v48 = vrot.slane %v4843_v4, 5 }
 0xdcc   :  { %v2060_v25 = vsel %vm290_vm3, %v2059_v28, %v2051_v14  ;;  %v2206_v24 = vsel %vm290_vm3, %v2205_v21, %v2190_v29  ;;  %v2209_v17 = vrot.slane %v2204_v50, 4  ;;  %v2212_v5 = vsel %vm290_vm3, %v2204_v50, %v2211_v2 }
 0xdcd   :  { %3761 = vmatpush.xpose.msk.msra.mxu1 %vm601_vm4, %v2206_v24  ;;  %v2207_v63 = vrot.slane %v2190_v29, 4  ;;  %v2064_v55 = vperm.slane %v2060_v25, %v4234_v35  ;;  %v2075_v38 = vrot.slane %v2058_v23, 4  ;;  %v2090_v62 = vperm.slane %v2072_v61, %v4238_v43 }
 0xdce   :  { %v2210_v18 = vsel %vm290_vm3, %v2209_v17, %v2194_v15  ;;  %v2085_v31 = vrot.slane %v2072_v61, 4  ;;  %v2805_v14 = vrot.slane %v4875_v12, 5 }
 0xdcf   :  { %3765 = vmatpush.xpose.msk.msrb.mxu0 %vm601_vm4, %v2210_v18  ;;  %v2208_v33 = vsel %vm290_vm3, %v2200_v56, %v2207_v63  ;;  %v2073_v1 = vrot.slane %v2064_v55, 4  ;;  %v2076_v44 = vsel %vm290_vm3, %v2064_v55, %v2075_v38  ;;  %v2095_v16 = vrot.slane %v2090_v62, 4 }
 0xdd0   :  { %3763 = vmatpush.xpose.msk.msra.mxu2 %vm601_vm4, %v2208_v33  ;;  %v2086_v45 = vsel %vm290_vm3, 0.0, %v2085_v31  ;;  %v2084_v53 = vperm.slane %v2076_v44, %v4238_v43  ;;  %v2811_v38 = vrot.slane %v4871_v51, 5 }
 0xdd1   :  { %3767 = vmatpush.xpose.msk.msrb.mxu1 %vm601_vm4, %v2212_v5  ;;  %v2074_v47 = vsel %vm290_vm3, %v2073_v1, %v2058_v23  ;;  %v2094_v27 = vperm.slane %v2086_v45, %v4238_v43  ;;  %v2808_v5 = vrot.slane %v4863_v54, 5 }
 0xdd2   :  { %v2080_v49 = vperm.slane %v2074_v47, %v4238_v43  ;;  %v2101_v15 = vrot.slane %v2084_v53, 4 }
 0xdd3   :  { %v2099_v58 = vrot.slane %v2094_v27, 4 }
 0xdd4   :  { %v2096_v19 = vsel %vm290_vm3, %v2095_v16, %v2080_v49  ;;  %v2097_v56 = vrot.slane %v2080_v49, 4  ;;  %v2102_v7 = vsel %vm290_vm3, %v2094_v27, %v2101_v15 }
 0xdd5   :  { %3762 = vmatmul.msk.f32.vlgmr.msra.gmra.mxu1 %vm601_vm4, %v2096_v19  ;;  %v2100_v59 = vsel %vm290_vm3, %v2099_v58, %v2084_v53 }
 0xdd6   :  { %3766 = vmatmul.msk.f32.vlgmr.msrb.gmra.mxu0 %vm601_vm4, %v2100_v59  ;;  %v2098_v60 = vsel %vm290_vm3, %v2090_v62, %v2097_v56 }
 0xdd7   :  { %3764 = vmatmul.msk.f32.vlgmr.msra.gmra.mxu2 %vm601_vm4, %v2098_v60 }
 0xddd   :  { %3768 = vmatmul.msk.f32.vlgmr.msrb.gmra.mxu1 %vm601_vm4, %v2102_v7 }
 0xe09   :  { %v4980_v8 = vpop.f32.mrf.mxu0 }
 0xe0a   :  { %v4985_v21 = vadd.f32 %v1985_v52, %v4980_v8  ;;  %v1994_v37 = vadd.f32 %v4840_v3, %v4980_v8 }
 0xe0c   :  { %2796 = vrot.lane.b32.xlu2 %v1994_v37, %s3976_s12  ;;  %2798 = vrot.lane.b32.xlu0 %v1994_v37, %s3978_s14  ;;  %v2803_v10 = vrot.slane %v1994_v37, 5 }
 0xe0d   :  { %2686 = vrot.lane.b32.xlu1 %v4985_v21, %s3977_s13 }
 0xe0e   :  { %v2804_v41 = vsel %vm972_vm5, %v2802_v48, %v2803_v10 }
 0xe14   :  { %2214 = vrot.lane.b32.xlu0 %v4890_v36, %s3976_s12  ;;  %2814 = vrot.lane.b32.xlu2 %v2804_v41, %s3979_s15 }
 0xe1c   :  { %2800 = vrot.lane.b32.xlu0 %v1994_v37, %s3977_s13 }
 0xe1d   :  { %v4999_v6 = vpop.permute.xlu1 %2216  ;;  %v5005_v3 = vpop.permute.xlu0 %2218 }
 0xe1e   :  { %2224 = vrot.lane.b32.xlu2 %v4999_v6, %s3980_s16 }
 0xe24   :  { %2684 = vrot.lane.b32.xlu0 %v4985_v21, %s3978_s14 }
 0xe25   :  { %v2221_v31 = vpop.permute.xlu1 %2220 }
 0xe26   :  { %2226 = vrot.lane.b32.xlu2 %v5005_v3, %s3980_s16 }
 0xe52   :  { %v2346_v4 = vpop.f32.mrf.mxu1 }
 0xe53   :  { %v2398_v52 = vpop.f32.mrf.mxu0  ;;  %v2427_v13 = vsel %vm706_vm6, %v2346_v4, -inf }
 0xe54   :  { %2428 = vmax.xlane.f32.xlu1 %v2427_v13  ;;  %v2433_v28 = vsel %vm706_vm6, %v2398_v52, -inf }
 0xe55   :  { %2434 = vmax.xlane.f32.xlu0 %v2433_v28 }
 0xe5a   :  { %v2424_v29 = vpop.f32.mrf.mxu1  ;;  %v5025_v62 = vpop.f32.mrf.mxu2 }
 0xe5b   :  { %v2436_v50 = vsel %vm706_vm6, %v2424_v29, -inf  ;;  %v2430_v33 = vsel %vm706_vm6, %v5025_v62, -inf }
 0xe5c   :  { %2437 = vmax.xlane.f32.xlu1 %v2436_v50 }
 0xe66   :  { %v2797_v2 = vpop.permute.xlu2 %2796 }
 0xe67   :  { %v2806_v23 = vrot.slane %v2797_v2, 5 }
 0xe69   :  { %v2807_v61 = vsel %vm972_vm5, %v2805_v14, %v2806_v23 }
 0xe6a   :  { %2816 = vrot.lane.b32.xlu0 %v2807_v61, %s3979_s15 }
 0xe6e   :  { %v5033_v44 = vpop.permute.xlu2 %2814 }
 0xe78   :  { %v2225_v53 = vpop.permute.xlu2 %2224 }
 0xe79   :  { %v2232_v37 = vrot.slane %v2225_v53, 4 }
 0xe7e   :  { %v2799_v25 = vpop.permute.xlu0 %2798 }
 0xe7f   :  { %v2809_v17 = vrot.slane %v2799_v25, 5  ;;  %v5029_v54 = vpop.permute.xlu1 %2686 }
 0xe80   :  { %v2227_v10 = vpop.permute.xlu2 %2226 }
 0xe81   :  { %v2810_v55 = vsel %vm972_vm5, %v2808_v5, %v2809_v17  ;;  %v2244_v13 = vrot.slane %v2227_v10, 4 }
 0xe86   :  { %v5015_v24 = vpop.permute.xlu0 %2214 }
 0xe87   :  { %2222 = vrot.lane.b32.xlu2 %v5015_v24, %s3980_s16 }
 0xe8e   :  { %v2801_v63 = vpop.permute.xlu0 %2800 }
 0xe8f   :  { %v2812_v12 = vrot.slane %v2801_v63, 5  ;;  %2818 = vrot.lane.b32.xlu2 %v2810_v55, %s3979_s15 }
 0xe91   :  { %v2813_v18 = vsel %vm972_vm5, %v2811_v38, %v2812_v12  ;;  %v5060_v38 = vadd.f32 %v4887_v11, %v4980_v8 }
 0xe92   :  { %2820 = vrot.lane.b32.xlu1 %v2813_v18, %s3979_s15 }
 0xe96   :  { %v5031_v1 = vpop.permute.xlu0 %2684 }
 0xeb8   :  { %2431 = vmax.xlane.f32.xlu2 %v2430_v33 }
 0xec7   :  { %v2429_v51 = vpop.xlane.xlu1 %2428 }
 0xec8   :  { %v2439_v45 = vsub.f32 %v2346_v4, %v2429_v51  ;;  %v2435_v47 = vpop.xlane.xlu0 %2434  ;;  %v2233_v4 = vsel %vm290_vm3, %v2232_v37, %v2221_v31 }
 0xec9   :  { %v2441_v27 = vsub.f32 %v2398_v52, %v2435_v47  ;;  %v2239_v52 = vperm.slane %v2233_v4, %v4234_v35 }
 0xeca   :  { %v2443_v49 = vmul.f32 1.442695, %v2439_v45 }
 0xecb   :  { %v2447_v16 = vmul.f32 1.442695, %v2441_v27  ;;  %v2258_v14 = vrot.slane %v2239_v52, 4 }
 0xecc   :  { %3897 = vpow2.f32 %v2443_v49 }
 0xecd   :  { %3899 = vpow2.f32 %v2447_v16 }
 0xecf   :  { %v2438_v58 = vpop.xlane.xlu1 %2437 }
 0xed0   :  { %v2442_v19 = vsub.f32 %v2424_v29, %v2438_v58  ;;  %2682 = vrot.lane.b32.xlu2 %v4985_v21, %s3976_s12  ;;  %v2234_v29 = vrot.slane %v2221_v31, 4 }
 0xed2   :  { %v5037_v56 = vpop.eup %3897  ;;  %v2449_v59 = vmul.f32 1.442695, %v2442_v19  ;;  %v2235_v61 = vsel %vm290_vm3, %v2225_v53, %v2234_v29 }
 0xed3   :  { %v5039_v60 = vpop.eup %3899  ;;  %v2451_v15 = vsel %vm706_vm6, %v5037_v56, 0.0  ;;  %v2243_v12 = vperm.slane %v2235_v61, %v4234_v35 }
 0xed4   :  { %3901 = vpow2.f32 %v2449_v59  ;;  %2452 = vadd.xlane.f32.xlu1 %v2451_v15  ;;  %v2457_v7 = vsel %vm706_vm6, %v5039_v60, 0.0 }
 0xed5   :  { %2458 = vadd.xlane.f32.xlu0 %v2457_v7 }
 0xeda   :  { %v5045_v48 = vpop.eup %3901 }
 0xedb   :  { %v2460_v41 = vsel %vm706_vm6, %v5045_v48, 0.0 }
 0xedc   :  { %2461 = vadd.xlane.f32.xlu1 %v2460_v41 }
 0xee1   :  { %v2223_v28 = vpop.permute.xlu2 %2222 }
 0xee2   :  { %v2245_v50 = vsel %vm290_vm3, %v2244_v13, %v2223_v28  ;;  %v2246_v2 = vrot.slane %v2223_v28, 4 }
 0xee3   :  { %v2251_v23 = vperm.slane %v2245_v50, %v4234_v35 }
 0xee4   :  { %v2247_v25 = vsel %vm290_vm3, %v2227_v10, %v2246_v2 }
 0xee5   :  { %v2255_v17 = vperm.slane %v2247_v25, %v4234_v35  ;;  %v2256_v5 = vrot.slane %v2251_v23, 4  ;;  %v2259_v63 = vsel %vm290_vm3, %v2251_v23, %v2258_v14 }
 0xee6   :  { %v2267_v55 = vperm.slane %v2259_v63, %v4238_v43 }
 0xee7   :  { %v2257_v18 = vsel %vm290_vm3, %v2256_v5, %v2239_v52  ;;  %v2268_v31 = vrot.slane %v2255_v17, 4 }
 0xee8   :  { %v2263_v33 = vperm.slane %v2257_v18, %v4238_v43  ;;  %v2272_v51 = vrot.slane %v2267_v55, 4 }
 0xee9   :  { %v2269_v45 = vsel %vm290_vm3, %v2268_v31, %v2243_v12  ;;  %2922 = vrot.lane.b32.xlu0 %v5060_v38, %s3977_s13  ;;  %v2819_v63 = vpop.permute.xlu2 %2818  ;;  %v2817_v12 = vpop.permute.xlu0 %2816  ;;  %v2828_v31 = vrot.slane %v5033_v44, 4 }
 0xeea   :  { %v2270_v47 = vrot.slane %v2263_v33, 4  ;;  %v2273_v27 = vsel %vm290_vm3, 0.0, %v2272_v51  ;;  %v2274_v49 = vsel %vm290_vm3, %v2272_v51, %v2263_v33  ;;  %v2288_v11 = vperm.slane %v2269_v45, %v4238_v43 }
 0xeeb   :  { %v2278_v8 = vperm.slane %v2274_v49, %v4234_v35  ;;  %v2279_v16 = vrot.slane %v2273_v27, 4  ;;  %v2826_v55 = vrot.slane %v2819_v63, 4  ;;  %v2840_v33 = vrot.slane %v2817_v12, 4 }
 0xeec   :  { %v2271_v53 = vsel %vm290_vm3, 0.0, %v2270_v47  ;;  %v2292_v58 = vperm.slane %v2288_v11, %v4234_v35  ;;  %v2829_v47 = vsel %vm290_vm3, %v2819_v63, %v2828_v31 }
 0xeed   :  { %v2280_v19 = vsel %vm290_vm3, %v2279_v16, %v2271_v53  ;;  %v2295_v59 = vrot.slane %v2278_v8, 4  ;;  %v2827_v18 = vsel %vm290_vm3, %v2826_v55, %v5033_v44  ;;  %v2837_v16 = vperm.slane %v2829_v47, %v4234_v35 }
 0xeee   :  { %v2284_v15 = vperm.slane %v2280_v19, %v4234_v35  ;;  %v2305_v7 = vrot.slane %v2292_v58, 4  ;;  %v2310_v37 = vperm.slane %v2292_v58, %v4238_v43  ;;  %v2833_v51 = vperm.slane %v2827_v18, %v4234_v35 }
 0xef0   :  { %v2293_v10 = vrot.slane %v2284_v15, 4  ;;  %v2296_v41 = vsel %vm290_vm3, %v2284_v15, %v2295_v59  ;;  %v2306_v52 = vsel %vm290_vm3, 0.0, %v2305_v7  ;;  %v2315_v50 = vrot.slane %v2310_v37, 4 }
 0xef1   :  { %v2304_v4 = vperm.slane %v2296_v41, %v4238_v43  ;;  %v2314_v28 = vperm.slane %v2306_v52, %v4238_v43  ;;  %v2852_v53 = vrot.slane %v2833_v51, 4 }
 0xef2   :  { %v2294_v13 = vsel %vm290_vm3, %v2293_v10, %v2278_v8 }
 0xef3   :  { %v2300_v29 = vperm.slane %v2294_v13, %v4238_v43  ;;  %v2321_v2 = vrot.slane %v2304_v4, 4  ;;  %v2319_v14 = vrot.slane %v2314_v28, 4 }
 0xef5   :  { %2918 = vrot.lane.b32.xlu1 %v5060_v38, %s3976_s12  ;;  %v2316_v23 = vsel %vm290_vm3, %v2315_v50, %v2300_v29  ;;  %v2322_v61 = vsel %vm290_vm3, %v2314_v28, %v2321_v2  ;;  %v2317_v25 = vrot.slane %v2300_v29, 4  ;;  %v2320_v17 = vsel %vm290_vm3, %v2319_v14, %v2304_v4 }
 0xef6   :  { %3769 = vmatpush.msk.msrb.mxu2 %vm755_vm7, %v2316_v23  ;;  %3775 = vmatpush.msk.msra.mxu1 %vm755_vm7, %v2322_v61 }
 0xef7   :  { %3773 = vmatpush.msk.msra.mxu0 %vm755_vm7, %v2320_v17  ;;  %v2318_v5 = vsel %vm290_vm3, %v2310_v37, %v2317_v25 }
 0xef8   :  { %3771 = vmatpush.msk.msra.mxu3 %vm755_vm7, %v2318_v5 }
 0xf04   :  { %v2821_v45 = vpop.permute.xlu1 %2820 }
 0xf05   :  { %v2838_v27 = vrot.slane %v2821_v45, 4  ;;  %v2841_v49 = vsel %vm290_vm3, %v2821_v45, %v2840_v33 }
 0xf06   :  { %v2849_v11 = vperm.slane %v2841_v49, %v4234_v35 }
 0xf07   :  { %v2839_v8 = vsel %vm290_vm3, %v2838_v27, %v2817_v12 }
 0xf08   :  { %v2845_v58 = vperm.slane %v2839_v8, %v4234_v35  ;;  %v2862_v19 = vrot.slane %v2849_v11, 4 }
 0xf0a   :  { %v2850_v44 = vrot.slane %v2845_v58, 4  ;;  %v2853_v59 = vsel %vm290_vm3, %v2845_v58, %v2852_v53  ;;  %v2863_v15 = vsel %vm290_vm3, %v2862_v19, %v2837_v16  ;;  %v2695_v58 = vrot.slane %v5031_v1, 5 }
 0xf0b   :  { %v2861_v7 = vperm.slane %v2853_v59, %v4238_v43  ;;  %v2882_v37 = vperm.slane %v2863_v15, %v4238_v43  ;;  %v2694_v19 = vrot.slane %v4883_v39, 5  ;;  %v2689_v15 = vrot.slane %v4985_v21, 5 }
 0xf0c   :  { %v2851_v10 = vsel %vm290_vm3, %v2850_v44, %v2833_v51  ;;  %v2691_v21 = vrot.slane %v4919_v32, 5 }
 0xf0d   :  { %v2857_v41 = vperm.slane %v2851_v10, %v4238_v43  ;;  %v2866_v4 = vrot.slane %v2861_v7, 4  ;;  %v2886_v52 = vperm.slane %v2882_v37, %v4234_v35  ;;  %v2696_v44 = vsel %vm972_vm5, %v2694_v19, %v2695_v58 }
 0xf0e   :  { %v2704_v37 = vrot.slane %v2696_v44, 4  ;;  %v2698_v10 = vrot.slane %v5029_v54, 5 }
 0xf0f   :  { %v2864_v13 = vrot.slane %v2857_v41, 4  ;;  %v2867_v28 = vsel %vm290_vm3, 0.0, %v2866_v4  ;;  %v2868_v29 = vsel %vm290_vm3, %v2866_v4, %v2857_v41  ;;  %v2899_v50 = vrot.slane %v2886_v52, 4 }
 0xf10   :  { %v2873_v2 = vrot.slane %v2867_v28, 4  ;;  %v2872_v14 = vperm.slane %v2868_v29, %v4234_v35  ;;  %v2904_v55 = vperm.slane %v2886_v52, %v4238_v43  ;;  %v2688_v41 = vrot.slane %v4854_v34, 5 }
 0xf11   :  { %v2865_v23 = vsel %vm290_vm3, 0.0, %v2864_v13  ;;  %v2900_v61 = vsel %vm290_vm3, 0.0, %v2899_v50  ;;  %v2697_v52 = vrot.slane %v4885_v9, 5 }
 0xf12   :  { %v2874_v25 = vsel %vm290_vm3, %v2873_v2, %v2865_v23  ;;  %v2889_v17 = vrot.slane %v2872_v14, 4  ;;  %v2908_v5 = vperm.slane %v2900_v61, %v4238_v43  ;;  %v2909_v27 = vrot.slane %v2904_v55, 4 }
 0xf13   :  { %v2878_v63 = vperm.slane %v2874_v25, %v4234_v35  ;;  %v2690_v13 = vsel %vm972_vm5, %v2688_v41, %v2689_v15  ;;  %v2699_v1 = vsel %vm972_vm5, %v2697_v52, %v2698_v10 }
 0xf14   :  { %v2913_v33 = vrot.slane %v2908_v5, 4  ;;  %v2705_v39 = vsel %vm290_vm3, %v2704_v37, %v2690_v13  ;;  %v2716_v50 = vrot.slane %v2699_v1, 4  ;;  %v2706_v2 = vrot.slane %v2690_v13, 4 }
 0xf15   :  { %v2890_v12 = vsel %vm290_vm3, %v2878_v63, %v2889_v17  ;;  %v2887_v18 = vrot.slane %v2878_v63, 4 }
 0xf16   :  { %v2898_v31 = vperm.slane %v2890_v12, %v4238_v43  ;;  %v2707_v32 = vsel %vm290_vm3, %v2696_v44, %v2706_v2 }
 0xf17   :  { %v2888_v51 = vsel %vm290_vm3, %v2887_v18, %v2872_v14  ;;  %v2715_v18 = vperm.slane %v2707_v32, %v4234_v35 }
 0xf18   :  { %v2914_v45 = vsel %vm290_vm3, %v2913_v33, %v2898_v31  ;;  %v2894_v47 = vperm.slane %v2888_v51, %v4238_v43  ;;  %v2915_v49 = vrot.slane %v2898_v31, 4 }
 0xf19   :  { %3781 = vmatpush.xpose.msk.msrb.mxu0 %vm601_vm4, %v2914_v45 }
 0xf1a   :  { %v2910_v11 = vsel %vm290_vm3, %v2909_v27, %v2894_v47  ;;  %v2916_v8 = vsel %vm290_vm3, %v2908_v5, %v2915_v49  ;;  %v2911_v16 = vrot.slane %v2894_v47, 4 }
 0xf1b   :  { %3777 = vmatpush.xpose.msk.msra.mxu2 %vm601_vm4, %v2910_v11  ;;  %3783 = vmatpush.xpose.msk.msrb.mxu1 %vm601_vm4, %v2916_v8 }
 0xf1c   :  { %v2912_v53 = vsel %vm290_vm3, %v2904_v55, %v2911_v16 }
 0xf1d   :  { %3779 = vmatpush.xpose.msk.msrb.mxu3 %vm601_vm4, %v2912_v53 }
 0xf2b   :  { %v2432_v59 = vpop.xlane.xlu2 %2431 }
 0xf2c   :  { %v2440_v7 = vsub.f32 %v5025_v62, %v2432_v59  ;;  %v2711_v62 = vperm.slane %v2705_v39, %v4234_v35 }
 0xf2e   :  { %v2445_v4 = vmul.f32 1.442695, %v2440_v7  ;;  %v2730_v61 = vrot.slane %v2711_v62, 4 }
 0xf30   :  { %3903 = vpow2.f32 %v2445_v4 }
 0xf33   :  { %v2683_v28 = vpop.permute.xlu2 %2682 }
 0xf34   :  { %v2692_v29 = vrot.slane %v2683_v28, 5 }
 0xf36   :  { %v5144_v54 = vpop.eup %3903  ;;  %v2693_v34 = vsel %vm972_vm5, %v2691_v21, %v2692_v29 }
 0xf37   :  { %v2717_v9 = vsel %vm290_vm3, %v2716_v50, %v2693_v34  ;;  %v2718_v14 = vrot.slane %v2693_v34, 4  ;;  %v2454_v23 = vsel %vm706_vm6, %v5144_v54, 0.0 }
 0xf38   :  { %v2723_v25 = vperm.slane %v2717_v9, %v4234_v35  ;;  %2455 = vadd.xlane.f32.xlu2 %v2454_v23 }
 0xf39   :  { %v2719_v17 = vsel %vm290_vm3, %v2699_v1, %v2718_v14 }
 0xf3a   :  { %v2727_v5 = vperm.slane %v2719_v17, %v4234_v35  ;;  %v2728_v63 = vrot.slane %v2723_v25, 4  ;;  %v2731_v55 = vsel %vm290_vm3, %v2723_v25, %v2730_v61 }
 0xf3b   :  { %v2739_v12 = vperm.slane %v2731_v55, %v4238_v43 }
 0xf3c   :  { %v2729_v31 = vsel %vm290_vm3, %v2728_v63, %v2711_v62  ;;  %v2740_v33 = vrot.slane %v2727_v5, 4 }
 0xf3d   :  { %v2735_v51 = vperm.slane %v2729_v31, %v4238_v43  ;;  %v2744_v45 = vrot.slane %v2739_v12, 4  ;;  %v2930_v31 = vrot.slane %v4999_v6, 5 }
 0xf3e   :  { %v2741_v47 = vsel %vm290_vm3, %v2740_v33, %v2715_v18 }
 0xf3f   :  { %v2742_v27 = vrot.slane %v2735_v51, 4  ;;  %v2745_v49 = vsel %vm290_vm3, 0.0, %v2744_v45  ;;  %v2746_v11 = vsel %vm290_vm3, %v2744_v45, %v2735_v51  ;;  %v2760_v8 = vperm.slane %v2741_v47, %v4238_v43 }
 0xf40   :  { %v2751_v16 = vrot.slane %v2745_v49, 4  ;;  %v2750_v53 = vperm.slane %v2746_v11, %v4234_v35 }
 0xf41   :  { %v2743_v58 = vsel %vm290_vm3, 0.0, %v2742_v27  ;;  %v2764_v19 = vperm.slane %v2760_v8, %v4234_v35 }
 0xf42   :  { %v2752_v44 = vsel %vm290_vm3, %v2751_v16, %v2743_v58  ;;  %v2767_v59 = vrot.slane %v2750_v53, 4 }
 0xf43   :  { %v2756_v15 = vperm.slane %v2752_v44, %v4234_v35  ;;  %v2782_v7 = vperm.slane %v2764_v19, %v4238_v43  ;;  %v2777_v37 = vrot.slane %v2764_v19, 4 }
 0xf45   :  { %v2765_v10 = vrot.slane %v2756_v15, 4  ;;  %v2768_v41 = vsel %vm290_vm3, %v2756_v15, %v2767_v59  ;;  %v2778_v4 = vsel %vm290_vm3, 0.0, %v2777_v37  ;;  %v2787_v28 = vrot.slane %v2782_v7, 4 }
 0xf46   :  { %v2776_v52 = vperm.slane %v2768_v41, %v4238_v43  ;;  %v2786_v13 = vperm.slane %v2778_v4, %v4238_v43  ;;  %v2927_v41 = vrot.slane %v5015_v24, 5 }
 0xf47   :  { %v2453_v39 = vpop.xlane.xlu1 %2452  ;;  %v2766_v1 = vsel %vm290_vm3, %v2765_v10, %v2750_v53 }
 0xf48   :  { %3905 = vrcp.f32 %v2453_v39  ;;  %v2459_v21 = vpop.xlane.xlu0 %2458  ;;  %v2772_v62 = vperm.slane %v2766_v1, %v4238_v43  ;;  %v2791_v29 = vrot.slane %v2786_v13, 4  ;;  %v2793_v50 = vrot.slane %v2776_v52, 4 }
 0xf49   :  { %3907 = vrcp.f32 %v2459_v21 }
 0xf4a   :  { %v2788_v34 = vsel %vm290_vm3, %v2787_v28, %v2772_v62  ;;  %v2792_v2 = vsel %vm290_vm3, %v2791_v29, %v2776_v52  ;;  %v2794_v9 = vsel %vm290_vm3, %v2786_v13, %v2793_v50  ;;  %v2789_v14 = vrot.slane %v2772_v62, 4 }
 0xf4c   :  { %v2790_v23 = vsel %vm290_vm3, %v2782_v7, %v2789_v14  ;;  %v2933_v7 = vrot.slane %v5005_v3, 5 }
 0xf4e   :  { %v3906_v61 = vpop.eup %3905 }
 0xf4f   :  { %v3908_v25 = vpop.eup %3907  ;;  %v2467_v32 = vmul.f32 %v3906_v61, %v5037_v56  ;;  %v2462_v17 = vpop.xlane.xlu1 %2461 }
 0xf50   :  { %v2469_v5 = vmul.f32 %v3908_v25, %v5039_v60  ;;  %3909 = vrcp.f32 %v2462_v17  ;;  %2920 = vrot.lane.b32.xlu2 %v5060_v38, %s3978_s14 }
 0xf51   :  { %3770 = vmatmul.msk.f32.vlgmr.msrb.gmra.mxu2 %vm5482_vm14, %v2467_v32  ;;  %vm5493_vm14 = vmmov %vm5491_vm12 }
 0xf52   :  { %3774 = vmatmul.msk.f32.vlgmr.msra.gmra.mxu0 %vm5483_vm15, %v2469_v5 }
 0xf56   :  { %v3910_v63 = vpop.eup %3909 }
 0xf57   :  { %v2470_v55 = vmul.f32 %v3910_v63, %v5045_v48 }
 0xf59   :  { %3776 = vmatmul.msk.f32.vlgmr.msra.gmra.mxu1 %vm5484_vm8, %v2470_v55  ;;  %3778 = vmatmul.msk.f32.vlgmr.msra.gmra.mxu2 %vm601_vm4, %v2788_v34 }
 0xf5a   :  { %3782 = vmatmul.msk.f32.vlgmr.msrb.gmra.mxu0 %vm601_vm4, %v2792_v2 }
 0xf5b   :  { %v2923_v44 = vpop.permute.xlu0 %2922 }
 0xf5c   :  { %v2934_v59 = vrot.slane %v2923_v44, 5 }
 0xf5e   :  { %v2935_v10 = vsel %vm972_vm5, %v2933_v7, %v2934_v59 }
 0xf61   :  { %3784 = vmatmul.msk.f32.vlgmr.msrb.gmra.mxu1 %vm601_vm4, %v2794_v9 }
 0xf67   :  { %v2919_v15 = vpop.permute.xlu1 %2918 }
 0xf68   :  { %v2928_v37 = vrot.slane %v2919_v15, 5 }
 0xf6a   :  { %v2929_v4 = vsel %vm972_vm5, %v2927_v41, %v2928_v37 }
 0xfab   :  { %v2456_v56 = vpop.xlane.xlu2 %2455 }
 0xfac   :  { %3911 = vrcp.f32 %v2456_v56 }
 0xfb2   :  { %v3912_v60 = vpop.eup %3911 }
 0xfb3   :  { %v2468_v12 = vmul.f32 %v3912_v60, %v5144_v54  ;;  %v2921_v18 = vpop.permute.xlu2 %2920 }
 0xfb4   :  { %v2931_v33 = vrot.slane %v2921_v18, 5 }
 0xfb5   :  { %3772 = vmatmul.msk.f32.vlgmr.msra.gmra.mxu3 %vm5485_vm9, %v2468_v12 }
 0xfb6   :  { %v2932_v48 = vsel %vm972_vm5, %v2930_v31, %v2931_v33 }
 0xfb7   :  { %2940 = vrot.lane.b32.xlu0 %v2932_v48, %s3980_s16 }
 0xfbd   :  { %3780 = vmatmul.msk.f32.vlgmr.msrb.gmra.mxu3 %vm601_vm4, %v2790_v23 }
 0xfcf   :  { %v2546_v51 = vpop.f32.mrf.mxu0 }
 0xfd0   :  { %v2575_v45 = vrot.slane %v2546_v51, 4 }
 0xfd4   :  { %v2494_v47 = vpop.f32.mrf.mxu2 }
 0xfd5   :  { %v2576_v27 = vsel %vm290_vm3, %v2575_v45, %v2494_v47  ;;  %v2577_v49 = vrot.slane %v2494_v47, 4 }
 0xfd6   :  { %v2572_v11 = vpop.f32.mrf.mxu1  ;;  %v2582_v52 = vperm.slane %v2576_v27, %v4234_v35 }
 0xfd7   :  { %v2578_v54 = vsel %vm290_vm3, %v2546_v51, %v2577_v49  ;;  %v5198_v8 = vpop.f32.mrf.mxu0  ;;  %v2587_v13 = vrot.slane %v2572_v11, 4 }
 0xfd8   :  { %v3149_v6 = vsel %vm706_vm6, %v5198_v8, -inf  ;;  %v2601_v21 = vrot.slane %v2582_v52, 4  ;;  %v2586_v2 = vperm.slane %v2578_v54, %v4234_v35 }
 0xfd9   :  { %3150 = vmax.xlane.f32.xlu1 %v3149_v6 }
 0xfdc   :  { %v5202_v16 = vpop.f32.mrf.mxu2 }
 0xfdd   :  { %v3143_v19 = vsel %vm706_vm6, %v5202_v16, -inf }
 0xfde   :  { %v5204_v53 = vpop.f32.mrf.mxu1 }
 0xfdf   :  { %v3152_v58 = vsel %vm706_vm6, %v5204_v53, -inf }
 0xfe0   :  { %3153 = vmax.xlane.f32.xlu2 %v3152_v58 }
 0xfe1   :  { %3144 = vmax.xlane.f32.xlu0 %v3143_v19 }
 0xff2   :  { %2942 = vrot.lane.b32.xlu1 %v2935_v10, %s3980_s16 }
 0xff5   :  { %2938 = vrot.lane.b32.xlu0 %v2929_v4, %s3980_s16 }
0x1029   :  { %v2941_v7 = vpop.permute.xlu0 %2940 }
0x1038   :  { %v2520_v39 = vpop.f32.mrf.mxu3 }
0x1039   :  { %v2588_v1 = vsel %vm290_vm3, %v2587_v13, %v2520_v39  ;;  %v2589_v28 = vrot.slane %v2520_v39, 4 }
0x103a   :  { %v2594_v3 = vperm.slane %v2588_v1, %v4234_v35 }
0x103b   :  { %v2590_v62 = vsel %vm290_vm3, %v2572_v11, %v2589_v28 }
0x103c   :  { %v2598_v24 = vperm.slane %v2590_v62, %v4234_v35  ;;  %v2599_v29 = vrot.slane %v2594_v3, 4  ;;  %v2602_v50 = vsel %vm290_vm3, %v2594_v3, %v2601_v21  ;;  %v2925_v62 = vrot.slane %v5060_v38, 5 }
0x103d   :  { %v2610_v34 = vperm.slane %v2602_v50, %v4238_v43 }
0x103e   :  { %v2600_v9 = vsel %vm290_vm3, %v2599_v29, %v2582_v52  ;;  %v2611_v14 = vrot.slane %v2598_v24, 4 }
0x103f   :  { %v2606_v23 = vperm.slane %v2600_v9, %v4238_v43  ;;  %v2615_v61 = vrot.slane %v2610_v34, 4 }
0x1040   :  { %v5226_v25 = vpop.f32.mrf.mxu3  ;;  %v2612_v32 = vsel %vm290_vm3, %v2611_v14, %v2586_v2 }
0x1041   :  { %v2613_v17 = vrot.slane %v2606_v23, 4  ;;  %v2616_v5 = vsel %vm290_vm3, 0.0, %v2615_v61  ;;  %v2617_v63 = vsel %vm290_vm3, %v2615_v61, %v2606_v23  ;;  %v3146_v55 = vsel %vm706_vm6, %v5226_v25, -inf }
0x1042   :  { %v2622_v56 = vrot.slane %v2616_v5, 4  ;;  %3147 = vmax.xlane.f32.xlu2 %v3146_v55  ;;  %v2621_v60 = vperm.slane %v2617_v63, %v4234_v35  ;;  %v2631_v12 = vperm.slane %v2612_v32, %v4238_v43 }
0x1043   :  { %v2614_v18 = vsel %vm290_vm3, 0.0, %v2613_v17 }
0x1044   :  { %v2623_v31 = vsel %vm290_vm3, %v2622_v56, %v2614_v18  ;;  %v2635_v33 = vperm.slane %v2631_v12, %v4234_v35  ;;  %v2638_v48 = vrot.slane %v2621_v60, 4  ;;  %v2948_v12 = vrot.slane %v2941_v7, 4 }
0x1045   :  { %v2627_v51 = vperm.slane %v2623_v31, %v4234_v35 }
0x1046   :  { %v2648_v45 = vrot.slane %v2635_v33, 4  ;;  %v2653_v47 = vperm.slane %v2635_v33, %v4238_v43 }
0x1047   :  { %v2636_v27 = vrot.slane %v2627_v51, 4  ;;  %v2639_v49 = vsel %vm290_vm3, %v2627_v51, %v2638_v48 }
0x1048   :  { %v2647_v11 = vperm.slane %v2639_v49, %v4238_v43  ;;  %v2649_v54 = vsel %vm290_vm3, 0.0, %v2648_v45  ;;  %v2658_v44 = vrot.slane %v2653_v47, 4 }
0x1049   :  { %v2637_v6 = vsel %vm290_vm3, %v2636_v27, %v2621_v60  ;;  %v2657_v58 = vperm.slane %v2649_v54, %v4238_v43 }
0x104a   :  { %v2643_v19 = vperm.slane %v2637_v6, %v4238_v43  ;;  %v2664_v59 = vrot.slane %v2647_v11, 4 }
0x104b   :  { %v2662_v15 = vrot.slane %v2657_v58, 4 }
0x104c   :  { %v3151_v37 = vpop.xlane.xlu1 %3150  ;;  %v2660_v10 = vrot.slane %v2643_v19, 4  ;;  %v5247_v41 = vsel %vm290_vm3, %v2658_v44, %v2643_v19  ;;  %v5250_v4 = vsel %vm290_vm3, %v2657_v58, %v2664_v59 }
0x104d   :  { %v3157_v52 = vsub.f32 %v5198_v8, %v3151_v37  ;;  %v5254_v13 = vsel %vm290_vm3, %v2662_v15, %v2647_v11  ;;  %v2924_v8 = vrot.slane %v4890_v36, 5 }
0x104e   :  { %v5257_v39 = vsel %vm290_vm3, %v2653_v47, %v2660_v10 }
0x104f   :  { %v3163_v1 = vmul.f32 1.442695, %v3157_v52  ;;  %v2926_v2 = vsel %vm972_vm5, %v2924_v8, %v2925_v62  ;;  %vm5486_vm5 = vmmov %vm5484_vm8 }
0x1050   :  { %vm5488_vm10 = vmmov %vm5486_vm5 }
0x1051   :  { %3913 = vpow2.f32 %v3163_v1  ;;  %vm5489_vm11 = vmmov %vm5486_vm5 }
0x1053   :  { %v3154_v28 = vpop.xlane.xlu2 %3153 }
0x1054   :  { %v3145_v21 = vpop.xlane.xlu0 %3144  ;;  %v3158_v29 = vsub.f32 %v5204_v53, %v3154_v28 }
0x1055   :  { %v3155_v3 = vsub.f32 %v5202_v16, %v3145_v21 }
0x1056   :  { %v3165_v9 = vmul.f32 1.442695, %v3158_v29 }
0x1057   :  { %v5261_v24 = vpop.eup %3913  ;;  %v3159_v50 = vmul.f32 1.442695, %v3155_v3 }
0x1058   :  { %v3173_v34 = vsel %vm706_vm6, %v5261_v24, 0.0 }
0x1059   :  { %3915 = vpow2.f32 %v3159_v50  ;;  %3174 = vadd.xlane.f32.xlu1 %v3173_v34 }
0x105a   :  { %2936 = vrot.lane.b32.xlu2 %v2926_v2, %s3980_s16  ;;  %3917 = vpow2.f32 %v3165_v9  ;;  %s3689_s16 = sshll.u32 %s5478_s5, 4  ;;  %s3690_s16 = int_to_ptr.hbm [resolvable:$true] %s3689_s16 }
0x105f   :  { %v5269_v16 = vpop.eup %3915 }
0x1060   :  { %v3167_v38 = vsel %vm706_vm6, %v5269_v16, 0.0  ;;  %v5273_v53 = vpop.eup %3917 }
0x1061   :  { %3168 = vadd.xlane.f32.xlu0 %v3167_v38  ;;  %v3176_v36 = vsel %vm706_vm6, %v5273_v53, 0.0 }
0x1064   :  { %v2943_v23 = vpop.permute.xlu1 %2942 }
0x1065   :  { %v2960_v17 = vrot.slane %v2943_v23, 4 }
0x1067   :  { %v2939_v14 = vpop.permute.xlu0 %2938 }
0x1068   :  { %v2962_v61 = vrot.slane %v2939_v14, 4  ;;  %v2961_v63 = vsel %vm290_vm3, %v2960_v17, %v2939_v14 }
0x1069   :  { %3177 = vadd.xlane.f32.xlu0 %v3176_v36  ;;  %v2967_v60 = vperm.slane %v2961_v63, %v4234_v35 }
0x106a   :  { %v2963_v56 = vsel %vm290_vm3, %v2943_v23, %v2962_v61 }
0x106b   :  { %v2971_v18 = vperm.slane %v2963_v56, %v4234_v35  ;;  %v2972_v51 = vrot.slane %v2967_v60, 4 }
0x10b5   :  { %v3148_v32 = vpop.xlane.xlu2 %3147 }
0x10b6   :  { %v3156_v5 = vsub.f32 %v5226_v25, %v3148_v32  ;;  %v2984_v25 = vrot.slane %v2971_v18, 4 }
0x10b8   :  { %v3161_v55 = vmul.f32 1.442695, %v3156_v5 }
0x10ba   :  { %3919 = vpow2.f32 %v3161_v55 }
0x10bd   :  { %v2937_v31 = vpop.permute.xlu2 %2936 }
0x10be   :  { %v2949_v33 = vsel %vm290_vm3, %v2948_v12, %v2937_v31  ;;  %v2950_v48 = vrot.slane %v2937_v31, 4 }
0x10bf   :  { %v2955_v45 = vperm.slane %v2949_v33, %v4234_v35 }
0x10c0   :  { %v5284_v47 = vpop.eup %3919  ;;  %v2951_v27 = vsel %vm290_vm3, %v2941_v7, %v2950_v48 }
0x10c1   :  { %v2959_v49 = vperm.slane %v2951_v27, %v4234_v35  ;;  %v2973_v11 = vsel %vm290_vm3, %v2972_v51, %v2955_v45  ;;  %v2974_v54 = vrot.slane %v2955_v45, 4  ;;  %v3170_v6 = vsel %vm706_vm6, %v5284_v47, 0.0  ;;  %vm5487_vm6 = vmmov %vm5486_vm5 }
0x10c2   :  { %v2979_v58 = vperm.slane %v2973_v11, %v4238_v43  ;;  %3171 = vadd.xlane.f32.xlu2 %v3170_v6 }
0x10c3   :  { %v2975_v19 = vsel %vm290_vm3, %v2967_v60, %v2974_v54  ;;  %v2985_v44 = vsel %vm290_vm3, %v2984_v25, %v2959_v49 }
0x10c4   :  { %v2983_v59 = vperm.slane %v2975_v19, %v4238_v43  ;;  %v3004_v15 = vperm.slane %v2985_v44, %v4238_v43  ;;  %v2986_v7 = vrot.slane %v2979_v58, 4 }
0x10c6   :  { %v2988_v37 = vrot.slane %v2983_v59, 4  ;;  %v3008_v10 = vperm.slane %v3004_v15, %v4234_v35  ;;  %v2987_v62 = vsel %vm290_vm3, 0.0, %v2986_v7 }
0x10c8   :  { %v2989_v52 = vsel %vm290_vm3, 0.0, %v2988_v37  ;;  %v2990_v1 = vsel %vm290_vm3, %v2988_v37, %v2979_v58  ;;  %v3021_v28 = vrot.slane %v3008_v10, 4  ;;  %v3026_v38 = vperm.slane %v3008_v10, %v4238_v43 }
0x10c9   :  { %v2994_v21 = vperm.slane %v2990_v1, %v4234_v35  ;;  %v2995_v3 = vrot.slane %v2989_v52, 4 }
0x10ca   :  { %v3022_v29 = vsel %vm290_vm3, 0.0, %v3021_v28  ;;  %v3031_v63 = vrot.slane %v3026_v38, 4 }
0x10cb   :  { %v2996_v50 = vsel %vm290_vm3, %v2995_v3, %v2987_v62  ;;  %v3011_v8 = vrot.slane %v2994_v21, 4  ;;  %v3030_v34 = vperm.slane %v3022_v29, %v4238_v43 }
0x10cc   :  { %v3000_v2 = vperm.slane %v2996_v50, %v4234_v35  ;;  %v3175_v9 = vpop.xlane.xlu1 %3174 }
0x10cd   :  { %3921 = vrcp.f32 %v3175_v9  ;;  %v3035_v61 = vrot.slane %v3030_v34, 4 }
0x10ce   :  { %v3012_v36 = vsel %vm290_vm3, %v3000_v2, %v3011_v8  ;;  %v3009_v14 = vrot.slane %v3000_v2, 4 }
0x10cf   :  { %v3020_v23 = vperm.slane %v3012_v36, %v4238_v43 }
0x10d0   :  { %v3010_v32 = vsel %vm290_vm3, %v3009_v14, %v2994_v21 }
0x10d1   :  { %v3036_v17 = vsel %vm290_vm3, %v3035_v61, %v3020_v23  ;;  %v3016_v5 = vperm.slane %v3010_v32, %v4238_v43  ;;  %v3037_v55 = vrot.slane %v3020_v23, 4 }
0x10d2   :  { %3789 = vmatpush.msk.msra.mxu0 %vm755_vm7, %v3036_v17 }
0x10d3   :  { %v3922_v56 = vpop.eup %3921  ;;  %v3032_v60 = vsel %vm290_vm3, %v3031_v63, %v3016_v5  ;;  %v3038_v12 = vsel %vm290_vm3, %v3030_v34, %v3037_v55  ;;  %v3033_v18 = vrot.slane %v3016_v5, 4 }
0x10d4   :  { %v3185_v31 = vmul.f32 %v3922_v56, %v5261_v24  ;;  %v3169_v33 = vpop.xlane.xlu0 %3168  ;;  %3785 = vmatpush.msk.msrb.mxu2 %vm755_vm7, %v3032_v60  ;;  %3791 = vmatpush.msk.msra.mxu1 %vm755_vm7, %v3038_v12 }
0x10d5   :  { %3923 = vrcp.f32 %v3169_v33  ;;  %v3034_v48 = vsel %vm290_vm3, %v3026_v38, %v3033_v18 }
0x10d6   :  { %3790 = vmatmul.msk.f32.vlgmr.msra.gmra.mxu0 %vm5486_vm5, %v3185_v31  ;;  %3787 = vmatpush.msk.msra.mxu3 %vm755_vm7, %v3034_v48 }
0x10da   :  { %3826 = vrot.lane.b32.xlu2 %v3825_v57, %s3975_s11 }
0x10db   :  { %v3924_v51 = vpop.eup %3923 }
0x10dc   :  { %v3183_v24 = vmul.f32 %v3924_v51, %v5269_v16  ;;  %v3178_v45 = vpop.xlane.xlu0 %3177 }
0x10dd   :  { %3925 = vrcp.f32 %v3178_v45 }
0x10de   :  { %3786 = vmatmul.msk.f32.vlgmr.msrb.gmra.mxu2 %vm5487_vm6, %v3183_v24 }
0x10e2   :  { %2667 = vrot.lane.b32.xlu2 %v5257_v39, %s3983_s17 }
0x10e3   :  { %v3926_v25 = vpop.eup %3925 }
0x10e4   :  { %v3186_v27 = vmul.f32 %v3926_v25, %v5273_v53 }
0x10e6   :  { %3792 = vmatmul.msk.f32.vlgmr.msra.gmra.mxu1 %vm5488_vm10, %v3186_v27 }
0x10ea   :  { %3831 = vrot.lane.b32.xlu2 %v3830_v30, %s3975_s11 }
0x1135   :  { %v3172_v0 = vpop.xlane.xlu2 %3171 }
0x1136   :  { %3927 = vrcp.f32 %v3172_v0 }
0x113c   :  { %v3928_v22 = vpop.eup %3927 }
0x113d   :  { %v3184_v57 = vmul.f32 %v3928_v22, %v5284_v47  ;;  %v3827_v16 = vpop.permute.xlu2 %3826 }
0x113e   :  { %v3829_v49 = vunpack.i.h.bf16 %v3827_v16  ;;  %v3828_v11 = vunpack.i.l.bf16 %v3827_v16 }
0x113f   :  { %3788 = vmatmul.msk.f32.vlgmr.msra.gmra.mxu3 %vm5489_vm11, %v3184_v57 }
0x1140   :  { %3435 = vmatpush.msra.mxu2 %v3828_v11 }
0x1142   :  { %3436 = vmatpush.msra.mxu2 %v3829_v49 }
0x1153   :  { %v3262_v39 = vpop.f32.mrf.mxu0 }
0x1154   :  { %v3291_v54 = vrot.slane %v3262_v39, 4 }
0x1161   :  { %v3210_v53 = vpop.f32.mrf.mxu2 }
0x1162   :  { %v3292_v6 = vsel %vm290_vm3, %v3291_v54, %v3210_v53  ;;  %v3293_v42 = vrot.slane %v3210_v53, 4 }
0x1163   :  { %v3288_v58 = vpop.f32.mrf.mxu1  ;;  %v3298_v40 = vperm.slane %v3292_v6, %v4234_v35 }
0x1164   :  { %v3303_v30 = vrot.slane %v3288_v58, 4  ;;  %v3294_v7 = vsel %vm290_vm3, %v3262_v39, %v3293_v42 }
0x1165   :  { %v3317_v59 = vrot.slane %v3298_v40, 4  ;;  %v3302_v21 = vperm.slane %v3294_v7, %v4234_v35 }
0x11c2   :  { %v3236_v19 = vpop.f32.mrf.mxu3 }
0x11c3   :  { %v3304_v47 = vsel %vm290_vm3, %v3303_v30, %v3236_v19  ;;  %v3305_v44 = vrot.slane %v3236_v19, 4 }
0x11c4   :  { %v3310_v15 = vperm.slane %v3304_v47, %v4234_v35 }
0x11c5   :  { %v3306_v37 = vsel %vm290_vm3, %v3288_v58, %v3305_v44  ;;  %v5388_v44 = vld [vmem:[%s5475_s2 + $0x18] sm:$0xff] }
0x11c6   :  { %v3314_v10 = vperm.slane %v3306_v37, %v4234_v35  ;;  %v3315_v52 = vrot.slane %v3310_v15, 4  ;;  %v3318_v1 = vsel %vm290_vm3, %v3310_v15, %v3317_v59  ;;  %v3401_v59 = vperm.slane %v5388_v44, 6 }
0x11c7   :  { %v3326_v28 = vperm.slane %v3318_v1, %v4238_v43 }
0x11c8   :  { %v3316_v3 = vsel %vm290_vm3, %v3315_v52, %v3298_v40  ;;  %v3327_v62 = vrot.slane %v3314_v10, 4 }
0x11c9   :  { %v3322_v29 = vperm.slane %v3316_v3, %v4238_v43  ;;  %v3331_v50 = vrot.slane %v3326_v28, 4 }
0x11ca   :  { %v3328_v8 = vsel %vm290_vm3, %v3327_v62, %v3302_v21 }
0x11cb   :  { %v3329_v34 = vrot.slane %v3322_v29, 4  ;;  %v3332_v2 = vsel %vm290_vm3, 0.0, %v3331_v50  ;;  %v3333_v9 = vsel %vm290_vm3, %v3331_v50, %v3322_v29  ;;  %v3347_v38 = vperm.slane %v3328_v8, %v4238_v43 }
0x11cc   :  { %v3338_v36 = vrot.slane %v3332_v2, 4  ;;  %v3337_v14 = vperm.slane %v3333_v9, %v4234_v35 }
0x11cd   :  { %v3330_v23 = vsel %vm290_vm3, 0.0, %v3329_v34  ;;  %v3351_v61 = vperm.slane %v3347_v38, %v4234_v35  ;;  %v3748_v38 = vld [vmem:[%s5477_s4 + $0x78] sm:$0xff] }
0x11ce   :  { %v3339_v32 = vsel %vm290_vm3, %v3338_v36, %v3330_v23  ;;  %v3354_v17 = vrot.slane %v3337_v14, 4  ;;  %v3747_v36 = vld [vmem:[%s5477_s4 + $0x70] sm:$0xff] }
0x11cf   :  { %v3343_v5 = vperm.slane %v3339_v32, %v4234_v35  ;;  %v3364_v63 = vrot.slane %v3351_v61, 4  ;;  %v3369_v55 = vperm.slane %v3351_v61, %v4238_v43  ;;  %v3746_v61 = vld [vmem:[%s5477_s4 + $0x68] sm:$0xff] }
0x11d1   :  { %v3355_v56 = vsel %vm290_vm3, %v3343_v5, %v3354_v17  ;;  %v3365_v60 = vsel %vm290_vm3, 0.0, %v3364_v63  ;;  %v3352_v12 = vrot.slane %v3343_v5, 4  ;;  %v3374_v24 = vrot.slane %v3369_v55, 4 }
0x11d2   :  { %v3373_v18 = vperm.slane %v3365_v60, %v4238_v43  ;;  %v3363_v33 = vperm.slane %v3355_v56, %v4238_v43 }
0x11d3   :  { %v3353_v31 = vsel %vm290_vm3, %v3352_v12, %v3337_v14 }
0x11d4   :  { %v3378_v48 = vrot.slane %v3373_v18, 4  ;;  %v3359_v51 = vperm.slane %v3353_v31, %v4238_v43  ;;  %v3380_v0 = vrot.slane %v3363_v33, 4  ;;  %v2668_v43 = vpop.permute.xlu2 %2667 }
0x11d6   :  { %v3379_v35 = vsel %vm290_vm3, %v3378_v48, %v3363_v33  ;;  %v3376_v45 = vrot.slane %v3359_v51, 4  ;;  %v3375_v25 = vsel %vm290_vm3, %v3374_v24, %v3359_v51  ;;  %v3381_v22 = vsel %vm290_vm3, %v3373_v18, %v3380_v0  ;;  %v5420_v51 = vld [vmem:[%s5475_s2 + $0x20] sm:$0x3] }
0x11d7   :  { %3387 = vrot.lane.b32.xlu0 %v3379_v35, %s3984_s18  ;;  %v3492_v24 = vperm.slane %v5388_v44, 7  ;;  %v3752_v44 = vld [vmem:[%s5477_s4 + $0x98] sm:$0xff] }
0x11d8   :  { %v3377_v27 = vsel %vm290_vm3, %v3369_v55, %v3376_v45  ;;  %vm5490_vm3 = vcmask 130048  }
0x11d9   :  { %3383 = vrot.lane.b32.xlu1 %v3377_v27, %s3983_s17  ;;  %vm5492_vm13 = vmmov %vm5490_vm3  ;;  %v3495_v27 = vperm.slane %v5420_v51, 0 }
0x11dc   :  { %v3832_v57 = vpop.permute.xlu2 %3831 }
0x11dd   :  { %v3834_v16 = vunpack.i.h.bf16 %v3832_v57  ;;  %v3833_v49 = vunpack.i.l.bf16 %v3832_v57 }
0x11df   :  { %3391 = vrot.lane.b32.xlu0 %v3381_v22, %s3985_s19  ;;  %3437 = vmatpush.msra.mxu2 %v3833_v49 }
0x11e1   :  { %2671 = vrot.lane.b32.xlu1 %v5254_v13, %s3984_s18  ;;  %3438 = vmatpush.msra.mxu2 %v3834_v16  ;;  %v2678_v13 = vsel %vm601_vm4, %v5247_v41, %v2668_v43 }
0x11e7   :  { %2675 = vrot.lane.b32.xlu0 %v5250_v4, %s3985_s19 }
0x1249   :  { %v3388_v11 = vpop.permute.xlu0 %3387 }
0x124b   :  { %v3384_v39 = vpop.permute.xlu1 %3383 }
0x124c   :  { %v3394_v54 = vsel %vm601_vm4, %v3375_v25, %v3384_v39 }
0x124d   :  { %v3395_v6 = vsel %vm5490_vm3, %v3394_v54, %v3388_v11  ;;  %v3757_v54 = vld [vmem:[%s5477_s4 + $0xc0] sm:$0xff] }
0x124e   :  { %3585 = vmatpush.msrb.mxu0 %v3757_v54 }
0x1251   :  { %v3392_v53 = vpop.permute.xlu0 %3391 }
0x1252   :  { %v3396_v58 = vsel %vm5491_vm12, %v3395_v6, %v3392_v53  ;;  %v3838_v6 = vld [vmem:[%s5477_s4 + $0xc8] ss:$0 sm:$0xff] }
0x1253   :  { %v2672_v40 = vpop.permute.xlu1 %2671  ;;  %v3398_v4 = vrot.slane %v3396_v58, 3  ;;  %v3756_v58 = vld [vmem:[%s5477_s4 + $0xb8] sm:$0xff] }
0x1254   :  { %v2679_v42 = vsel %vm5492_vm13, %v2678_v13, %v2672_v40  ;;  %3586 = vmatpush.msrb.mxu0 %v3756_v58  ;;  %v3755_v40 = vld [vmem:[%s5477_s4 + $0xb0] sm:$0xff] }
0x1256   :  { %3587 = vmatpush.msrb.mxu0 %v3755_v40 }
0x1259   :  { %v2676_v30 = vpop.permute.xlu0 %2675 }
0x125a   :  { %v2680_v19 = vsel %vm5493_vm14, %v2679_v42, %v2676_v30  ;;  %v3754_v42 = vld [vmem:[%s5477_s4 + $0xa8] sm:$0xff]  ;;  %vm3636_vm14 = vcmask 259077  }
0x125b   :  { %v3400_v47 = vsel %vm755_vm7, %v2680_v19, %v3398_v4  ;;  %3588 = vmatpush.msrb.mxu0 %v3754_v42  ;;  %v3753_v19 = vld [vmem:[%s5477_s4 + $0xa0] sm:$0xff] }
0x125c   :  { %3793 = vmatmul.msk.f32.vlgmr.msra.gmra.mxu2 %vm107_vm1, %v3400_v47 }
0x125d   :  { %3589 = vmatpush.msrb.mxu0 %v3753_v19 }
0x125f   :  { %3590 = vmatpush.msrb.mxu0 %v3752_v44 }
0x1264   :  { %3794 = vmatmul.msk.f32.gmra.mxu2 %vm107_vm1, %v3398_v4 }
0x12df   :  { %v3440_v41 = vpop.f32.mrf.mxu2 }
0x12e0   :  { %v3441_v15 = vadd.f32 %v3440_v41, %v3401_v59 }
0x12e2   :  { %v5392_v7 = vadd.f32 %v3441_v15, %v4794_v20 }
0x12e4   :  { %v3448_v37 = vsel %vm107_vm1, %v5392_v7, 0.0 }
0x12e5   :  { %3449 = vadd.xlane.f32.xlu1 %v3448_v37  ;;  %v3750_v37 = vld [vmem:[%s5477_s4 + $0x88] sm:$0xff] }
0x12e7   :  { %v3443_v10 = vpop.f32.mrf.mxu2 }
0x12e8   :  { %v3444_v52 = vadd.f32 %v3443_v10, %v3401_v59  ;;  %v3751_v59 = vld [vmem:[%s5477_s4 + $0x90] sm:$0xff] }
0x12e9   :  { %3591 = vmatpush.msrb.mxu0 %v3751_v59 }
0x12ea   :  { %v3447_v1 = vadd.f32 %v3444_v52, %v4799_v26  ;;  %v3749_v26 = vld [vmem:[%s5477_s4 + $0x80] sm:$0xff] }
0x12eb   :  { %3517 = vmatpush.msrb.mxu3 %v3749_v26  ;;  %3592 = vmatpush.msrb.mxu0 %v3750_v37 }
0x12ec   :  { %v3451_v28 = vsel %vm111_vm2, %v3447_v1, 0.0 }
0x12ed   :  { %3452 = vadd.xlane.f32.xlu0 %v3451_v28  ;;  %3518 = vmatpush.msrb.mxu3 %v3748_v38 }
0x12ef   :  { %3519 = vmatpush.msrb.mxu3 %v3747_v36 }
0x12f1   :  { %3520 = vmatpush.msrb.mxu3 %v3746_v61 }
0x1358   :  { %v3450_v21 = vpop.xlane.xlu1 %3449 }
0x1359   :  { %v3454_v3 = vmul.f32 %v3450_v21, %v4115_v46 }
0x135b   :  { %v3456_v62 = vsub.f32 %v5392_v7, %v3454_v3 }
0x135d   :  { %v3458_v29 = vmul.f32 %v3456_v62, %v3456_v62 }
0x135f   :  { %v3460_v20 = vsel %vm107_vm1, %v3458_v29, 0.0 }
0x1360   :  { %v3453_v50 = vpop.xlane.xlu0 %3452  ;;  %3461 = vadd.xlane.f32.xlu2 %v3460_v20 }
0x1361   :  { %v3455_v8 = vmul.f32 %v3453_v50, %v4115_v46 }
0x1363   :  { %v3457_v34 = vsub.f32 %v3447_v1, %v3455_v8 }
0x1365   :  { %v3459_v2 = vmul.f32 %v3457_v34, %v3457_v34 }
0x1367   :  { %v3463_v9 = vsel %vm111_vm2, %v3459_v2, 0.0 }
0x1368   :  { %3464 = vadd.xlane.f32.xlu1 %v3463_v9 }
0x13d3   :  { %v3462_v14 = vpop.xlane.xlu2 %3461 }
0x13d4   :  { %v3466_v23 = vmul.f32 %v3462_v14, %v4115_v46 }
0x13d6   :  { %v3468_v32 = vadd.f32 1e-05, %v3466_v23 }
0x13d8   :  { %3929 = vrsqrt.f32 %v3468_v32  ;;  %vm3476_vm4 = vweird.f32 %v3468_v32 }
0x13db   :  { %v3465_v17 = vpop.xlane.xlu1 %3464 }
0x13dc   :  { %v3467_v5 = vmul.f32 %v3465_v17, %v4115_v46 }
0x13de   :  { %v3930_v63 = vpop.eup %3929  ;;  %v3469_v55 = vadd.f32 1e-05, %v3467_v5 }
0x13df   :  { %v3471_v56 = vmul.f32 %v3930_v63, %v3468_v32  ;;  %vm3477_vm2 = vweird.f32 %v3930_v63 }
0x13e0   :  { %3931 = vrsqrt.f32 %v3469_v55  ;;  %vm3478_vm7 = vmor %vm3476_vm4, %vm3477_vm2  ;;  %vm3486_vm8 = vweird.f32 %v3469_v55  ;;  %vm3600_vm2 = vcmask 253952  }
0x13e1   :  { %v3472_v60 = vmul.f32 %v3930_v63, %v3471_v56 }
0x13e3   :  { %v3473_v12 = vmul.f32 0.5, %v3472_v60 }
0x13e5   :  { %v3474_v18 = vsub.f32 1.5, %v3473_v12 }
0x13e6   :  { %v3932_v31 = vpop.eup %3931 }
0x13e7   :  { %v3475_v33 = vmul.f32 %v3930_v63, %v3474_v18  ;;  %v3481_v48 = vmul.f32 %v3932_v31, %v3469_v55  ;;  %vm3487_vm15 = vweird.f32 %v3932_v31  ;;  %v3570_v18 = vperm.slane %v5420_v51, 1 }
0x13e8   :  { %vm3488_vm9 = vmor %vm3486_vm8, %vm3487_vm15 }
0x13e9   :  { %v3479_v35 = vsel %vm3478_vm7, %v3930_v63, %v3475_v33  ;;  %v3482_v45 = vmul.f32 %v3932_v31, %v3481_v48 }
0x13ea   :  { %v3490_v25 = vmul.f32 %v3479_v35, %v3456_v62 }
0x13eb   :  { %v3483_v0 = vmul.f32 0.5, %v3482_v45 }
0x13ec   :  { %v3493_v22 = vmul.f32 %v3492_v24, %v3490_v25 }
0x13ed   :  { %v3484_v43 = vsub.f32 1.5, %v3483_v0 }
0x13ee   :  { %v3496_v57 = vadd.f32 %v3495_v27, %v3493_v22 }
0x13ef   :  { %v3485_v16 = vmul.f32 %v3932_v31, %v3484_v43 }
0x13f0   :  { %3795 = vmatmul.msk.f32.vlgmr.msrb.gmra.mxu3 %vm107_vm1, %v3496_v57 }
0x13f1   :  { %v3489_v49 = vsel %vm3488_vm9, %v3932_v31, %v3485_v16 }
0x13f2   :  { %v3491_v11 = vmul.f32 %v3489_v49, %v3457_v34 }
0x13f4   :  { %v3494_v39 = vmul.f32 %v3492_v24, %v3491_v11 }
0x13f6   :  { %v3497_v53 = vadd.f32 %v3495_v27, %v3494_v39 }
0x13f8   :  { %3796 = vmatmul.msk.f32.gmra.mxu3 %vm107_vm1, %v3497_v53 }
0x1473   :  { %v3522_v13 = vpop.f32.mrf.mxu3 }
0x1474   :  { %v3523_v4 = vadd.f32 %v3838_v6, %v3522_v13  ;;  %v3947_v13 = vld [vmem:[%s5475_s2 + $0x8] sm:$0xff]  ;;  %s3987_s2 = smov [#allocation2]  }
0x1475   :  { %s3687_s13 = sshll.u32 %s3987_s2, 4  ;;  %s3688_s13 = int_to_ptr.vmem [resolvable:$true] %s3687_s13 }
0x1476   :  { %v3797_v30 = vmul.f32 -1.702, %v3523_v4 }
0x1478   :  { %v3532_v47 = vmul.f32 1.442695, %v3797_v30 }
0x147a   :  { %3933 = vpow2.f32 %v3532_v47 }
0x147b   :  { %v3525_v41 = vpop.f32.mrf.mxu3 }
0x147c   :  { %v3526_v15 = vadd.f32 %v3838_v6, %v3525_v41  ;;  %v3986_v6 = vmov 0  }
0x147d   :  { %3835 = vset.pattern.permute.xlu2 %v3986_v6  ;;  %3836 = vset.pattern.permute.xlu0 %v3986_v6 }
0x147e   :  { %v3798_v10 = vmul.f32 -1.702, %v3526_v15 }
0x1480   :  { %v3934_v52 = vpop.eup %3933  ;;  %v3534_v1 = vmul.f32 1.442695, %v3798_v10 }
0x1481   :  { %v3536_v28 = vadd.f32 1.0, %v3934_v52  ;;  %v3624_v52 = vrot.slane %v3947_v13, 4 }
0x1482   :  { %3935 = vpow2.f32 %v3534_v1 }
0x1483   :  { %3937 = vrcp.f32 %v3536_v28  ;;  %v3549_v50 = vand.u32 2147483648, %v3536_v28  ;;  %v3547_v34 = vand.u32 2147483647, %v3536_v28  ;;  %vm3543_vm5 = vweird.f32 %v3536_v28 }
0x1485   :  { %v3550_v26 = vor.u32 1.1754944e-38, %v3549_v50  ;;  %vm3548_vm10 = vcmp.eq.f32.partialorder %v3547_v34, 8.507059e+37  ;;  %v3630_v50 = vrot.slane %v3947_v13, 6  ;;  %v3663_v34 = vrot.slane %v3947_v13, 1 }
0x1488   :  { %v3936_v21 = vpop.eup %3935 }
0x1489   :  { %v3938_v3 = vpop.eup %3937  ;;  %v3537_v62 = vadd.f32 1.0, %v3936_v21 }
0x148a   :  { %v3539_v29 = vmul.f32 %v3938_v3, %v3536_v28  ;;  %vm3544_vm1 = vweird.f32 %v3938_v3  ;;  %v3659_v28 = vrot.slane %v3947_v13, 7 }
0x148b   :  { %3939 = vrcp.f32 %v3537_v62  ;;  %vm3545_vm6 = vmor %vm3543_vm5, %vm3544_vm1  ;;  %v3564_v32 = vand.u32 2147483648, %v3537_v62  ;;  %v3562_v5 = vand.u32 2147483647, %v3537_v62  ;;  %vm3558_vm3 = vweird.f32 %v3537_v62 }
0x148c   :  { %v3540_v20 = vsub.f32 1.0, %v3539_v29  ;;  %vm3672_vm1 = vcmask 7168   ;;  %vm3680_vm5 = vcmask 8192  }
0x148d   :  { %v3565_v55 = vor.u32 1.1754944e-38, %v3564_v32  ;;  %vm3563_vm13 = vcmp.eq.f32.partialorder %v3562_v5, 8.507059e+37 }
0x148e   :  { %v3541_v8 = vmul.f32 %v3938_v3, %v3540_v20 }
0x1490   :  { %v3542_v2 = vadd.f32 %v3938_v3, %v3541_v8 }
0x1491   :  { %v3940_v9 = vpop.eup %3939 }
0x1492   :  { %v3546_v38 = vsel %vm3545_vm6, %v3938_v3, %v3542_v2  ;;  %v3554_v36 = vmul.f32 %v3940_v9, %v3537_v62  ;;  %vm3559_vm11 = vweird.f32 %v3940_v9  ;;  %v3627_v62 = vrot.slane %v3947_v13, 5 }
0x1493   :  { %v3551_v14 = vsel %vm3548_vm10, %v3550_v26, %v3546_v38  ;;  %vm3560_vm12 = vmor %vm3558_vm3, %vm3559_vm11 }
0x1494   :  { %v3568_v23 = vmul.f32 %v3551_v14, %v3523_v4  ;;  %v3555_v61 = vsub.f32 1.0, %v3554_v36 }
0x1496   :  { %v3556_v17 = vmul.f32 %v3940_v9, %v3555_v61  ;;  %3799 = vmatmul.msk.f32.vlgmr.msrb.gmra.mxu0 %vm54_vm0, %v3568_v23 }
0x1498   :  { %v3557_v63 = vadd.f32 %v3940_v9, %v3556_v17 }
0x149a   :  { %v3561_v56 = vsel %vm3560_vm12, %v3940_v9, %v3557_v63 }
0x149b   :  { %v3566_v60 = vsel %vm3563_vm13, %v3565_v55, %v3561_v56 }
0x149c   :  { %v3569_v12 = vmul.f32 %v3566_v60, %v3526_v15 }
0x149e   :  { %3800 = vmatmul.msk.f32.gmra.mxu0 %vm54_vm0, %v3569_v12 }
0x1513   :  { %v3594_v31 = vpop.f32.mrf.mxu0 }
0x1514   :  { %v3595_v33 = vadd.f32 %v3594_v31, %v3570_v18 }
0x1516   :  { %v3599_v48 = vadd.f32 %v3595_v33, %v5392_v7 }
0x1518   :  { %v3637_v24 = vsel %vm3636_vm14, %v3599_v48, 0.0  ;;  %v3601_v35 = vsel %vm3600_vm2, %v3599_v48, 0.0 }
0x1519   :  { %3638 = vadd.xlane.f32.xlu2 %v3637_v24  ;;  %3602 = vadd.xlane.f32.xlu0 %v3601_v35 }
0x151b   :  { %v3597_v45 = vpop.f32.mrf.mxu0 }
0x158c   :  { %v3639_v25 = vpop.xlane.xlu2 %3638  ;;  %v3603_v27 = vpop.xlane.xlu0 %3602 }
0x158d   :  { %v3640_v0 = vmul.f32 %v3639_v25, %v4115_v46  ;;  %v3604_v22 = vmul.f32 %v3603_v27, %v4115_v46 }
0x158f   :  { %v3641_v51 = vsub.f32 %v3599_v48, %v3640_v0  ;;  %v3605_v43 = vsub.f32 %v3599_v48, %v3604_v22 }
0x1591   :  { %v3642_v57 = vmul.f32 %v3641_v51, %v3641_v51  ;;  %v3606_v16 = vmul.f32 %v3605_v43, %v3605_v43 }
0x1593   :  { %v3643_v49 = vsel %vm3636_vm14, %v3642_v57, 0.0  ;;  %v3607_v7 = vsel %vm3600_vm2, %v3606_v16, 0.0 }
0x1594   :  { %3644 = vadd.xlane.f32.xlu1 %v3643_v49  ;;  %3608 = vadd.xlane.f32.xlu2 %v3607_v7 }
0x15ac   :  { %3675 = vperm.xlu2 %3835, %v3947_v13  }
0x1607   :  { %v3609_v11 = vpop.xlane.xlu2 %3608  ;;  %v3645_v39 = vpop.xlane.xlu1 %3644 }
0x1608   :  { %v3610_v53 = vmul.f32 %v3609_v11, %v4115_v46  ;;  %v3646_v54 = vmul.f32 %v3645_v39, %v4115_v46 }
0x160a   :  { %v3611_v58 = vadd.f32 1e-05, %v3610_v53  ;;  %v3647_v40 = vadd.f32 1e-05, %v3646_v54 }
0x160c   :  { %3941 = vrsqrt.f32 %v3611_v58  ;;  %vm3618_vm7 = vweird.f32 %v3611_v58  ;;  %vm3654_vm8 = vweird.f32 %v3647_v40 }
0x160d   :  { %3943 = vrsqrt.f32 %v3647_v40 }
0x160f   :  { %v3676_v23 = vpop.permute.xlu2 %3675 }
0x1610   :  { %v3677_v32 = vrot.slane %v3676_v23, 7 }
0x1612   :  { %v3942_v4 = vpop.eup %3941 }
0x1613   :  { %v3944_v42 = vpop.eup %3943  ;;  %v3613_v30 = vmul.f32 %v3942_v4, %v3611_v58  ;;  %vm3619_vm0 = vweird.f32 %v3942_v4 }
0x1614   :  { %v3649_v19 = vmul.f32 %v3944_v42, %v3647_v40  ;;  %vm3655_vm4 = vweird.f32 %v3944_v42  ;;  %vm3620_vm15 = vmor %vm3618_vm7, %vm3619_vm0 }
0x1615   :  { %v3614_v47 = vmul.f32 %v3942_v4, %v3613_v30  ;;  %vm3656_vm9 = vmor %vm3654_vm8, %vm3655_vm4 }
0x1616   :  { %v3650_v44 = vmul.f32 %v3944_v42, %v3649_v19 }
0x1617   :  { %v3615_v59 = vmul.f32 0.5, %v3614_v47 }
0x1618   :  { %v3651_v46 = vmul.f32 0.5, %v3650_v44 }
0x1619   :  { %v3616_v41 = vsub.f32 1.5, %v3615_v59 }
0x161a   :  { %v3652_v15 = vsub.f32 1.5, %v3651_v46 }
0x161b   :  { %v3617_v37 = vmul.f32 %v3942_v4, %v3616_v41 }
0x161c   :  { %v3653_v10 = vmul.f32 %v3944_v42, %v3652_v15 }
0x161d   :  { %v3621_v1 = vsel %vm3620_vm15, %v3942_v4, %v3617_v37 }
0x161e   :  { %v3657_v21 = vsel %vm3656_vm9, %v3944_v42, %v3653_v10  ;;  %v3622_v3 = vmul.f32 %v3621_v1, %v3605_v43 }
0x161f   :  { %v3658_v29 = vmul.f32 %v3657_v21, %v3641_v51 }
0x1620   :  { %v3626_v20 = vmul.f32 %v3624_v52, %v3622_v3 }
0x1621   :  { %v3661_v8 = vmul.f32 %v3659_v28, %v3658_v29 }
0x1622   :  { %v3629_v2 = vadd.f32 %v3627_v62, %v3626_v20 }
0x1623   :  { %v3662_v9 = vadd.f32 %v3947_v13, %v3661_v8 }
0x1624   :  { %v3632_v26 = vmul.f32 %v3630_v50, %v3629_v2 }
0x1625   :  { %v3665_v38 = vmul.f32 %v3663_v34, %v3662_v9 }
0x1626   :  { %v3633_v36 = vsel %vm3600_vm2, %v3632_v26, 0.0 }
0x1627   :  { %3634 = vadd.xlane.f32.xlu1 %v3633_v36  ;;  %v3666_v14 = vsel %vm3636_vm14, %v3665_v38, 0.0 }
0x1628   :  { %3667 = vadd.xlane.f32.xlu0 %v3666_v14 }
0x169a   :  { %v3635_v5 = vpop.xlane.xlu1 %3634 }
0x169b   :  { %v3668_v61 = vpop.xlane.xlu0 %3667 }
0x169c   :  { %v3670_v17 = vrot.slane %v3668_v61, 5 }
0x169e   :  { %v3673_v63 = vsel %vm3672_vm1, %v3635_v5, %v3670_v17 }
0x169f   :  { %v3679_v55 = vadd.f32 %v3677_v32, %v3673_v63 }
0x16a1   :  { %3681 = vst.msk [vmem:[#allocation2] sm:$0x1] %vm3680_vm5, %v3679_v55 }
0x16a2   :  { %3692 = dma.vmem_to_hbm [thread:$0]  %s3688_s13, 16, %s3690_s16, [#allocation3]  }
0x16a3   :  { %3972 = dma.done.wait [#allocation3], 16  }
0x16a4   :  { %3973 = vsyncadd [#allocation3], 4294967280 }
0x16a5   :  { %3697 = vsyncpa [#allocation3], 1 }

</bundles_post_ra>
